<compile_context>
chip_gen: v7x
topology: tpu7x:2x2x1
jax: 0.10.0
libtpu: 0.0.40
codegen_flags: <defaults>
</compile_context>

<pallas_src>
import functools

import jax
import jax.numpy as jnp
from jax import lax
from jax.experimental import pallas as pl
from jax.experimental.pallas import tpu as pltpu

EPS = 1e-5


def _round_up(v, m):
    return (v + m - 1) // m * m


# -------------------------------- Pallas kernels --------------------------------------
# One grid step per batch sample; blocks are (C, L) with L = D*H*W on the lane axis.

def conv1_stats_kernel(xg_ref, w_ref, b_ref, tm_ref, y_ref, s_ref, sq_ref, *,
                       tap_starts, l_out):
    """3x3x3 conv (+bias) for one sample as ONE stacked GEMM.

    The 27 stencil taps are static lane-shifts of the guarded compact input; they are
    assembled once into a (27*C_in_p, L) operand, masked (per-tap boundary validity),
    and contracted against the resident 2-D weight slab.  Also emits per-channel
    sum / sum-of-squares of the bias-free conv output (training-mode BN1 stats)."""
    taps = [xg_ref[:, s:s + l_out] for s in tap_starts]       # 27 x (C_in_p, L)
    stacked = jnp.concatenate(taps, axis=0) * tm_ref[...]     # (27*C_in_p, L), masked
    yc = jnp.dot(w_ref[...], stacked, preferred_element_type=jnp.float32)
    y_ref[...] = yc + b_ref[...]                              # (C_mid_p, L)
    s_ref[...] = jnp.sum(yc, axis=1, keepdims=True)           # bias-free stats
    sq_ref[...] = jnp.sum(yc * yc, axis=1, keepdims=True)


def h_stats_kernel(y_ref, sc_ref, sh_ref, s_ref, g_ref):
    """BN1 (folded scale/shift) + ReLU, emitting only sum(h) and the Gram h.h^T
    (everything BN2 needs); h itself never touches HBM."""
    h = jnp.maximum(y_ref[...] * sc_ref[...] + sh_ref[...], 0.0)   # (C_mid_p, L)
    s_ref[...] = jnp.sum(h, axis=1, keepdims=True)                 # (C_mid_p, 1)
    g_ref[...] = lax.dot_general(h, h, (((1,), (1,)), ((), ())),   # (C_mid_p, C_mid_p)
                                 preferred_element_type=jnp.float32)


def fused_out_kernel(y_ref, sc_ref, sh_ref, w2_ref, b2_ref, o_ref):
    """BN1 + ReLU (recomputed, cheap) -> 1x1x1 conv with BN2 folded in -> ReLU."""
    h = jnp.maximum(y_ref[...] * sc_ref[...] + sh_ref[...], 0.0)
    z = jnp.dot(w2_ref[...], h, preferred_element_type=jnp.float32) + b2_ref[...]
    o_ref[...] = jnp.maximum(z, 0.0)


# ----------------------------------- wrapper -------------------------------------------

def encoder_conv_forward(x, params):
    """x: (N, C_in, D, H, W) f32 -> (N, C_out, D, H, W) f32 (EncoderConv forward)."""
    w1, b1, g1, be1, w2, b2, g2, be2 = params
    N, C_in, D, H, W = x.shape
    C_mid = w1.shape[0]                   # == C_in for this module
    C_out = w2.shape[0]
    C_in_p = _round_up(C_in, 8)           # full f32 sublanes + aligned tap stacking
    C_mid_p = _round_up(C_mid, 8)
    C_out_p = _round_up(C_out, 8)
    L = D * H * W                         # compact spatial length (lane axis)
    K = 27 * C_in_p                       # stacked-GEMM contraction depth
    Gc = H * W + W + 1                    # max |flat tap shift| -> guard band
    Lg = _round_up(L + 2 * Gc, 128)
    rows = N * L                          # BatchNorm sample count

    # ---- cheap XLA prep (small tensors only) -----------------------------------------
    # guarded compact input: channel-pad to C_in_p, flatten spatial, zero guard bands
    x_flat = jnp.pad(x, ((0, 0), (0, C_in_p - C_in), (0, 0), (0, 0), (0, 0)))
    x_flat = x_flat.reshape(N, C_in_p, L)
    xg = jnp.pad(x_flat, ((0, 0), (0, 0), (Gc, Lg - L - Gc)))        # (N, C_in_p, Lg)

    # per-tap lane offsets (into the guarded array) + per-tap boundary-validity masks
    dz = jnp.arange(D).reshape(D, 1, 1)
    hz = jnp.arange(H).reshape(1, H, 1)
    wz = jnp.arange(W).reshape(1, 1, W)
    tap_starts, masks = [], []
    for kd in range(3):
        for kh in range(3):
            for kw in range(3):
                tap_starts.append(Gc + (kd - 1) * H * W + (kh - 1) * W + (kw - 1))
                m = ((dz + kd - 1 >= 0) & (dz + kd - 1 < D) &
                     (hz + kh - 1 >= 0) & (hz + kh - 1 < H) &
                     (wz + kw - 1 >= 0) & (wz + kw - 1 < W))
                masks.append(m.reshape(L))
    tap_starts = tuple(tap_starts)
    tap_mask = jnp.repeat(jnp.stack(masks).astype(jnp.float32), C_in_p, axis=0)  # (K, L)

    # conv1 weights as a single 2-D slab matching the stacked operand row order
    w1_r = jnp.transpose(w1, (0, 2, 3, 4, 1))                        # (C_mid,3,3,3,C_in)
    w1_r = jnp.pad(w1_r, ((0, C_mid_p - C_mid), (0, 0), (0, 0), (0, 0),
                          (0, C_in_p - C_in)))
    w1_slab = w1_r.reshape(C_mid_p, K)                               # (C_mid_p, 27*C_in_p)
    b1_p = jnp.pad(b1, (0, C_mid_p - C_mid)).reshape(C_mid_p, 1)
    g1_p = jnp.pad(g1, (0, C_mid_p - C_mid)).reshape(C_mid_p, 1)     # zero-pad -> h_pad = 0
    be1_p = jnp.pad(be1, (0, C_mid_p - C_mid)).reshape(C_mid_p, 1)

    w2_m = jnp.pad(w2.reshape(C_out, C_mid),
                   ((0, C_out_p - C_out), (0, C_mid_p - C_mid)))     # (C_out_p, C_mid_p)
    b2_p = jnp.pad(b2, (0, C_out_p - C_out)).reshape(C_out_p, 1)
    g2_p = jnp.pad(g2, (0, C_out_p - C_out)).reshape(C_out_p, 1)
    be2_p = jnp.pad(be2, (0, C_out_p - C_out)).reshape(C_out_p, 1)

    pp = pltpu.CompilerParams(dimension_semantics=("parallel",))

    # ---- kernel 1: stacked-GEMM 3x3x3 conv (+bias) + per-sample BN1 partial stats ----
    y1, ps1, psq1 = pl.pallas_call(
        functools.partial(conv1_stats_kernel, tap_starts=tap_starts, l_out=L),
        out_shape=(jax.ShapeDtypeStruct((N, C_mid_p, L), jnp.float32),
                   jax.ShapeDtypeStruct((N, C_mid_p, 1), jnp.float32),
                   jax.ShapeDtypeStruct((N, C_mid_p, 1), jnp.float32)),
        grid=(N,),
        in_specs=[pl.BlockSpec((None, C_in_p, Lg), lambda n: (n, 0, 0)),
                  pl.BlockSpec((C_mid_p, K), lambda n: (0, 0)),     # resident weights
                  pl.BlockSpec((C_mid_p, 1), lambda n: (0, 0)),     # resident bias
                  pl.BlockSpec((K, L), lambda n: (0, 0))],          # resident tap masks
        out_specs=(pl.BlockSpec((None, C_mid_p, L), lambda n: (n, 0, 0)),
                   pl.BlockSpec((None, C_mid_p, 1), lambda n: (n, 0, 0)),
                   pl.BlockSpec((None, C_mid_p, 1), lambda n: (n, 0, 0))),
        compiler_params=pp,
    )(xg, w1_slab, b1_p, tap_mask)

    # BN1 (training mode: batch mean, biased variance).  Stats were taken on the
    # bias-free conv output (variance is shift-invariant) for better cancellation.
    m_c = jnp.sum(ps1, axis=0) / rows                                 # (C_mid_p, 1)
    var1 = jnp.maximum(jnp.sum(psq1, axis=0) / rows - m_c * m_c, 0.0)
    mean1 = m_c + b1_p
    scale1 = g1_p * lax.rsqrt(var1 + EPS)
    shift1 = be1_p - mean1 * scale1

    # ---- kernel 2: h statistics only (sum + Gram); h never hits HBM -------------------
    hs, hg = pl.pallas_call(
        h_stats_kernel,
        out_shape=(jax.ShapeDtypeStruct((N, C_mid_p, 1), jnp.float32),
                   jax.ShapeDtypeStruct((N, C_mid_p, C_mid_p), jnp.float32)),
        grid=(N,),
        in_specs=[pl.BlockSpec((None, C_mid_p, L), lambda n: (n, 0, 0)),
                  pl.BlockSpec((C_mid_p, 1), lambda n: (0, 0)),
                  pl.BlockSpec((C_mid_p, 1), lambda n: (0, 0))],
        out_specs=(pl.BlockSpec((None, C_mid_p, 1), lambda n: (n, 0, 0)),
                   pl.BlockSpec((None, C_mid_p, C_mid_p), lambda n: (n, 0, 0))),
        compiler_params=pp,
    )(y1, scale1, shift1)

    # analytic BN2 statistics:  z = W2 h + b2
    E_h = jnp.sum(hs, axis=0) / rows                                  # (C_mid_p, 1)
    E_hh = jnp.sum(hg, axis=0) / rows                                 # (C_mid_p, C_mid_p)
    wEh = w2_m @ E_h                                                  # (C_out_p, 1)
    mean2 = wEh + b2_p
    var2 = jnp.maximum(jnp.sum((w2_m @ E_hh) * w2_m, axis=1, keepdims=True) - wEh * wEh,
                       0.0)
    scale2 = g2_p * lax.rsqrt(var2 + EPS)
    shift2 = be2_p - mean2 * scale2
    w2_eff = scale2 * w2_m                                            # BN2 folded into conv2
    b2_eff = scale2 * b2_p + shift2

    # ---- kernel 3: BN1+ReLU (recompute) -> 1x1x1 conv (BN2 folded) -> ReLU ------------
    out_flat = pl.pallas_call(
        fused_out_kernel,
        out_shape=jax.ShapeDtypeStruct((N, C_out_p, L), jnp.float32),
        grid=(N,),
        in_specs=[pl.BlockSpec((None, C_mid_p, L), lambda n: (n, 0, 0)),
                  pl.BlockSpec((C_mid_p, 1), lambda n: (0, 0)),
                  pl.BlockSpec((C_mid_p, 1), lambda n: (0, 0)),
                  pl.BlockSpec((C_out_p, C_mid_p), lambda n: (0, 0)),
                  pl.BlockSpec((C_out_p, 1), lambda n: (0, 0))],
        out_specs=pl.BlockSpec((None, C_out_p, L), lambda n: (n, 0, 0)),
        compiler_params=pp,
    )(y1, scale1, shift1, w2_eff, b2_eff)

    # compact layout -> NCDHW is a pure metadata reshape (plus channel un-pad slice)
    return out_flat[:, :C_out, :].reshape(N, C_out, D, H, W)


# ----------------------------- pure-JAX reference --------------------------------------

def reference_forward(x, params):
    w1, b1, g1, be1, w2, b2, g2, be2 = params
    dn = ("NCDHW", "OIDHW", "NCDHW")

    def bn_relu(t, g, be):
        m = jnp.mean(t, axis=(0, 2, 3, 4), keepdims=True)
        v = jnp.mean((t - m) ** 2, axis=(0, 2, 3, 4), keepdims=True)   # biased var
        return jnp.maximum((t - m) * lax.rsqrt(v + EPS) * g.reshape(1, -1, 1, 1, 1)
                           + be.reshape(1, -1, 1, 1, 1), 0.0)

    y = lax.conv_general_dilated(x, w1, (1, 1, 1), ((1, 1), (1, 1), (1, 1)),
                                 dimension_numbers=dn) + b1.reshape(1, -1, 1, 1, 1)
    h = bn_relu(y, g1, be1)
    z = lax.conv_general_dilated(h, w2, (1, 1, 1), ((0, 0), (0, 0), (0, 0)),
                                 dimension_numbers=dn) + b2.reshape(1, -1, 1, 1, 1)
    return bn_relu(z, g2, be2)


# ------------------------------------- main ---------------------------------------------

if __name__ == "__main__":
    N, C_in, C_out = 2, 4, 8
    D, H, W = 8, 16, 16

    key = jax.random.PRNGKey(0)
    kx, k1, k2, k3, k4 = jax.random.split(key, 5)

    x = jax.random.normal(kx, (N, C_in, D, H, W), jnp.float32)

    # PyTorch parameter shapes: conv weight (out, in, kd, kh, kw)
    w1 = jax.random.normal(k1, (C_in, C_in, 3, 3, 3), jnp.float32) * 0.1
    b1 = jax.random.normal(k2, (C_in,), jnp.float32) * 0.1
    g1 = jnp.ones((C_in,), jnp.float32)      # BatchNorm3d init: weight=1, bias=0
    be1 = jnp.zeros((C_in,), jnp.float32)
    w2 = jax.random.normal(k3, (C_out, C_in, 1, 1, 1), jnp.float32) * 0.1
    b2 = jax.random.normal(k4, (C_out,), jnp.float32) * 0.1
    g2 = jnp.ones((C_out,), jnp.float32)
    be2 = jnp.zeros((C_out,), jnp.float32)

    params = (w1, b1, g1, be1, w2, b2, g2, be2)

    # TODO(synk): BatchNorm3d running_mean/running_var momentum updates (training-only
    # buffer state) are not produced; they do not affect this forward output.
    out = jax.block_until_ready(jax.jit(encoder_conv_forward)(x, params))
    ref = jax.block_until_ready(reference_forward(x, params))

    assert out.shape == (N, C_out, D, H, W)
    assert jnp.allclose(out, ref, rtol=1e-4, atol=1e-4), (
        "mismatch vs JAX reference: max abs err "
        f"{float(jnp.max(jnp.abs(out - ref)))}")

    print("KERNEL_OK")
</pallas_src>

<mosaic_0001>
module attributes {stable_mosaic.version = 11 : i64} {
  func.func @conv1_stats_kernel(%arg0: i32, %arg1: memref<1x8x2688xf32, #tpu.memory_space<vmem>>, %arg2: memref<8x216xf32, #tpu.memory_space<vmem>>, %arg3: memref<8x1xf32, #tpu.memory_space<vmem>>, %arg4: memref<216x2048xf32, #tpu.memory_space<vmem>>, %arg5: memref<1x8x2048xf32, #tpu.memory_space<vmem>>, %arg6: memref<1x8x1xf32, #tpu.memory_space<vmem>>, %arg7: memref<1x8x1xf32, #tpu.memory_space<vmem>>) attributes {dimension_semantics = [#tpu.dimension_semantics<parallel>], iteration_bounds = array<i64: 2>, scalar_prefetch = 0 : i64, scratch_operands = 0 : i64, tpu.core_type = #tpu.core_type<tc>, window_params = [{transform_indices = @transform_0, window_bounds = array<i64: 1, 8, 2688>}, {pipeline_mode = #tpu.pipeline_mode<synchronous>, transform_indices = @transform_1, window_bounds = array<i64: 8, 216>}, {pipeline_mode = #tpu.pipeline_mode<synchronous>, transform_indices = @transform_2, window_bounds = array<i64: 8, 1>}, {pipeline_mode = #tpu.pipeline_mode<synchronous>, transform_indices = @transform_3, window_bounds = array<i64: 216, 2048>}, {transform_indices = @transform_4, window_bounds = array<i64: 1, 8, 2048>}, {transform_indices = @transform_5, window_bounds = array<i64: 1, 8, 1>}, {transform_indices = @transform_6, window_bounds = array<i64: 1, 8, 1>}]} {
    %c0 = arith.constant 0 : index
    %c0_0 = arith.constant 0 : index
    %c0_1 = arith.constant 0 : index
    %0 = vector.load %arg1[%c0, %c0_0, %c0_1] : memref<1x8x2688xf32, #tpu.memory_space<vmem>>, vector<1x8x2048xf32>
    %1 = vector.shape_cast %0 : vector<1x8x2048xf32> to vector<8x2048xf32>
    %c0_2 = arith.constant 0 : index
    %c0_3 = arith.constant 0 : index
    %c1 = arith.constant 1 : index
    %2 = vector.load %arg1[%c0_2, %c0_3, %c1] : memref<1x8x2688xf32, #tpu.memory_space<vmem>>, vector<1x8x2048xf32>
    %3 = vector.shape_cast %2 : vector<1x8x2048xf32> to vector<8x2048xf32>
    %c0_4 = arith.constant 0 : index
    %c0_5 = arith.constant 0 : index
    %c2 = arith.constant 2 : index
    %4 = vector.load %arg1[%c0_4, %c0_5, %c2] : memref<1x8x2688xf32, #tpu.memory_space<vmem>>, vector<1x8x2048xf32>
    %5 = vector.shape_cast %4 : vector<1x8x2048xf32> to vector<8x2048xf32>
    %c0_6 = arith.constant 0 : index
    %c0_7 = arith.constant 0 : index
    %c16 = arith.constant 16 : index
    %6 = vector.load %arg1[%c0_6, %c0_7, %c16] : memref<1x8x2688xf32, #tpu.memory_space<vmem>>, vector<1x8x2048xf32>
    %7 = vector.shape_cast %6 : vector<1x8x2048xf32> to vector<8x2048xf32>
    %c0_8 = arith.constant 0 : index
    %c0_9 = arith.constant 0 : index
    %c17 = arith.constant 17 : index
    %8 = vector.load %arg1[%c0_8, %c0_9, %c17] : memref<1x8x2688xf32, #tpu.memory_space<vmem>>, vector<1x8x2048xf32>
    %9 = vector.shape_cast %8 : vector<1x8x2048xf32> to vector<8x2048xf32>
    %c0_10 = arith.constant 0 : index
    %c0_11 = arith.constant 0 : index
    %c18 = arith.constant 18 : index
    %10 = vector.load %arg1[%c0_10, %c0_11, %c18] : memref<1x8x2688xf32, #tpu.memory_space<vmem>>, vector<1x8x2048xf32>
    %11 = vector.shape_cast %10 : vector<1x8x2048xf32> to vector<8x2048xf32>
    %c0_12 = arith.constant 0 : index
    %c0_13 = arith.constant 0 : index
    %c32 = arith.constant 32 : index
    %12 = vector.load %arg1[%c0_12, %c0_13, %c32] : memref<1x8x2688xf32, #tpu.memory_space<vmem>>, vector<1x8x2048xf32>
    %13 = vector.shape_cast %12 : vector<1x8x2048xf32> to vector<8x2048xf32>
    %c0_14 = arith.constant 0 : index
    %c0_15 = arith.constant 0 : index
    %c33 = arith.constant 33 : index
    %14 = vector.load %arg1[%c0_14, %c0_15, %c33] : memref<1x8x2688xf32, #tpu.memory_space<vmem>>, vector<1x8x2048xf32>
    %15 = vector.shape_cast %14 : vector<1x8x2048xf32> to vector<8x2048xf32>
    %c0_16 = arith.constant 0 : index
    %c0_17 = arith.constant 0 : index
    %c34 = arith.constant 34 : index
    %16 = vector.load %arg1[%c0_16, %c0_17, %c34] : memref<1x8x2688xf32, #tpu.memory_space<vmem>>, vector<1x8x2048xf32>
    %17 = vector.shape_cast %16 : vector<1x8x2048xf32> to vector<8x2048xf32>
    %c0_18 = arith.constant 0 : index
    %c0_19 = arith.constant 0 : index
    %c256 = arith.constant 256 : index
    %18 = vector.load %arg1[%c0_18, %c0_19, %c256] : memref<1x8x2688xf32, #tpu.memory_space<vmem>>, vector<1x8x2048xf32>
    %19 = vector.shape_cast %18 : vector<1x8x2048xf32> to vector<8x2048xf32>
    %c0_20 = arith.constant 0 : index
    %c0_21 = arith.constant 0 : index
    %c257 = arith.constant 257 : index
    %20 = vector.load %arg1[%c0_20, %c0_21, %c257] : memref<1x8x2688xf32, #tpu.memory_space<vmem>>, vector<1x8x2048xf32>
    %21 = vector.shape_cast %20 : vector<1x8x2048xf32> to vector<8x2048xf32>
    %c0_22 = arith.constant 0 : index
    %c0_23 = arith.constant 0 : index
    %c258 = arith.constant 258 : index
    %22 = vector.load %arg1[%c0_22, %c0_23, %c258] : memref<1x8x2688xf32, #tpu.memory_space<vmem>>, vector<1x8x2048xf32>
    %23 = vector.shape_cast %22 : vector<1x8x2048xf32> to vector<8x2048xf32>
    %c0_24 = arith.constant 0 : index
    %c0_25 = arith.constant 0 : index
    %c272 = arith.constant 272 : index
    %24 = vector.load %arg1[%c0_24, %c0_25, %c272] : memref<1x8x2688xf32, #tpu.memory_space<vmem>>, vector<1x8x2048xf32>
    %25 = vector.shape_cast %24 : vector<1x8x2048xf32> to vector<8x2048xf32>
    %c0_26 = arith.constant 0 : index
    %c0_27 = arith.constant 0 : index
    %c273 = arith.constant 273 : index
    %26 = vector.load %arg1[%c0_26, %c0_27, %c273] : memref<1x8x2688xf32, #tpu.memory_space<vmem>>, vector<1x8x2048xf32>
    %27 = vector.shape_cast %26 : vector<1x8x2048xf32> to vector<8x2048xf32>
    %c0_28 = arith.constant 0 : index
    %c0_29 = arith.constant 0 : index
    %c274 = arith.constant 274 : index
    %28 = vector.load %arg1[%c0_28, %c0_29, %c274] : memref<1x8x2688xf32, #tpu.memory_space<vmem>>, vector<1x8x2048xf32>
    %29 = vector.shape_cast %28 : vector<1x8x2048xf32> to vector<8x2048xf32>
    %c0_30 = arith.constant 0 : index
    %c0_31 = arith.constant 0 : index
    %c288 = arith.constant 288 : index
    %30 = vector.load %arg1[%c0_30, %c0_31, %c288] : memref<1x8x2688xf32, #tpu.memory_space<vmem>>, vector<1x8x2048xf32>
    %31 = vector.shape_cast %30 : vector<1x8x2048xf32> to vector<8x2048xf32>
    %c0_32 = arith.constant 0 : index
    %c0_33 = arith.constant 0 : index
    %c289 = arith.constant 289 : index
    %32 = vector.load %arg1[%c0_32, %c0_33, %c289] : memref<1x8x2688xf32, #tpu.memory_space<vmem>>, vector<1x8x2048xf32>
    %33 = vector.shape_cast %32 : vector<1x8x2048xf32> to vector<8x2048xf32>
    %c0_34 = arith.constant 0 : index
    %c0_35 = arith.constant 0 : index
    %c290 = arith.constant 290 : index
    %34 = vector.load %arg1[%c0_34, %c0_35, %c290] : memref<1x8x2688xf32, #tpu.memory_space<vmem>>, vector<1x8x2048xf32>
    %35 = vector.shape_cast %34 : vector<1x8x2048xf32> to vector<8x2048xf32>
    %c0_36 = arith.constant 0 : index
    %c0_37 = arith.constant 0 : index
    %c512 = arith.constant 512 : index
    %36 = vector.load %arg1[%c0_36, %c0_37, %c512] : memref<1x8x2688xf32, #tpu.memory_space<vmem>>, vector<1x8x2048xf32>
    %37 = vector.shape_cast %36 : vector<1x8x2048xf32> to vector<8x2048xf32>
    %c0_38 = arith.constant 0 : index
    %c0_39 = arith.constant 0 : index
    %c513 = arith.constant 513 : index
    %38 = vector.load %arg1[%c0_38, %c0_39, %c513] : memref<1x8x2688xf32, #tpu.memory_space<vmem>>, vector<1x8x2048xf32>
    %39 = vector.shape_cast %38 : vector<1x8x2048xf32> to vector<8x2048xf32>
    %c0_40 = arith.constant 0 : index
    %c0_41 = arith.constant 0 : index
    %c514 = arith.constant 514 : index
    %40 = vector.load %arg1[%c0_40, %c0_41, %c514] : memref<1x8x2688xf32, #tpu.memory_space<vmem>>, vector<1x8x2048xf32>
    %41 = vector.shape_cast %40 : vector<1x8x2048xf32> to vector<8x2048xf32>
    %c0_42 = arith.constant 0 : index
    %c0_43 = arith.constant 0 : index
    %c528 = arith.constant 528 : index
    %42 = vector.load %arg1[%c0_42, %c0_43, %c528] : memref<1x8x2688xf32, #tpu.memory_space<vmem>>, vector<1x8x2048xf32>
    %43 = vector.shape_cast %42 : vector<1x8x2048xf32> to vector<8x2048xf32>
    %c0_44 = arith.constant 0 : index
    %c0_45 = arith.constant 0 : index
    %c529 = arith.constant 529 : index
    %44 = vector.load %arg1[%c0_44, %c0_45, %c529] : memref<1x8x2688xf32, #tpu.memory_space<vmem>>, vector<1x8x2048xf32>
    %45 = vector.shape_cast %44 : vector<1x8x2048xf32> to vector<8x2048xf32>
    %c0_46 = arith.constant 0 : index
    %c0_47 = arith.constant 0 : index
    %c530 = arith.constant 530 : index
    %46 = vector.load %arg1[%c0_46, %c0_47, %c530] : memref<1x8x2688xf32, #tpu.memory_space<vmem>>, vector<1x8x2048xf32>
    %47 = vector.shape_cast %46 : vector<1x8x2048xf32> to vector<8x2048xf32>
    %c0_48 = arith.constant 0 : index
    %c0_49 = arith.constant 0 : index
    %c544 = arith.constant 544 : index
    %48 = vector.load %arg1[%c0_48, %c0_49, %c544] : memref<1x8x2688xf32, #tpu.memory_space<vmem>>, vector<1x8x2048xf32>
    %49 = vector.shape_cast %48 : vector<1x8x2048xf32> to vector<8x2048xf32>
    %c0_50 = arith.constant 0 : index
    %c0_51 = arith.constant 0 : index
    %c545 = arith.constant 545 : index
    %50 = vector.load %arg1[%c0_50, %c0_51, %c545] : memref<1x8x2688xf32, #tpu.memory_space<vmem>>, vector<1x8x2048xf32>
    %51 = vector.shape_cast %50 : vector<1x8x2048xf32> to vector<8x2048xf32>
    %c0_52 = arith.constant 0 : index
    %c0_53 = arith.constant 0 : index
    %c546 = arith.constant 546 : index
    %52 = vector.load %arg1[%c0_52, %c0_53, %c546] : memref<1x8x2688xf32, #tpu.memory_space<vmem>>, vector<1x8x2048xf32>
    %53 = vector.shape_cast %52 : vector<1x8x2048xf32> to vector<8x2048xf32>
    %54 = tpu.concatenate %1, %3, %5, %7, %9, %11, %13, %15, %17, %19, %21, %23, %25, %27, %29, %31 in 0 : vector<8x2048xf32>, vector<8x2048xf32>, vector<8x2048xf32>, vector<8x2048xf32>, vector<8x2048xf32>, vector<8x2048xf32>, vector<8x2048xf32>, vector<8x2048xf32>, vector<8x2048xf32>, vector<8x2048xf32>, vector<8x2048xf32>, vector<8x2048xf32>, vector<8x2048xf32>, vector<8x2048xf32>, vector<8x2048xf32>, vector<8x2048xf32> -> vector<128x2048xf32>
    %55 = tpu.concatenate %33, %35, %37, %39, %41, %43, %45, %47, %49, %51, %53 in 0 : vector<8x2048xf32>, vector<8x2048xf32>, vector<8x2048xf32>, vector<8x2048xf32>, vector<8x2048xf32>, vector<8x2048xf32>, vector<8x2048xf32>, vector<8x2048xf32>, vector<8x2048xf32>, vector<8x2048xf32>, vector<8x2048xf32> -> vector<88x2048xf32>
    %56 = tpu.concatenate %54, %55 in 0 : vector<128x2048xf32>, vector<88x2048xf32> -> vector<216x2048xf32>
    %c0_54 = arith.constant 0 : index
    %c0_55 = arith.constant 0 : index
    %57 = vector.load %arg4[%c0_54, %c0_55] : memref<216x2048xf32, #tpu.memory_space<vmem>>, vector<216x2048xf32>
    %58 = arith.mulf %56, %57 : vector<216x2048xf32>
    %c0_56 = arith.constant 0 : index
    %c0_57 = arith.constant 0 : index
    %59 = vector.load %arg2[%c0_56, %c0_57] : memref<8x216xf32, #tpu.memory_space<vmem>>, vector<8x216xf32>
    %cst = arith.constant dense<0.000000e+00> : vector<8x2048xf32>
    %60 = tpu.matmul %59, %58, %cst {dimension_numbers = #tpu.dot_dimension_numbers<[1], [0], [0], [1], [0, 0, 1, 1], [], []>} : vector<8x216xf32>, vector<216x2048xf32>, vector<8x2048xf32> -> vector<8x2048xf32>
    %c0_58 = arith.constant 0 : index
    %c0_59 = arith.constant 0 : index
    %61 = vector.load %arg3[%c0_58, %c0_59] : memref<8x1xf32, #tpu.memory_space<vmem>>, vector<8x1xf32>
    %62 = vector.broadcast %61 : vector<8x1xf32> to vector<8x2048xf32>
    %63 = arith.addf %60, %62 : vector<8x2048xf32>
    %c0_60 = arith.constant 0 : index
    %c0_61 = arith.constant 0 : index
    %c0_62 = arith.constant 0 : index
    %64 = vector.load %arg5[%c0_60, %c0_61, %c0_62] : memref<1x8x2048xf32, #tpu.memory_space<vmem>>, vector<1x8x2048xf32>
    %65 = vector.shape_cast %64 : vector<1x8x2048xf32> to vector<8x2048xf32>
    %66 = vector.shape_cast %63 : vector<8x2048xf32> to vector<1x8x2048xf32>
    tpu.vector_store %arg5[%c0_60, %c0_61, %c0_62], %66 {strides = array<i32>} : memref<1x8x2048xf32, #tpu.memory_space<vmem>>, vector<1x8x2048xf32>,
    %cst_63 = arith.constant dense<0.000000e+00> : vector<8xf32>
    %67 = vector.multi_reduction <add>, %60, %cst_63 [1] : vector<8x2048xf32> to vector<8xf32>
    %68 = vector.shape_cast %67 : vector<8xf32> to vector<8x1xf32>
    %c0_64 = arith.constant 0 : index
    %c0_65 = arith.constant 0 : index
    %c0_66 = arith.constant 0 : index
    %69 = vector.load %arg6[%c0_64, %c0_65, %c0_66] : memref<1x8x1xf32, #tpu.memory_space<vmem>>, vector<1x8x1xf32>
    %70 = vector.shape_cast %69 : vector<1x8x1xf32> to vector<8x1xf32>
    %71 = vector.shape_cast %68 : vector<8x1xf32> to vector<1x8x1xf32>
    tpu.vector_store %arg6[%c0_64, %c0_65, %c0_66], %71 {strides = array<i32>} : memref<1x8x1xf32, #tpu.memory_space<vmem>>, vector<1x8x1xf32>,
    %72 = arith.mulf %60, %60 : vector<8x2048xf32>
    %cst_67 = arith.constant dense<0.000000e+00> : vector<8xf32>
    %73 = vector.multi_reduction <add>, %72, %cst_67 [1] : vector<8x2048xf32> to vector<8xf32>
    %74 = vector.shape_cast %73 : vector<8xf32> to vector<8x1xf32>
    %c0_68 = arith.constant 0 : index
    %c0_69 = arith.constant 0 : index
    %c0_70 = arith.constant 0 : index
    %75 = vector.load %arg7[%c0_68, %c0_69, %c0_70] : memref<1x8x1xf32, #tpu.memory_space<vmem>>, vector<1x8x1xf32>
    %76 = vector.shape_cast %75 : vector<1x8x1xf32> to vector<8x1xf32>
    %77 = vector.shape_cast %74 : vector<8x1xf32> to vector<1x8x1xf32>
    tpu.vector_store %arg7[%c0_68, %c0_69, %c0_70], %77 {strides = array<i32>} : memref<1x8x1xf32, #tpu.memory_space<vmem>>, vector<1x8x1xf32>,
    return
  }
  func.func @transform_0(%arg0: i32) -> (i32, i32, i32) {
    %c0_i32 = arith.constant 0 : i32
    %c0_i32_0 = arith.constant 0 : i32
    %c0_i32_1 = arith.constant 0 : i32
    return %arg0, %c0_i32, %c0_i32_0 : i32, i32, i32
  }
  func.func @transform_1(%arg0: i32) -> (i32, i32) {
    %c0_i32 = arith.constant 0 : i32
    %c0_i32_0 = arith.constant 0 : i32
    %c0_i32_1 = arith.constant 0 : i32
    return %c0_i32, %c0_i32_0 : i32, i32
  }
  func.func @transform_2(%arg0: i32) -> (i32, i32) {
    %c0_i32 = arith.constant 0 : i32
    %c0_i32_0 = arith.constant 0 : i32
    %c0_i32_1 = arith.constant 0 : i32
    return %c0_i32, %c0_i32_0 : i32, i32
  }
  func.func @transform_3(%arg0: i32) -> (i32, i32) {
    %c0_i32 = arith.constant 0 : i32
    %c0_i32_0 = arith.constant 0 : i32
    %c0_i32_1 = arith.constant 0 : i32
    return %c0_i32, %c0_i32_0 : i32, i32
  }
  func.func @transform_4(%arg0: i32) -> (i32, i32, i32) {
    %c0_i32 = arith.constant 0 : i32
    %c0_i32_0 = arith.constant 0 : i32
    %c0_i32_1 = arith.constant 0 : i32
    return %arg0, %c0_i32, %c0_i32_0 : i32, i32, i32
  }
  func.func @transform_5(%arg0: i32) -> (i32, i32, i32) {
    %c0_i32 = arith.constant 0 : i32
    %c0_i32_0 = arith.constant 0 : i32
    %c0_i32_1 = arith.constant 0 : i32
    return %arg0, %c0_i32, %c0_i32_0 : i32, i32, i32
  }
  func.func @transform_6(%arg0: i32) -> (i32, i32, i32) {
    %c0_i32 = arith.constant 0 : i32
    %c0_i32_0 = arith.constant 0 : i32
    %c0_i32_1 = arith.constant 0 : i32
    return %arg0, %c0_i32, %c0_i32_0 : i32, i32, i32
  }
}

module attributes {stable_mosaic.version = 11 : i64} {
  func.func @h_stats_kernel(%arg0: i32, %arg1: memref<1x8x2048xf32, #tpu.memory_space<vmem>>, %arg2: memref<8x1xf32, #tpu.memory_space<vmem>>, %arg3: memref<8x1xf32, #tpu.memory_space<vmem>>, %arg4: memref<1x8x1xf32, #tpu.memory_space<vmem>>, %arg5: memref<1x8x8xf32, #tpu.memory_space<vmem>>) attributes {dimension_semantics = [#tpu.dimension_semantics<parallel>], iteration_bounds = array<i64: 2>, scalar_prefetch = 0 : i64, scratch_operands = 0 : i64, tpu.core_type = #tpu.core_type<tc>, window_params = [{transform_indices = @transform_0, window_bounds = array<i64: 1, 8, 2048>}, {pipeline_mode = #tpu.pipeline_mode<synchronous>, transform_indices = @transform_1, window_bounds = array<i64: 8, 1>}, {pipeline_mode = #tpu.pipeline_mode<synchronous>, transform_indices = @transform_2, window_bounds = array<i64: 8, 1>}, {transform_indices = @transform_3, window_bounds = array<i64: 1, 8, 1>}, {transform_indices = @transform_4, window_bounds = array<i64: 1, 8, 8>}]} {
    %c0 = arith.constant 0 : index
    %c0_0 = arith.constant 0 : index
    %c0_1 = arith.constant 0 : index
    %0 = vector.load %arg1[%c0, %c0_0, %c0_1] : memref<1x8x2048xf32, #tpu.memory_space<vmem>>, vector<1x8x2048xf32>
    %1 = vector.shape_cast %0 : vector<1x8x2048xf32> to vector<8x2048xf32>
    %c0_2 = arith.constant 0 : index
    %c0_3 = arith.constant 0 : index
    %2 = vector.load %arg2[%c0_2, %c0_3] : memref<8x1xf32, #tpu.memory_space<vmem>>, vector<8x1xf32>
    %3 = vector.broadcast %2 : vector<8x1xf32> to vector<8x2048xf32>
    %4 = arith.mulf %1, %3 : vector<8x2048xf32>
    %c0_4 = arith.constant 0 : index
    %c0_5 = arith.constant 0 : index
    %5 = vector.load %arg3[%c0_4, %c0_5] : memref<8x1xf32, #tpu.memory_space<vmem>>, vector<8x1xf32>
    %6 = vector.broadcast %5 : vector<8x1xf32> to vector<8x2048xf32>
    %7 = arith.addf %4, %6 : vector<8x2048xf32>
    %cst = arith.constant 0.000000e+00 : f32
    %8 = vector.broadcast %cst : f32 to vector<8x2048xf32>
    %9 = arith.maximumf %7, %8 : vector<8x2048xf32>
    %cst_6 = arith.constant dense<0.000000e+00> : vector<8xf32>
    %10 = vector.multi_reduction <add>, %9, %cst_6 [1] : vector<8x2048xf32> to vector<8xf32>
    %11 = vector.shape_cast %10 : vector<8xf32> to vector<8x1xf32>
    %c0_7 = arith.constant 0 : index
    %c0_8 = arith.constant 0 : index
    %c0_9 = arith.constant 0 : index
    %12 = vector.load %arg4[%c0_7, %c0_8, %c0_9] : memref<1x8x1xf32, #tpu.memory_space<vmem>>, vector<1x8x1xf32>
    %13 = vector.shape_cast %12 : vector<1x8x1xf32> to vector<8x1xf32>
    %14 = vector.shape_cast %11 : vector<8x1xf32> to vector<1x8x1xf32>
    tpu.vector_store %arg4[%c0_7, %c0_8, %c0_9], %14 {strides = array<i32>} : memref<1x8x1xf32, #tpu.memory_space<vmem>>, vector<1x8x1xf32>,
    %cst_10 = arith.constant dense<0.000000e+00> : vector<8x8xf32>
    %15 = tpu.matmul %9, %9, %cst_10 {dimension_numbers = #tpu.dot_dimension_numbers<[1], [1], [0], [0], [0, 0, 1, 0], [], []>} : vector<8x2048xf32>, vector<8x2048xf32>, vector<8x8xf32> -> vector<8x8xf32>
    %c0_11 = arith.constant 0 : index
    %c0_12 = arith.constant 0 : index
    %c0_13 = arith.constant 0 : index
    %16 = vector.load %arg5[%c0_11, %c0_12, %c0_13] : memref<1x8x8xf32, #tpu.memory_space<vmem>>, vector<1x8x8xf32>
    %17 = vector.shape_cast %16 : vector<1x8x8xf32> to vector<8x8xf32>
    %18 = vector.shape_cast %15 : vector<8x8xf32> to vector<1x8x8xf32>
    tpu.vector_store %arg5[%c0_11, %c0_12, %c0_13], %18 {strides = array<i32>} : memref<1x8x8xf32, #tpu.memory_space<vmem>>, vector<1x8x8xf32>,
    return
  }
  func.func @transform_0(%arg0: i32) -> (i32, i32, i32) {
    %c0_i32 = arith.constant 0 : i32
    %c0_i32_0 = arith.constant 0 : i32
    %c0_i32_1 = arith.constant 0 : i32
    return %arg0, %c0_i32, %c0_i32_0 : i32, i32, i32
  }
  func.func @transform_1(%arg0: i32) -> (i32, i32) {
    %c0_i32 = arith.constant 0 : i32
    %c0_i32_0 = arith.constant 0 : i32
    %c0_i32_1 = arith.constant 0 : i32
    return %c0_i32, %c0_i32_0 : i32, i32
  }
  func.func @transform_2(%arg0: i32) -> (i32, i32) {
    %c0_i32 = arith.constant 0 : i32
    %c0_i32_0 = arith.constant 0 : i32
    %c0_i32_1 = arith.constant 0 : i32
    return %c0_i32, %c0_i32_0 : i32, i32
  }
  func.func @transform_3(%arg0: i32) -> (i32, i32, i32) {
    %c0_i32 = arith.constant 0 : i32
    %c0_i32_0 = arith.constant 0 : i32
    %c0_i32_1 = arith.constant 0 : i32
    return %arg0, %c0_i32, %c0_i32_0 : i32, i32, i32
  }
  func.func @transform_4(%arg0: i32) -> (i32, i32, i32) {
    %c0_i32 = arith.constant 0 : i32
    %c0_i32_0 = arith.constant 0 : i32
    %c0_i32_1 = arith.constant 0 : i32
    return %arg0, %c0_i32, %c0_i32_0 : i32, i32, i32
  }
}

module attributes {stable_mosaic.version = 11 : i64} {
  func.func @fused_out_kernel(%arg0: i32, %arg1: memref<1x8x2048xf32, #tpu.memory_space<vmem>>, %arg2: memref<8x1xf32, #tpu.memory_space<vmem>>, %arg3: memref<8x1xf32, #tpu.memory_space<vmem>>, %arg4: memref<8x8xf32, #tpu.memory_space<vmem>>, %arg5: memref<8x1xf32, #tpu.memory_space<vmem>>, %arg6: memref<1x8x2048xf32, #tpu.memory_space<vmem>>) attributes {dimension_semantics = [#tpu.dimension_semantics<parallel>], iteration_bounds = array<i64: 2>, scalar_prefetch = 0 : i64, scratch_operands = 0 : i64, tpu.core_type = #tpu.core_type<tc>, window_params = [{transform_indices = @transform_0, window_bounds = array<i64: 1, 8, 2048>}, {pipeline_mode = #tpu.pipeline_mode<synchronous>, transform_indices = @transform_1, window_bounds = array<i64: 8, 1>}, {pipeline_mode = #tpu.pipeline_mode<synchronous>, transform_indices = @transform_2, window_bounds = array<i64: 8, 1>}, {pipeline_mode = #tpu.pipeline_mode<synchronous>, transform_indices = @transform_3, window_bounds = array<i64: 8, 8>}, {pipeline_mode = #tpu.pipeline_mode<synchronous>, transform_indices = @transform_4, window_bounds = array<i64: 8, 1>}, {transform_indices = @transform_5, window_bounds = array<i64: 1, 8, 2048>}]} {
    %c0 = arith.constant 0 : index
    %c0_0 = arith.constant 0 : index
    %c0_1 = arith.constant 0 : index
    %0 = vector.load %arg1[%c0, %c0_0, %c0_1] : memref<1x8x2048xf32, #tpu.memory_space<vmem>>, vector<1x8x2048xf32>
    %1 = vector.shape_cast %0 : vector<1x8x2048xf32> to vector<8x2048xf32>
    %c0_2 = arith.constant 0 : index
    %c0_3 = arith.constant 0 : index
    %2 = vector.load %arg2[%c0_2, %c0_3] : memref<8x1xf32, #tpu.memory_space<vmem>>, vector<8x1xf32>
    %3 = vector.broadcast %2 : vector<8x1xf32> to vector<8x2048xf32>
    %4 = arith.mulf %1, %3 : vector<8x2048xf32>
    %c0_4 = arith.constant 0 : index
    %c0_5 = arith.constant 0 : index
    %5 = vector.load %arg3[%c0_4, %c0_5] : memref<8x1xf32, #tpu.memory_space<vmem>>, vector<8x1xf32>
    %6 = vector.broadcast %5 : vector<8x1xf32> to vector<8x2048xf32>
    %7 = arith.addf %4, %6 : vector<8x2048xf32>
    %cst = arith.constant 0.000000e+00 : f32
    %8 = vector.broadcast %cst : f32 to vector<8x2048xf32>
    %9 = arith.maximumf %7, %8 : vector<8x2048xf32>
    %c0_6 = arith.constant 0 : index
    %c0_7 = arith.constant 0 : index
    %10 = vector.load %arg4[%c0_6, %c0_7] : memref<8x8xf32, #tpu.memory_space<vmem>>, vector<8x8xf32>
    %cst_8 = arith.constant dense<0.000000e+00> : vector<8x2048xf32>
    %11 = tpu.matmul %10, %9, %cst_8 {dimension_numbers = #tpu.dot_dimension_numbers<[1], [0], [0], [1], [0, 0, 1, 1], [], []>} : vector<8x8xf32>, vector<8x2048xf32>, vector<8x2048xf32> -> vector<8x2048xf32>
    %c0_9 = arith.constant 0 : index
    %c0_10 = arith.constant 0 : index
    %12 = vector.load %arg5[%c0_9, %c0_10] : memref<8x1xf32, #tpu.memory_space<vmem>>, vector<8x1xf32>
    %13 = vector.broadcast %12 : vector<8x1xf32> to vector<8x2048xf32>
    %14 = arith.addf %11, %13 : vector<8x2048xf32>
    %cst_11 = arith.constant 0.000000e+00 : f32
    %15 = vector.broadcast %cst_11 : f32 to vector<8x2048xf32>
    %16 = arith.maximumf %14, %15 : vector<8x2048xf32>
    %c0_12 = arith.constant 0 : index
    %c0_13 = arith.constant 0 : index
    %c0_14 = arith.constant 0 : index
    %17 = vector.load %arg6[%c0_12, %c0_13, %c0_14] : memref<1x8x2048xf32, #tpu.memory_space<vmem>>, vector<1x8x2048xf32>
    %18 = vector.shape_cast %17 : vector<1x8x2048xf32> to vector<8x2048xf32>
    %19 = vector.shape_cast %16 : vector<8x2048xf32> to vector<1x8x2048xf32>
    tpu.vector_store %arg6[%c0_12, %c0_13, %c0_14], %19 {strides = array<i32>} : memref<1x8x2048xf32, #tpu.memory_space<vmem>>, vector<1x8x2048xf32>,
    return
  }
  func.func @transform_0(%arg0: i32) -> (i32, i32, i32) {
    %c0_i32 = arith.constant 0 : i32
    %c0_i32_0 = arith.constant 0 : i32
    %c0_i32_1 = arith.constant 0 : i32
    return %arg0, %c0_i32, %c0_i32_0 : i32, i32, i32
  }
  func.func @transform_1(%arg0: i32) -> (i32, i32) {
    %c0_i32 = arith.constant 0 : i32
    %c0_i32_0 = arith.constant 0 : i32
    %c0_i32_1 = arith.constant 0 : i32
    return %c0_i32, %c0_i32_0 : i32, i32
  }
  func.func @transform_2(%arg0: i32) -> (i32, i32) {
    %c0_i32 = arith.constant 0 : i32
    %c0_i32_0 = arith.constant 0 : i32
    %c0_i32_1 = arith.constant 0 : i32
    return %c0_i32, %c0_i32_0 : i32, i32
  }
  func.func @transform_3(%arg0: i32) -> (i32, i32) {
    %c0_i32 = arith.constant 0 : i32
    %c0_i32_0 = arith.constant 0 : i32
    %c0_i32_1 = arith.constant 0 : i32
    return %c0_i32, %c0_i32_0 : i32, i32
  }
  func.func @transform_4(%arg0: i32) -> (i32, i32) {
    %c0_i32 = arith.constant 0 : i32
    %c0_i32_0 = arith.constant 0 : i32
    %c0_i32_1 = arith.constant 0 : i32
    return %c0_i32, %c0_i32_0 : i32, i32
  }
  func.func @transform_5(%arg0: i32) -> (i32, i32, i32) {
    %c0_i32 = arith.constant 0 : i32
    %c0_i32_0 = arith.constant 0 : i32
    %c0_i32_1 = arith.constant 0 : i32
    return %arg0, %c0_i32, %c0_i32_0 : i32, i32, i32
  }
}

</mosaic_0001>

<bundles_post_ra>
// kernel: encoder_conv_forward.4
= control target key start
LH: loop header
LB: loop body
LE: loop exit
PB: predicated region body
PF: predicated region fallthrough
CT: control target
= control target key end

     0   :  { %s1017_s15 = smov 0   ;;  %s1106_s0 = inlined_call_operand.vmem [shape: f32[2,8,2048], index: 0, kind: input, shape index: {}]   ;;  %s1107_s1 = inlined_call_operand.vmem [shape: f32[8,1], index: 1, kind: input, shape index: {}]   ;;  %s1108_s2 = inlined_call_operand.vmem [shape: f32[8,1], index: 2, kind: input, shape index: {}]   ;;  %s1109_s3 = inlined_call_operand.vmem [shape: f32[2,8,1], index: 3, kind: output, shape index: {0}]   ;;  %s1110_s4 = inlined_call_operand.vmem [shape: f32[2,8,8], index: 4, kind: output, shape index: {1}]  }
   0x1 LB: > { %s948_s16 = sadd.s32 4294967295, %s989_s15   ;;  %p952_p0 = scmp.ge.s32.totalorder %s989_s15, 1  ;;  %s989_s15 = sphi %s1017_s15, %s15_s15  }
   0x2   : > { %p165_p1 = scmp.lt.s32.totalorder %s989_s15, 3 }
   0x4   : > { %p166_p2 = pnand %p952_p0, %p165_p1 }
   0x5   : > { %v223_v0 = vld [vmem:[%s1107_s1] sm:$0xff] (!%p166_p2)  ;;  %v991_v1 = vmov (!%p166_p2), 0   ;;  %p194_p3 = scmp.lt.s32.totalorder (!%p166_p2), %s948_s16, 1  ;;  %vm300_vm0 = vcmask (!%p166_p2), 7168   ;;  %vm862_vm1 = vcmask (!%p166_p2), 64512  }
   0x6   : > { %169 = sbr.rel (%p166_p2) target bundleno = 387 (0x183), region = 32  ;;  %982 = vset.pattern.permute.xlu0 (!%p166_p2), %v991_v1  ;;  %v245_v2 = vld [vmem:[%s1108_s2] sm:$0xff] (!%p166_p2) }
   0x7   : > { %226 = vperm.xlu0 (!%p166_p2), %982, %v223_v0  }
   0xb   : > { %248 = vperm.xlu0 (!%p166_p2), %982, %v245_v2  }
   0xd   : > { %s1112_s16 = smov (!%p194_p3, %s948_s16), 1 }
   0xe   : > { %s959_s21 = sshll.u32 %s1112_s16, 7  ;;  %s955_s25 = sshll.u32 %s1112_s16, 3 }
   0xf   : > { %s1037_s24 = scalar_lea.vmem %s1106_s0, %s959_s21  ;;  %s202_s28 = scalar_lea.vmem %s1109_s3, %s955_s25 }
  0x10   : > { %v208_v3 = vld [vmem:[%s1037_s24 + $0x8] sm:$0xff]  ;;  %v207_v6 = vld [vmem:[%s1037_s24] sm:$0xff]  ;;  %v210_v8 = vld [vmem:[%s1037_s24 + $0x18] sm:$0xff]  ;;  %s206_s5 = scalar_lea.vmem %s1110_s4, %s955_s25 }
  0x11   : > { %v216_v5 = vld [vmem:[%s1037_s24 + $0x48] sm:$0xff]  ;;  %v215_v7 = vld [vmem:[%s1037_s24 + $0x40] sm:$0xff]  ;;  %v218_v9 = vld [vmem:[%s1037_s24 + $0x58] sm:$0xff] }
  0x12   : > { %v209_v10 = vld [vmem:[%s1037_s24 + $0x10] sm:$0xff]  ;;  %v212_v24 = vld [vmem:[%s1037_s24 + $0x28] sm:$0xff]  ;;  %v211_v25 = vld [vmem:[%s1037_s24 + $0x20] sm:$0xff] }
  0x13   : > { %v217_v23 = vld [vmem:[%s1037_s24 + $0x50] sm:$0xff]  ;;  %v220_v29 = vld [vmem:[%s1037_s24 + $0x68] sm:$0xff]  ;;  %v214_v46 = vld [vmem:[%s1037_s24 + $0x38] sm:$0xff] }
  0x14   : > { %v213_v30 = vld [vmem:[%s1037_s24 + $0x30] sm:$0xff]  ;;  %v219_v50 = vld [vmem:[%s1037_s24 + $0x60] sm:$0xff]  ;;  %v222_v57 = vld [vmem:[%s1037_s24 + $0x78] sm:$0xff] }
  0x86   : > { %v1040_v4 = vpop.permute.xlu0 %226 }
  0x87   : > { %v230_v11 = vmul.f32 %v1040_v4, %v208_v3  ;;  %v238_v12 = vmul.f32 %v1040_v4, %v216_v5  ;;  %v229_v13 = vmul.f32 %v1040_v4, %v207_v6  ;;  %v237_v14 = vmul.f32 %v1040_v4, %v215_v7  ;;  %v221_v6 = vld [vmem:[%s1037_s24 + $0x70] sm:$0xff] }
  0x88   : > { %v232_v16 = vmul.f32 %v1040_v4, %v210_v8  ;;  %v240_v17 = vmul.f32 %v1040_v4, %v218_v9  ;;  %v231_v18 = vmul.f32 %v1040_v4, %v209_v10  ;;  %v239_v35 = vmul.f32 %v1040_v4, %v217_v23 }
  0x89   : > { %v234_v36 = vmul.f32 %v1040_v4, %v212_v24  ;;  %v233_v37 = vmul.f32 %v1040_v4, %v211_v25  ;;  %v242_v40 = vmul.f32 %v1040_v4, %v220_v29  ;;  %v235_v41 = vmul.f32 %v1040_v4, %v213_v30 }
  0x8a   : > { %v1052_v15 = vpop.permute.xlu0 %248  ;;  %v236_v53 = vmul.f32 %v1040_v4, %v214_v46  ;;  %v241_v56 = vmul.f32 %v1040_v4, %v219_v50  ;;  %v244_v0 = vmul.f32 %v1040_v4, %v222_v57  ;;  %v243_v10 = vmul.f32 %v1040_v4, %v221_v6 }
  0x8b   : > { %v252_v19 = vadd.f32 %v1052_v15, %v230_v11  ;;  %v260_v20 = vadd.f32 %v1052_v15, %v238_v12  ;;  %v251_v21 = vadd.f32 %v1052_v15, %v229_v13  ;;  %v259_v22 = vadd.f32 %v1052_v15, %v237_v14 }
  0x8c   : > { %v254_v26 = vadd.f32 %v1052_v15, %v232_v16  ;;  %v262_v27 = vadd.f32 %v1052_v15, %v240_v17  ;;  %v253_v28 = vadd.f32 %v1052_v15, %v231_v18  ;;  %v261_v44 = vadd.f32 %v1052_v15, %v239_v35 }
  0x8d   : > { %v268_v31 = vmax.f32 %v252_v19, 0.0  ;;  %v1069_v32 = vmax.f32 %v260_v20, 0.0  ;;  %v267_v33 = vmax.f32 %v251_v21, 0.0  ;;  %v275_v34 = vmax.f32 %v259_v22, 0.0 }
  0x8e   : > { %v269_v39 = vmax.f32 %v253_v28, 0.0  ;;  %v270_v42 = vmax.f32 %v254_v26, 0.0  ;;  %v278_v43 = vmax.f32 %v262_v27, 0.0  ;;  %v255_v45 = vadd.f32 %v1052_v15, %v233_v37 }
  0x8f   : > { %302 = vmatprep.subr.mxu1 %v268_v31  ;;  %366 = vmatprep.mubr.f32.mxu1 %v268_v31  ;;  %v283_v38 = vadd.f32 %v268_v31, %v267_v33  ;;  %v256_v48 = vadd.f32 %v1052_v15, %v234_v36  ;;  %v264_v49 = vadd.f32 %v1052_v15, %v242_v40  ;;  %v277_v55 = vmax.f32 %v261_v44, 0.0 }
  0x90   : > { %582 = vmatprep.subr.mxu0 %v1069_v32  ;;  %646 = vmatprep.mubr.f32.mxu0 %v1069_v32  ;;  %v271_v52 = vmax.f32 %v255_v45, 0.0  ;;  %v257_v54 = vadd.f32 %v1052_v15, %v235_v41  ;;  %v258_v61 = vadd.f32 %v1052_v15, %v236_v53  ;;  %v263_v63 = vadd.f32 %v1052_v15, %v241_v56 }
  0x91   : > { %303 = vmatpush1.xpose.msra.mxu1 %v267_v33  ;;  %583 = vmatpush1.xpose.msra.mxu0 %v275_v34  ;;  %v284_v47 = vadd.f32 %v283_v38, %v269_v39  ;;  %v272_v58 = vmax.f32 %v256_v48, 0.0  ;;  %v280_v59 = vmax.f32 %v264_v49, 0.0  ;;  %v266_v3 = vadd.f32 %v1052_v15, %v244_v0 }
  0x92   : > { %372 = vmatprep.subr.mxu1 %v270_v42  ;;  %652 = vmatprep.subr.mxu0 %v278_v43  ;;  %v273_v1 = vmax.f32 %v257_v54, 0.0  ;;  %v274_v2 = vmax.f32 %v258_v61, 0.0  ;;  %v279_v7 = vmax.f32 %v263_v63, 0.0  ;;  %v265_v12 = vadd.f32 %v1052_v15, %v243_v10 }
  0x93   : > { %v285_v51 = vadd.f32 %v284_v47, %v270_v42  ;;  %v282_v9 = vmax.f32 %v266_v3, 0.0 }
  0x94   : > { %367 = vmatmul.mubr.f32.vlgmr.msra.gmra.mrb[0].mxu1 %v267_v33  ;;  %647 = vmatmul.mubr.f32.vlgmr.msra.gmra.mrb[0].mxu0 %v275_v34  ;;  %v281_v16 = vmax.f32 %v265_v12, 0.0 }
  0x95   : > { %373 = vmatpush1.xpose.msra.mxu1 %v269_v39  ;;  %436 = vmatprep.mubr.f32.mxu1 %v270_v42  ;;  %v286_v60 = vadd.f32 %v285_v51, %v271_v52 }
  0x96   : > { %653 = vmatpush1.xpose.msra.mxu0 %v277_v55  ;;  %716 = vmatprep.mubr.f32.mxu0 %v278_v43 }
  0x97   : > { %442 = vmatprep.subr.mxu1 %v272_v58  ;;  %722 = vmatprep.subr.mxu0 %v280_v59  ;;  %v287_v62 = vadd.f32 %v286_v60, %v272_v58 }
  0x99   : > { %v288_v5 = vadd.f32 %v287_v62, %v273_v1 }
  0x9b   : > { %v289_v8 = vadd.f32 %v288_v5, %v274_v2 }
  0x9c   : > { %437 = vmatmul.mubr.f32.vlgmr.msra.gmra.mrb[0].mxu1 %v269_v39  ;;  %717 = vmatmul.mubr.f32.vlgmr.msra.gmra.mrb[0].mxu0 %v277_v55 }
  0x9d   : > { %443 = vmatpush1.xpose.msra.mxu1 %v271_v52  ;;  %723 = vmatpush1.xpose.msra.mxu0 %v279_v7  ;;  %v290_v11 = vadd.f32 %v289_v8, %v275_v34 }
  0x9e   : > { %506 = vmatprep.mubr.f32.mxu1 %v272_v58  ;;  %512 = vmatprep.subr.mxu1 %v274_v2 }
  0x9f   : > { %786 = vmatprep.mubr.f32.mxu0 %v280_v59  ;;  %792 = vmatprep.subr.mxu0 %v282_v9  ;;  %v291_v13 = vadd.f32 %v290_v11, %v1069_v32 }
  0xa1   : > { %v292_v14 = vadd.f32 %v291_v13, %v277_v55 }
  0xa3   : > { %v293_v17 = vadd.f32 %v292_v14, %v278_v43 }
  0xa4   : > { %507 = vmatmul.mubr.f32.vlgmr.msra.gmra.mrb[0].mxu1 %v271_v52  ;;  %787 = vmatmul.mubr.f32.vlgmr.msra.gmra.mrb[0].mxu0 %v279_v7 }
  0xa5   : > { %513 = vmatpush1.xpose.msra.mxu1 %v273_v1  ;;  %793 = vmatpush1.xpose.msra.mxu0 %v281_v16  ;;  %v294_v18 = vadd.f32 %v293_v17, %v279_v7 }
  0xa6   : > { %576 = vmatprep.mubr.f32.mxu1 %v274_v2  ;;  %856 = vmatprep.mubr.f32.mxu0 %v282_v9 }
  0xa7   : > { %v295_v4 = vadd.f32 %v294_v18, %v280_v59 }
  0xa9   : > { %v296_v19 = vadd.f32 %v295_v4, %v281_v16 }
  0xab   : > { %v297_v20 = vadd.f32 %v296_v19, %v282_v9 }
  0xac   : > { %577 = vmatmul.mubr.f32.vlgmr.msra.gmra.mrb[0].mxu1 %v273_v1  ;;  %857 = vmatmul.mubr.f32.vlgmr.msra.gmra.mrb[0].mxu0 %v281_v16 }
  0xad   : > { %298 = vadd.xlane.f32.xlu1 %v297_v20 }
 0x13a   : > { %v299_v15 = vpop.xlane.xlu1 %298 }
 0x13b   : > { %301 = vst.msk [vmem:[%s202_s28] sm:$0xff] %vm300_vm0, %v299_v15 }
 0x17f   : > { %v578_v21 = vpop.f32.mrb[0].mxu1  ;;  %v858_v22 = vpop.f32.mrb[0].mxu0 }
 0x180   : > { %v960_v23 = vadd.f32 %v858_v22, %v578_v21  ;;  %v580_v24 = vpop.f32.mrb[1].mxu1  ;;  %v860_v25 = vpop.f32.mrb[1].mxu0 }
 0x182   : > { %863 = vst.msk [vmem:[%s206_s5] sm:$0xff] %vm862_vm1, %v960_v23 }
 0x183 PF: > { %s15_s15 = sadd.s32 1, %s989_s15  }
 0x184   : > { %p12_p4 = scmp.ge.s32.totalorder %s15_s15, 4  }
 0x186   :  { %14 = sbr.rel (!%p12_p4) target bundleno = 1 (0x1), region = 74 }

// kernel: encoder_conv_forward.3
= control target key start
LH: loop header
LB: loop body
LE: loop exit
PB: predicated region body
PF: predicated region fallthrough
CT: control target
= control target key end

     0   :  { %s4205_s21 = smov 0   ;;  %s8784_s0 = inlined_call_operand.vmem [shape: f32[2,8,2688], index: 0, kind: input, shape index: {}]   ;;  %s8785_s1 = inlined_call_operand.vmem [shape: f32[8,216], index: 1, kind: input, shape index: {}]   ;;  %s8786_s2 = inlined_call_operand.vmem [shape: f32[8,1], index: 2, kind: input, shape index: {}]   ;;  %s8787_s3 = inlined_call_operand.vmem [shape: f32[216,2048], index: 3, kind: input, shape index: {}]   ;;  %s8788_s4 = inlined_call_operand.vmem [shape: f32[2,8,2048], index: 4, kind: output, shape index: {0}]   ;;  %s8789_s5 = inlined_call_operand.vmem [shape: f32[2,8,1], index: 5, kind: output, shape index: {1}]   ;;  %s8790_s6 = inlined_call_operand.vmem [shape: f32[2,8,1], index: 6, kind: output, shape index: {2}]  }
   0x1 LB: > { %s3648_s22 = sadd.s32 4294967295, %s4152_s21   ;;  %p3652_p0 = scmp.ge.s32.totalorder %s4152_s21, 1  ;;  %s4152_s21 = sphi %s4205_s21, %s17_s21  }
   0x2   : > { %p217_p1 = scmp.lt.s32.totalorder %s4152_s21, 3 }
   0x4   : > { %p218_p2 = pnand %p3652_p0, %p217_p1 }
   0x6   : > { %221 = sbr.rel (%p218_p2) target bundleno = 1472 (0x5c0), region = 36 }
   0xd   : > { %p255_p3 = scmp.lt.s32.totalorder %s3648_s22, 1  ;;  %s4154_s27 = smov 127   ;;  %v2004_v19 = vld [vmem:[%s8787_s3 + $0x8] sm:$0xff]  ;;  %v2003_v20 = vld [vmem:[%s8787_s3] sm:$0xff]  ;;  %vm361_vm0 = vcmask 1039360   ;;  %v2006_v31 = vld [vmem:[%s8787_s3 + $0x18] sm:$0xff] }
   0xe   : > { %s4155_s28 = smov 126   ;;  %s4156_s29 = smov 112   ;;  %v2020_v21 = vld [vmem:[%s8787_s3 + $0x88] sm:$0xff]  ;;  %v2019_v22 = vld [vmem:[%s8787_s3 + $0x80] sm:$0xff]  ;;  %v2005_v33 = vld [vmem:[%s8787_s3 + $0x10] sm:$0xff]  ;;  %vm428_vm1 = vcmask 1031168  }
   0xf   : > { %s9411_s22 = smov (!%p255_p3, %s3648_s22), 1  ;;  %s4157_s30 = smov 111   ;;  %v2021_v34 = vld [vmem:[%s8787_s3 + $0x90] sm:$0xff]  ;;  %v2022_v39 = vld [vmem:[%s8787_s3 + $0x98] sm:$0xff]  ;;  %vm495_vm2 = vcmask 916480   ;;  %vm562_vm3 = vcmask 908288  }
  0x10   : > { %s4085_s23 = smul.u32 168, %s9411_s22  ;;  %s4158_s25 = smov 110   ;;  %vm629_vm4 = vcmask 900096   ;;  %vm696_vm5 = vcmask 785408   ;;  %vm763_vm6 = vcmask 777216   ;;  %vm830_vm7 = vcmask 769024  }
  0x11   : > { %s4159_s7 = smov 96   ;;  %s4160_s10 = smov 95   ;;  %vm946_vm8 = vcmask 269312   ;;  %vm1013_vm9 = vcmask 261120   ;;  %vm1064_vm10 = vcmask 252928   ;;  %vm1115_vm11 = vcmask 138240  }
  0x12   : > { %s4219_s26 = scalar_lea.vmem %s8784_s0, %s4085_s23  ;;  %s4161_s13 = smov 94   ;;  %vm1166_vm12 = vcmask 130048   ;;  %vm1217_vm13 = vcmask 121856   ;;  %vm1268_vm14 = vcmask 7168   ;;  %vm2869_vm15 = vcmask 719872  }
  0x13   : > { %v4222_v0 = vld [vmem:[%s4219_s26 + $0x10] sm:$0xff]  ;;  %v4225_v1 = vld [vmem:[%s4219_s26] sm:$0xff]  ;;  %v4232_v2 = vld [vmem:[%s4219_s26 + $0x18] sm:$0xff]  ;;  %s4164_s8 = smov 31   ;;  %s4167_s11 = smov 15  }
  0x14   : > { %331 = vrot.lane.b32.xlu1 %v4222_v0, %s4154_s27  ;;  %327 = vrot.lane.b32.xlu0 %v4225_v1, %s4154_s27  ;;  %v4235_v3 = vld [vmem:[%s4219_s26 + $0x8] sm:$0xff]  ;;  %v4245_v5 = vld [vmem:[%s4219_s26 + $0x20] sm:$0xff]  ;;  %v2435_v26 = vmul.f32 %v2003_v20, %v4225_v1  ;;  %v2438_v41 = vmul.f32 %v2006_v31, %v4232_v2  ;;  %v2437_v42 = vmul.f32 %v2005_v33, %v4222_v0 }
  0x15   : > { %v4242_v4 = vld [vmem:[%s4219_s26 + $0x28] sm:$0xff]  ;;  %v4252_v6 = vld [vmem:[%s4219_s26 + $0x38] sm:$0xff]  ;;  %v4255_v7 = vld [vmem:[%s4219_s26 + $0x30] sm:$0xff]  ;;  %v2436_v25 = vmul.f32 %v2004_v19, %v4235_v3 }
  0x16   : > { %v4262_v8 = vld [vmem:[%s4219_s26 + $0x48] sm:$0xff]  ;;  %v4265_v9 = vld [vmem:[%s4219_s26 + $0x40] sm:$0xff]  ;;  %v4272_v10 = vld [vmem:[%s4219_s26 + $0x58] sm:$0xff] }
  0x17   : > { %v4275_v11 = vld [vmem:[%s4219_s26 + $0x50] sm:$0xff]  ;;  %v4282_v12 = vld [vmem:[%s4219_s26 + $0x68] sm:$0xff]  ;;  %v4285_v13 = vld [vmem:[%s4219_s26 + $0x60] sm:$0xff] }
  0x18   : > { %333 = vrot.lane.b32.xlu1 %v4232_v2, %s4154_s27  ;;  %329 = vrot.lane.b32.xlu0 %v4235_v3, %s4154_s27  ;;  %v4292_v14 = vld [vmem:[%s4219_s26 + $0x78] sm:$0xff]  ;;  %v4295_v15 = vld [vmem:[%s4219_s26 + $0x70] sm:$0xff] }
  0x19   : > { %v4302_v16 = vld [vmem:[%s4219_s26 + $0x80] sm:$0xff] }
  0x1a   : > { %v2051_v33 = vld [vmem:[%s8787_s3 + $0x180] sm:$0xff] }
  0x1c   : > { %337 = vrot.lane.b32.xlu1 %v4242_v4, %s4154_s27  ;;  %335 = vrot.lane.b32.xlu0 %v4245_v5, %s4154_s27 }
  0x20   : > { %341 = vrot.lane.b32.xlu1 %v4252_v6, %s4154_s27  ;;  %339 = vrot.lane.b32.xlu0 %v4255_v7, %s4154_s27 }
  0x24   : > { %345 = vrot.lane.b32.xlu1 %v4262_v8, %s4154_s27  ;;  %343 = vrot.lane.b32.xlu0 %v4265_v9, %s4154_s27 }
  0x28   : > { %349 = vrot.lane.b32.xlu1 %v4272_v10, %s4154_s27  ;;  %347 = vrot.lane.b32.xlu0 %v4275_v11, %s4154_s27 }
  0x2c   : > { %353 = vrot.lane.b32.xlu1 %v4282_v12, %s4154_s27  ;;  %351 = vrot.lane.b32.xlu0 %v4285_v13, %s4154_s27 }
  0x30   : > { %357 = vrot.lane.b32.xlu1 %v4292_v14, %s4154_s27  ;;  %355 = vrot.lane.b32.xlu0 %v4295_v15, %s4154_s27 }
  0x34   : > { %394 = vrot.lane.b32.xlu1 %v4225_v1, %s4155_s28  ;;  %359 = vrot.lane.b32.xlu0 %v4302_v16, %s4154_s27 }
  0x38   : > { %398 = vrot.lane.b32.xlu1 %v4222_v0, %s4155_s28  ;;  %396 = vrot.lane.b32.xlu0 %v4235_v3, %s4155_s28 }
  0x3c   : > { %402 = vrot.lane.b32.xlu1 %v4245_v5, %s4155_s28  ;;  %400 = vrot.lane.b32.xlu0 %v4232_v2, %s4155_s28 }
  0x40   : > { %406 = vrot.lane.b32.xlu1 %v4255_v7, %s4155_s28  ;;  %404 = vrot.lane.b32.xlu0 %v4242_v4, %s4155_s28 }
  0x44   : > { %410 = vrot.lane.b32.xlu1 %v4265_v9, %s4155_s28  ;;  %408 = vrot.lane.b32.xlu0 %v4252_v6, %s4155_s28 }
  0x48   : > { %414 = vrot.lane.b32.xlu1 %v4275_v11, %s4155_s28  ;;  %412 = vrot.lane.b32.xlu0 %v4262_v8, %s4155_s28 }
  0x4c   : > { %418 = vrot.lane.b32.xlu1 %v4285_v13, %s4155_s28  ;;  %416 = vrot.lane.b32.xlu0 %v4272_v10, %s4155_s28 }
  0x50   : > { %422 = vrot.lane.b32.xlu1 %v4295_v15, %s4155_s28  ;;  %420 = vrot.lane.b32.xlu0 %v4282_v12, %s4155_s28 }
  0x54   : > { %426 = vrot.lane.b32.xlu1 %v4302_v16, %s4155_s28  ;;  %424 = vrot.lane.b32.xlu0 %v4292_v14, %s4155_s28 }
  0x58   : > { %463 = vrot.lane.b32.xlu1 %v4235_v3, %s4156_s29  ;;  %461 = vrot.lane.b32.xlu0 %v4225_v1, %s4156_s29 }
  0x5c   : > { %467 = vrot.lane.b32.xlu1 %v4232_v2, %s4156_s29  ;;  %465 = vrot.lane.b32.xlu0 %v4222_v0, %s4156_s29 }
  0x60   : > { %471 = vrot.lane.b32.xlu1 %v4242_v4, %s4156_s29  ;;  %469 = vrot.lane.b32.xlu0 %v4245_v5, %s4156_s29 }
  0x64   : > { %475 = vrot.lane.b32.xlu1 %v4252_v6, %s4156_s29  ;;  %473 = vrot.lane.b32.xlu0 %v4255_v7, %s4156_s29 }
  0x68   : > { %479 = vrot.lane.b32.xlu1 %v4262_v8, %s4156_s29  ;;  %477 = vrot.lane.b32.xlu0 %v4265_v9, %s4156_s29 }
  0x6c   : > { %483 = vrot.lane.b32.xlu1 %v4272_v10, %s4156_s29  ;;  %481 = vrot.lane.b32.xlu0 %v4275_v11, %s4156_s29 }
  0x70   : > { %487 = vrot.lane.b32.xlu1 %v4282_v12, %s4156_s29  ;;  %485 = vrot.lane.b32.xlu0 %v4285_v13, %s4156_s29 }
  0x74   : > { %491 = vrot.lane.b32.xlu1 %v4292_v14, %s4156_s29  ;;  %489 = vrot.lane.b32.xlu0 %v4295_v15, %s4156_s29 }
  0x78   : > { %528 = vrot.lane.b32.xlu1 %v4225_v1, %s4157_s30  ;;  %493 = vrot.lane.b32.xlu0 %v4302_v16, %s4156_s29 }
  0x7c   : > { %532 = vrot.lane.b32.xlu1 %v4222_v0, %s4157_s30  ;;  %530 = vrot.lane.b32.xlu0 %v4235_v3, %s4157_s30 }
  0x80   : > { %536 = vrot.lane.b32.xlu1 %v4245_v5, %s4157_s30  ;;  %534 = vrot.lane.b32.xlu0 %v4232_v2, %s4157_s30 }
  0x84   : > { %540 = vrot.lane.b32.xlu1 %v4255_v7, %s4157_s30  ;;  %538 = vrot.lane.b32.xlu0 %v4242_v4, %s4157_s30 }
  0x86   : > { %v332_v17 = vpop.permute.xlu1 %331  ;;  %v328_v18 = vpop.permute.xlu0 %327 }
  0x88   : > { %544 = vrot.lane.b32.xlu1 %v4265_v9, %s4157_s30  ;;  %542 = vrot.lane.b32.xlu0 %v4252_v6, %s4157_s30 }
  0x8a   : > { %v334_v23 = vpop.permute.xlu1 %333  ;;  %v330_v24 = vpop.permute.xlu0 %329 }
  0x8b   : > { %v362_v27 = vsel %vm361_vm0, %v328_v18, %v330_v24  ;;  %v363_v28 = vsel %vm361_vm0, %v330_v24, %v332_v17  ;;  %v4416_v32 = vsel %vm361_vm0, %v332_v17, %v334_v23 }
  0x8c   : > { %548 = vrot.lane.b32.xlu1 %v4275_v11, %s4157_s30  ;;  %546 = vrot.lane.b32.xlu0 %v4262_v8, %s4157_s30  ;;  %v2452_v29 = vmul.f32 %v2020_v21, %v363_v28  ;;  %v2451_v30 = vmul.f32 %v2019_v22, %v362_v27  ;;  %v2453_v43 = vmul.f32 %v2021_v34, %v4416_v32 }
  0x8e   : > { %v4424_v35 = vpop.permute.xlu1 %337  ;;  %v4426_v36 = vpop.permute.xlu0 %335  ;;  %v3669_v37 = vpack.c.bf16 %v2452_v29, %v2436_v25  ;;  %v3671_v38 = vpack.c.bf16 %v2451_v30, %v2435_v26  ;;  %v3723_v48 = vpack.c.bf16 %v2453_v43, %v2437_v42  ;;  %v2036_v30 = vld [vmem:[%s8787_s3 + $0x108] sm:$0xff] }
  0x8f   : > { %v4433_v40 = vsel %vm361_vm0, %v334_v23, %v4426_v36 }
  0x90   : > { %552 = vrot.lane.b32.xlu1 %v4285_v13, %s4157_s30  ;;  %550 = vrot.lane.b32.xlu0 %v4272_v10, %s4157_s30  ;;  %v2454_v44 = vmul.f32 %v2022_v39, %v4433_v40 }
  0x91   : > { %3670 = vmatprep.subr.bf16.mxu0 %v3669_v37  ;;  %v2052_v37 = vld [vmem:[%s8787_s3 + $0x188] sm:$0xff] }
  0x92   : > { %3672 = vmatpush1.bf16.msra.mxu0 %v3671_v38  ;;  %v4443_v45 = vpop.permute.xlu1 %341  ;;  %v4445_v46 = vpop.permute.xlu0 %339  ;;  %v3721_v47 = vpack.c.bf16 %v2454_v44, %v2438_v41  ;;  %v2035_v41 = vld [vmem:[%s8787_s3 + $0x100] sm:$0xff] }
  0x94   : > { %556 = vrot.lane.b32.xlu1 %v4295_v15, %s4157_s30  ;;  %554 = vrot.lane.b32.xlu0 %v4282_v12, %s4157_s30 }
  0x95   : > { %3722 = vmatprep.subr.bf16.mxu1 %v3721_v47  ;;  %v2038_v47 = vld [vmem:[%s8787_s3 + $0x118] sm:$0xff] }
  0x96   : > { %3724 = vmatpush1.bf16.msra.mxu1 %v3723_v48  ;;  %v4451_v49 = vpop.permute.xlu1 %345  ;;  %v4453_v50 = vpop.permute.xlu0 %343 }
  0x98   : > { %560 = vrot.lane.b32.xlu1 %v4302_v16, %s4157_s30  ;;  %558 = vrot.lane.b32.xlu0 %v4292_v14, %s4157_s30 }
  0x9a   : > { %v4459_v51 = vpop.permute.xlu1 %349  ;;  %v4461_v52 = vpop.permute.xlu0 %347 }
  0x9b   : > { %8984 = vst [vmem:[#allocation2_spill] sm:$0xff] %v4459_v51  ;;  %8985 = vst [vmem:[#allocation3_spill] sm:$0xff] %v4461_v52 }
  0x9c   : > { %597 = vrot.lane.b32.xlu1 %v4235_v3, %s4158_s25  ;;  %595 = vrot.lane.b32.xlu0 %v4225_v1, %s4158_s25 }
  0x9e   : > { %v4467_v53 = vpop.permute.xlu1 %353  ;;  %v4469_v54 = vpop.permute.xlu0 %351 }
  0x9f   : > { %8986 = vst [vmem:[#allocation4_spill] sm:$0xff] %v4467_v53  ;;  %8987 = vst [vmem:[#allocation5_spill] sm:$0xff] %v4469_v54  ;;  %v2067_v53 = vld [vmem:[%s8787_s3 + $0x200] sm:$0xff] }
  0xa0   : > { %601 = vrot.lane.b32.xlu1 %v4232_v2, %s4158_s25  ;;  %599 = vrot.lane.b32.xlu0 %v4222_v0, %s4158_s25 }
  0xa2   : > { %v4475_v55 = vpop.permute.xlu1 %357  ;;  %v4477_v56 = vpop.permute.xlu0 %355 }
  0xa3   : > { %8988 = vst [vmem:[#allocation6_spill] sm:$0xff] %v4475_v55  ;;  %8989 = vst [vmem:[#allocation7_spill] sm:$0xff] %v4477_v56 }
  0xa4   : > { %605 = vrot.lane.b32.xlu1 %v4242_v4, %s4158_s25  ;;  %603 = vrot.lane.b32.xlu0 %v4245_v5, %s4158_s25 }
  0xa6   : > { %v395_v57 = vpop.permute.xlu1 %394  ;;  %v4483_v58 = vpop.permute.xlu0 %359 }
  0xa7   : > { %8990 = vst [vmem:[#allocation8_spill] sm:$0xff] %v4483_v58 }
  0xa8   : > { %609 = vrot.lane.b32.xlu1 %v4252_v6, %s4158_s25  ;;  %607 = vrot.lane.b32.xlu0 %v4255_v7, %s4158_s25 }
  0xaa   : > { %v4489_v59 = vpop.permute.xlu1 %398  ;;  %v397_v60 = vpop.permute.xlu0 %396 }
  0xab   : > { %v430_v31 = vsel %vm428_vm1, %v397_v60, %v4489_v59  ;;  %v429_v42 = vsel %vm428_vm1, %v395_v57, %v397_v60  ;;  %v2053_v60 = vld [vmem:[%s8787_s3 + $0x190] sm:$0xff] }
  0xac   : > { %613 = vrot.lane.b32.xlu1 %v4262_v8, %s4158_s25  ;;  %611 = vrot.lane.b32.xlu0 %v4265_v9, %s4158_s25  ;;  %v2468_v43 = vmul.f32 %v2036_v30, %v430_v31  ;;  %v2055_v30 = vld [vmem:[%s8787_s3 + $0x1a0] sm:$0xff]  ;;  %v2467_v31 = vmul.f32 %v2035_v41, %v429_v42 }
  0xae   : > { %v403_v61 = vpop.permute.xlu1 %402  ;;  %v401_v62 = vpop.permute.xlu0 %400 }
  0xaf   : > { %v4572_v48 = vsel %vm428_vm1, %v401_v62, %v403_v61 }
  0xb0   : > { %617 = vrot.lane.b32.xlu1 %v4272_v10, %s4158_s25  ;;  %615 = vrot.lane.b32.xlu0 %v4275_v11, %s4158_s25  ;;  %v2470_v58 = vmul.f32 %v2038_v47, %v4572_v48  ;;  %v2040_v47 = vld [vmem:[%s8787_s3 + $0x128] sm:$0xff] }
  0xb2   : > { %v4499_v63 = vpop.permute.xlu1 %406  ;;  %v4501_v17 = vpop.permute.xlu0 %404 }
  0xb3   : > { %8991 = vst [vmem:[#allocation9_spill] sm:$0xff] %v4499_v63 }
  0xb4   : > { %621 = vrot.lane.b32.xlu1 %v4282_v12, %s4158_s25  ;;  %619 = vrot.lane.b32.xlu0 %v4285_v13, %s4158_s25 }
  0xb6   : > { %v4507_v18 = vpop.permute.xlu1 %410  ;;  %v4509_v19 = vpop.permute.xlu0 %408 }
  0xb7   : > { %8992 = vst [vmem:[#allocation10_spill] sm:$0xff] %v4507_v18  ;;  %8993 = vst [vmem:[#allocation11_spill] sm:$0xff] %v4509_v19  ;;  %v2071_v19 = vld [vmem:[%s8787_s3 + $0x220] sm:$0xff] }
  0xb8   : > { %625 = vrot.lane.b32.xlu1 %v4292_v14, %s4158_s25  ;;  %623 = vrot.lane.b32.xlu0 %v4295_v15, %s4158_s25 }
  0xba   : > { %v4515_v20 = vpop.permute.xlu1 %414  ;;  %v4517_v21 = vpop.permute.xlu0 %412 }
  0xbb   : > { %8994 = vst [vmem:[#allocation12_spill] sm:$0xff] %v4515_v20 }
  0xbc   : > { %662 = vrot.lane.b32.xlu1 %v4225_v1, %s4159_s7  ;;  %627 = vrot.lane.b32.xlu0 %v4302_v16, %s4158_s25 }
  0xbe   : > { %v4523_v22 = vpop.permute.xlu1 %418  ;;  %v4525_v23 = vpop.permute.xlu0 %416 }
  0xbf   : > { %8995 = vst [vmem:[#allocation13_spill] sm:$0xff] %v4523_v22  ;;  %8996 = vst [vmem:[#allocation14_spill] sm:$0xff] %v4525_v23 }
  0xc0   : > { %666 = vrot.lane.b32.xlu1 %v4222_v0, %s4159_s7  ;;  %664 = vrot.lane.b32.xlu0 %v4235_v3, %s4159_s7 }
  0xc2   : > { %v4531_v24 = vpop.permute.xlu1 %422  ;;  %v4533_v25 = vpop.permute.xlu0 %420 }
  0xc3   : > { %8997 = vst [vmem:[#allocation15_spill] sm:$0xff] %v4531_v24 }
  0xc4   : > { %670 = vrot.lane.b32.xlu1 %v4245_v5, %s4159_s7  ;;  %668 = vrot.lane.b32.xlu0 %v4232_v2, %s4159_s7 }
  0xc6   : > { %v4539_v26 = vpop.permute.xlu1 %426  ;;  %v4541_v27 = vpop.permute.xlu0 %424 }
  0xc7   : > { %8998 = vst [vmem:[#allocation16_spill] sm:$0xff] %v4539_v26  ;;  %8999 = vst [vmem:[#allocation17_spill] sm:$0xff] %v4541_v27  ;;  %v4579_v26 = vsel %vm428_vm1, %v403_v61, %v4501_v17  ;;  %v2054_v61 = vld [vmem:[%s8787_s3 + $0x198] sm:$0xff] }
  0xc8   : > { %674 = vrot.lane.b32.xlu1 %v4255_v7, %s4159_s7  ;;  %672 = vrot.lane.b32.xlu0 %v4242_v4, %s4159_s7 }
  0xca   : > { %v464_v28 = vpop.permute.xlu1 %463  ;;  %v462_v29 = vpop.permute.xlu0 %461 }
  0xcb   : > { %v496_v34 = vsel %vm495_vm2, %v462_v29, %v464_v28  ;;  %v2039_v29 = vld [vmem:[%s8787_s3 + $0x120] sm:$0xff] }
  0xcc   : > { %678 = vrot.lane.b32.xlu1 %v4265_v9, %s4159_s7  ;;  %676 = vrot.lane.b32.xlu0 %v4252_v6, %s4159_s7  ;;  %v2483_v27 = vmul.f32 %v2051_v33, %v496_v34  ;;  %v4599_v33 = vsel %vm428_vm1, %v4489_v59, %v401_v62  ;;  %v4606_v23 = vmul.f32 %v2039_v29, %v4579_v26  ;;  %v2056_v29 = vld [vmem:[%s8787_s3 + $0x1a8] sm:$0xff] }
  0xce   : > { %v468_v38 = vpop.permute.xlu1 %467  ;;  %v466_v39 = vpop.permute.xlu0 %465  ;;  %9000 = vst [vmem:[#allocation18_spill] sm:$0xff] %v4606_v23 }
  0xcf   : > { %v497_v44 = vsel %vm495_vm2, %v464_v28, %v466_v39  ;;  %v4587_v28 = vsel %vm495_vm2, %v466_v39, %v468_v38 }
  0xd0   : > { %v2484_v57 = vmul.f32 %v2052_v37, %v497_v44  ;;  %682 = vrot.lane.b32.xlu1 %v4275_v11, %s4159_s7  ;;  %680 = vrot.lane.b32.xlu0 %v4262_v8, %s4159_s7  ;;  %v2037_v44 = vld [vmem:[%s8787_s3 + $0x110] sm:$0xff]  ;;  %v2485_v59 = vmul.f32 %v2053_v60, %v4587_v28 }
  0xd2   : > { %v472_v34 = vpop.permute.xlu1 %471  ;;  %v470_v37 = vpop.permute.xlu0 %469  ;;  %v3673_v39 = vpack.c.bf16 %v2484_v57, %v2468_v43  ;;  %v3675_v43 = vpack.c.bf16 %v2483_v27, %v2467_v31  ;;  %v2469_v57 = vmul.f32 %v2037_v44, %v4599_v33  ;;  %v2043_v44 = vld [vmem:[%s8787_s3 + $0x140] sm:$0xff] }
  0xd3   : > { %v4609_v55 = vsel %vm495_vm2, %v468_v38, %v470_v37  ;;  %v4612_v41 = vsel %vm495_vm2, %v470_v37, %v472_v34  ;;  %v4627_v38 = vsel %vm428_vm1, %v4501_v17, %v4499_v63 }
  0xd4   : > { %v2486_v62 = vmul.f32 %v2054_v61, %v4609_v55  ;;  %v4617_v42 = vmul.f32 %v2055_v30, %v4612_v41  ;;  %686 = vrot.lane.b32.xlu1 %v4285_v13, %s4159_s7  ;;  %684 = vrot.lane.b32.xlu0 %v4272_v10, %s4159_s7  ;;  %v4646_v31 = vmul.f32 %v2040_v47, %v4627_v38 }
  0xd5   : > { %3674 = vmatprep.subr.bf16.mxu0 %v3673_v39  ;;  %v3727_v39 = vpack.c.bf16 %v2485_v59, %v2469_v57 }
  0xd6   : > { %9001 = vst [vmem:[#allocation19_spill] sm:$0xff] %v4617_v42  ;;  %3676 = vmatpush1.bf16.msra.mxu0 %v3675_v43  ;;  %v4637_v60 = vpop.permute.xlu1 %475  ;;  %v4639_v61 = vpop.permute.xlu0 %473  ;;  %v3725_v17 = vpack.c.bf16 %v2486_v62, %v2470_v58  ;;  %9004 = vst [vmem:[#allocation22_spill] sm:$0xff] %v4646_v31  ;;  %v4659_v58 = vsel %vm428_vm1, %v4507_v18, %v4517_v21  ;;  %v2084_v31 = vld [vmem:[%s8787_s3 + $0x288] sm:$0xff] }
  0xd7   : > { %9002 = vst [vmem:[#allocation20_spill] sm:$0xff] %v4637_v60  ;;  %9003 = vst [vmem:[#allocation21_spill] sm:$0xff] %v4639_v61  ;;  %v4643_v30 = vsel %vm495_vm2, %v472_v34, %v4639_v61  ;;  %v2059_v34 = vld [vmem:[%s8787_s3 + $0x1c0] sm:$0xff] }
  0xd8   : > { %v4649_v37 = vmul.f32 %v2056_v29, %v4643_v30  ;;  %690 = vrot.lane.b32.xlu1 %v4295_v15, %s4159_s7  ;;  %9006 = vst [vmem:[#allocation24_spill] sm:$0xff] %v4659_v58  ;;  %688 = vrot.lane.b32.xlu0 %v4282_v12, %s4159_s7  ;;  %v4675_v29 = vmul.f32 %v2043_v44, %v4659_v58  ;;  %v2060_v44 = vld [vmem:[%s8787_s3 + $0x1c8] sm:$0xff] }
  0xd9   : > { %3726 = vmatprep.subr.bf16.mxu1 %v3725_v17  ;;  %v2044_v17 = vld [vmem:[%s8787_s3 + $0x148] sm:$0xff] }
  0xda   : > { %9005 = vst [vmem:[#allocation23_spill] sm:$0xff] %v4649_v37  ;;  %3728 = vmatpush1.bf16.msra.mxu1 %v3727_v39  ;;  %v480_v62 = vpop.permute.xlu1 %479  ;;  %v4666_v59 = vpop.permute.xlu0 %477  ;;  %9009 = vst [vmem:[#allocation27_spill] sm:$0xff] %v4675_v29  ;;  %v4688_v39 = vsel %vm428_vm1, %v4517_v21, %v4515_v20  ;;  %v4719_v29 = vsel %vm428_vm1, %v4523_v22, %v4533_v25 }
  0xdb   : > { %9007 = vst [vmem:[#allocation25_spill] sm:$0xff] %v4666_v59  ;;  %v4672_v47 = vsel %vm495_vm2, %v4666_v59, %v480_v62  ;;  %9011 = vst [vmem:[#allocation29_spill] sm:$0xff] %v4688_v39  ;;  %v4706_v21 = vmul.f32 %v2044_v17, %v4688_v39 }
  0xdc   : > { %9008 = vst [vmem:[#allocation26_spill] sm:$0xff] %v4672_v47  ;;  %v4678_v57 = vmul.f32 %v2059_v34, %v4672_v47  ;;  %694 = vrot.lane.b32.xlu1 %v4302_v16, %s4159_s7  ;;  %692 = vrot.lane.b32.xlu0 %v4292_v14, %s4159_s7  ;;  %v2047_v34 = vld [vmem:[%s8787_s3 + $0x160] sm:$0xff]  ;;  %9017 = vst [vmem:[#allocation35_spill] sm:$0xff] %v4719_v29 }
  0xdd   : > { %9015 = vst [vmem:[#allocation33_spill] sm:$0xff] %v4706_v21 }
  0xde   : > { %9010 = vst [vmem:[#allocation28_spill] sm:$0xff] %v4678_v57  ;;  %v4697_v27 = vpop.permute.xlu1 %483  ;;  %v4699_v43 = vpop.permute.xlu0 %481  ;;  %v4748_v57 = vsel %vm428_vm1, %v4533_v25, %v4531_v24 }
  0xdf   : > { %9012 = vst [vmem:[#allocation30_spill] sm:$0xff] %v4697_v27  ;;  %9013 = vst [vmem:[#allocation31_spill] sm:$0xff] %v4699_v43  ;;  %v4703_v56 = vsel %vm495_vm2, %v480_v62, %v4699_v43  ;;  %v2063_v62 = vld [vmem:[%s8787_s3 + $0x1e0] sm:$0xff]  ;;  %v4735_v27 = vmul.f32 %v2047_v34, %v4719_v29  ;;  %v2064_v34 = vld [vmem:[%s8787_s3 + $0x1e8] sm:$0xff] }
  0xe0   : > { %9014 = vst [vmem:[#allocation32_spill] sm:$0xff] %v4703_v56  ;;  %v4709_v20 = vmul.f32 %v2060_v44, %v4703_v56  ;;  %731 = vrot.lane.b32.xlu1 %v4235_v3, %s4160_s10  ;;  %729 = vrot.lane.b32.xlu0 %v4225_v1, %s4160_s10  ;;  %v2048_v56 = vld [vmem:[%s8787_s3 + $0x168] sm:$0xff]  ;;  %9022 = vst [vmem:[#allocation40_spill] sm:$0xff] %v4748_v57 }
  0xe1   : > { %9020 = vst [vmem:[#allocation38_spill] sm:$0xff] %v4735_v27  ;;  %v4766_v25 = vmul.f32 %v2048_v56, %v4748_v57 }
  0xe2   : > { %9016 = vst [vmem:[#allocation34_spill] sm:$0xff] %v4709_v20  ;;  %v488_v17 = vpop.permute.xlu1 %487  ;;  %v4726_v44 = vpop.permute.xlu0 %485 }
  0xe3   : > { %9018 = vst [vmem:[#allocation36_spill] sm:$0xff] %v4726_v44  ;;  %v4732_v43 = vsel %vm495_vm2, %v4726_v44, %v488_v17  ;;  %9026 = vst [vmem:[#allocation44_spill] sm:$0xff] %v4766_v25  ;;  %v2212_v25 = vld [vmem:[%s8787_s3 + $0x688] sm:$0xff] }
  0xe4   : > { %9019 = vst [vmem:[#allocation37_spill] sm:$0xff] %v4732_v43  ;;  %v4738_v22 = vmul.f32 %v2063_v62, %v4732_v43  ;;  %735 = vrot.lane.b32.xlu1 %v4232_v2, %s4160_s10  ;;  %733 = vrot.lane.b32.xlu0 %v4222_v0, %s4160_s10 }
  0xe6   : > { %9021 = vst [vmem:[#allocation39_spill] sm:$0xff] %v4738_v22  ;;  %v4757_v43 = vpop.permute.xlu1 %491  ;;  %v4759_v29 = vpop.permute.xlu0 %489  ;;  %v2195_v22 = vld [vmem:[%s8787_s3 + $0x600] sm:$0xff] }
  0xe7   : > { %9023 = vst [vmem:[#allocation41_spill] sm:$0xff] %v4757_v43  ;;  %9024 = vst [vmem:[#allocation42_spill] sm:$0xff] %v4759_v29  ;;  %v4763_v21 = vsel %vm495_vm2, %v488_v17, %v4759_v29  ;;  %v2211_v17 = vld [vmem:[%s8787_s3 + $0x680] sm:$0xff]  ;;  %v4808_v57 = vmul.f32 %v2195_v22, %v4587_v28 }
  0xe8   : > { %9025 = vst [vmem:[#allocation43_spill] sm:$0xff] %v4763_v21  ;;  %v4769_v24 = vmul.f32 %v2064_v34, %v4763_v21  ;;  %739 = vrot.lane.b32.xlu1 %v4242_v4, %s4160_s10  ;;  %737 = vrot.lane.b32.xlu0 %v4245_v5, %s4160_s10 }
  0xea   : > { %9027 = vst [vmem:[#allocation45_spill] sm:$0xff] %v4769_v24  ;;  %v4775_v62 = vpop.permute.xlu1 %528  ;;  %v4777_v27 = vpop.permute.xlu0 %493 }
  0xeb   : > { %9028 = vst [vmem:[#allocation46_spill] sm:$0xff] %v4777_v27  ;;  %v2196_v27 = vld [vmem:[%s8787_s3 + $0x608] sm:$0xff] }
  0xec   : > { %743 = vrot.lane.b32.xlu1 %v4252_v6, %s4160_s10  ;;  %741 = vrot.lane.b32.xlu0 %v4255_v7, %s4160_s10  ;;  %v4811_v20 = vmul.f32 %v2196_v27, %v4609_v55 }
  0xee   : > { %v533_v56 = vpop.permute.xlu1 %532  ;;  %v531_v34 = vpop.permute.xlu0 %530 }
  0xf0   : > { %747 = vrot.lane.b32.xlu1 %v4262_v8, %s4160_s10  ;;  %745 = vrot.lane.b32.xlu0 %v4265_v9, %s4160_s10 }
  0xf2   : > { %v537_v24 = vpop.permute.xlu1 %536  ;;  %v535_v29 = vpop.permute.xlu0 %534 }
  0xf3   : > { %v4802_v43 = vsel %vm562_vm3, %v533_v56, %v535_v29  ;;  %v4805_v21 = vsel %vm562_vm3, %v535_v29, %v537_v24 }
  0xf4   : > { %v4814_v44 = vmul.f32 %v2211_v17, %v4802_v43  ;;  %v4817_v47 = vmul.f32 %v2212_v25, %v4805_v21  ;;  %751 = vrot.lane.b32.xlu1 %v4272_v10, %s4160_s10  ;;  %749 = vrot.lane.b32.xlu0 %v4275_v11, %s4160_s10 }
  0xf6   : > { %v4823_v29 = vpop.permute.xlu1 %540  ;;  %v4825_v58 = vpop.permute.xlu0 %538 }
  0xf7   : > { %9029 = vst [vmem:[#allocation47_spill] sm:$0xff] %v4823_v29  ;;  %v4904_v54 = vsel %vm562_vm3, %v537_v24, %v4825_v58  ;;  %v2086_v24 = vld [vmem:[%s8787_s3 + $0x298] sm:$0xff] }
  0xf8   : > { %755 = vrot.lane.b32.xlu1 %v4282_v12, %s4160_s10  ;;  %753 = vrot.lane.b32.xlu0 %v4285_v13, %s4160_s10 }
  0xfa   : > { %v4835_v28 = vpop.permute.xlu1 %544  ;;  %v4837_v27 = vpop.permute.xlu0 %542 }
  0xfb   : > { %9030 = vst [vmem:[#allocation48_spill] sm:$0xff] %v4835_v28  ;;  %9031 = vst [vmem:[#allocation49_spill] sm:$0xff] %v4837_v27 }
  0xfc   : > { %759 = vrot.lane.b32.xlu1 %v4292_v14, %s4160_s10  ;;  %757 = vrot.lane.b32.xlu0 %v4295_v15, %s4160_s10 }
  0xfe   : > { %v4843_v25 = vpop.permute.xlu1 %548  ;;  %v4845_v17 = vpop.permute.xlu0 %546 }
  0xff   : > { %9032 = vst [vmem:[#allocation50_spill] sm:$0xff] %v4843_v25 }
 0x100   : > { %796 = vrot.lane.b32.xlu1 %v4225_v1, %s4161_s13  ;;  %761 = vrot.lane.b32.xlu0 %v4302_v16, %s4160_s10 }
 0x102   : > { %v4851_v22 = vpop.permute.xlu1 %552  ;;  %v4853_v55 = vpop.permute.xlu0 %550 }
 0x103   : > { %9033 = vst [vmem:[#allocation51_spill] sm:$0xff] %v4851_v22  ;;  %9034 = vst [vmem:[#allocation52_spill] sm:$0xff] %v4853_v55 }
 0x104   : > { %800 = vrot.lane.b32.xlu1 %v4222_v0, %s4161_s13  ;;  %798 = vrot.lane.b32.xlu0 %v4235_v3, %s4161_s13 }
 0x106   : > { %v4859_v23 = vpop.permute.xlu1 %556  ;;  %v4861_v42 = vpop.permute.xlu0 %554 }
 0x107   : > { %9035 = vst [vmem:[#allocation53_spill] sm:$0xff] %v4859_v23 }
 0x108   : > { %804 = vrot.lane.b32.xlu1 %v4245_v5, %s4161_s13  ;;  %802 = vrot.lane.b32.xlu0 %v4232_v2, %s4161_s13  ;;  %v2068_v2 = vld [vmem:[%s8787_s3 + $0x208] sm:$0xff] }
 0x10a   : > { %v4867_v1 = vpop.permute.xlu1 %560  ;;  %v4869_v39 = vpop.permute.xlu0 %558 }
 0x10b   : > { %9036 = vst [vmem:[#allocation54_spill] sm:$0xff] %v4867_v1  ;;  %9037 = vst [vmem:[#allocation55_spill] sm:$0xff] %v4869_v39  ;;  %v564_v1 = vsel %vm562_vm3, %v531_v34, %v533_v56  ;;  %v2083_v39 = vld [vmem:[%s8787_s3 + $0x280] sm:$0xff]  ;;  %v563_v56 = vsel %vm562_vm3, %v4775_v62, %v531_v34  ;;  %v2085_v62 = vld [vmem:[%s8787_s3 + $0x290] sm:$0xff] }
 0x10c   : > { %808 = vrot.lane.b32.xlu1 %v4255_v7, %s4161_s13  ;;  %806 = vrot.lane.b32.xlu0 %v4242_v4, %s4161_s13  ;;  %v2500_v63 = vmul.f32 %v2068_v2, %v564_v1  ;;  %v4927_v2 = vmul.f32 %v2071_v19, %v4904_v54  ;;  %v2072_v19 = vld [vmem:[%s8787_s3 + $0x228] sm:$0xff] }
 0x10e   : > { %v598_v0 = vpop.permute.xlu1 %597  ;;  %v596_v3 = vpop.permute.xlu0 %595  ;;  %9038 = vst [vmem:[#allocation56_spill] sm:$0xff] %v4927_v2  ;;  %v2103_v2 = vld [vmem:[%s8787_s3 + $0x320] sm:$0xff] }
 0x10f   : > { %v630_v55 = vsel %vm629_vm4, %v596_v3, %v598_v0  ;;  %v2070_v3 = vld [vmem:[%s8787_s3 + $0x218] sm:$0xff] }
 0x110   : > { %812 = vrot.lane.b32.xlu1 %v4265_v9, %s4161_s13  ;;  %810 = vrot.lane.b32.xlu0 %v4252_v6, %s4161_s13  ;;  %v2515_v59 = vmul.f32 %v2083_v39, %v630_v55 }
 0x112   : > { %v602_v37 = vpop.permute.xlu1 %601  ;;  %v600_v27 = vpop.permute.xlu0 %599 }
 0x113   : > { %v631_v18 = vsel %vm629_vm4, %v598_v0, %v600_v27  ;;  %v4912_v34 = vsel %vm629_vm4, %v600_v27, %v602_v37  ;;  %v2069_v27 = vld [vmem:[%s8787_s3 + $0x210] sm:$0xff]  ;;  %v2502_v0 = vmul.f32 %v2070_v3, %v4805_v21  ;;  %v2088_v21 = vld [vmem:[%s8787_s3 + $0x2a8] sm:$0xff] }
 0x114   : > { %v2516_v61 = vmul.f32 %v2084_v31, %v631_v18  ;;  %816 = vrot.lane.b32.xlu1 %v4275_v11, %s4161_s13  ;;  %814 = vrot.lane.b32.xlu0 %v4262_v8, %s4161_s13  ;;  %v2087_v18 = vld [vmem:[%s8787_s3 + $0x2a0] sm:$0xff]  ;;  %v2499_v31 = vmul.f32 %v2067_v53, %v563_v56  ;;  %v2517_v53 = vmul.f32 %v2085_v62, %v4912_v34 }
 0x115   : > { %v2501_v3 = vmul.f32 %v2069_v27, %v4802_v43  ;;  %v2091_v27 = vld [vmem:[%s8787_s3 + $0x2c0] sm:$0xff] }
 0x116   : > { %v606_v39 = vpop.permute.xlu1 %605  ;;  %v604_v55 = vpop.permute.xlu0 %603  ;;  %v3677_v1 = vpack.c.bf16 %v2516_v61, %v2500_v63  ;;  %v3679_v61 = vpack.c.bf16 %v2515_v59, %v2499_v31  ;;  %v2092_v59 = vld [vmem:[%s8787_s3 + $0x2c8] sm:$0xff] }
 0x117   : > { %v4930_v60 = vsel %vm629_vm4, %v602_v37, %v604_v55  ;;  %v4933_v51 = vsel %vm629_vm4, %v604_v55, %v606_v39  ;;  %v4948_v37 = vsel %vm562_vm3, %v4825_v58, %v4823_v29  ;;  %v3731_v43 = vpack.c.bf16 %v2517_v53, %v2501_v3  ;;  %v5006_v3 = vld [vmem:[%s4219_s26 + $0x90] sm:$0xff]  ;;  %v4113_v29 = vld [vmem:[%s4219_s26 + $0x28] sm:$0xff] }
 0x118   : > { %v2518_v56 = vmul.f32 %v2086_v24, %v4930_v60  ;;  %v4938_v63 = vmul.f32 %v2087_v18, %v4933_v51  ;;  %820 = vrot.lane.b32.xlu1 %v4285_v13, %s4161_s13  ;;  %818 = vrot.lane.b32.xlu0 %v4272_v10, %s4161_s13  ;;  %v4967_v31 = vmul.f32 %v2072_v19, %v4948_v37 }
 0x119   : > { %3678 = vmatprep.subr.bf16.mxu0 %v3677_v1  ;;  %v2075_v1 = vld [vmem:[%s8787_s3 + $0x240] sm:$0xff] }
 0x11a   : > { %9039 = vst [vmem:[#allocation57_spill] sm:$0xff] %v4938_v63  ;;  %3680 = vmatpush1.bf16.msra.mxu0 %v3679_v61  ;;  %v4958_v62 = vpop.permute.xlu1 %609  ;;  %v4960_v24 = vpop.permute.xlu0 %607  ;;  %v3729_v58 = vpack.c.bf16 %v2518_v56, %v2502_v0  ;;  %9042 = vst [vmem:[#allocation60_spill] sm:$0xff] %v4967_v31  ;;  %v5024_v56 = vld [vmem:[%s4219_s26 + $0x88] sm:$0xff] }
 0x11b   : > { %9040 = vst [vmem:[#allocation58_spill] sm:$0xff] %v4958_v62  ;;  %9041 = vst [vmem:[#allocation59_spill] sm:$0xff] %v4960_v24  ;;  %v4964_v18 = vsel %vm629_vm4, %v606_v39, %v4960_v24  ;;  %v4980_v39 = vsel %vm562_vm3, %v4835_v28, %v4845_v17  ;;  %v2166_v28 = vld [vmem:[%s8787_s3 + $0x518] sm:$0xff] }
 0x11c   : > { %v4970_v55 = vmul.f32 %v2088_v21, %v4964_v18  ;;  %824 = vrot.lane.b32.xlu1 %v4295_v15, %s4161_s13  ;;  %9044 = vst [vmem:[#allocation62_spill] sm:$0xff] %v4980_v39  ;;  %822 = vrot.lane.b32.xlu0 %v4282_v12, %s4161_s13  ;;  %v4996_v19 = vmul.f32 %v2075_v1, %v4980_v39 }
 0x11d   : > { %3730 = vmatprep.subr.bf16.mxu1 %v3729_v58  ;;  %v2076_v58 = vld [vmem:[%s8787_s3 + $0x248] sm:$0xff] }
 0x11e   : > { %9043 = vst [vmem:[#allocation61_spill] sm:$0xff] %v4970_v55  ;;  %3732 = vmatpush1.bf16.msra.mxu1 %v3731_v43  ;;  %v614_v0 = vpop.permute.xlu1 %613  ;;  %v4987_v53 = vpop.permute.xlu0 %611  ;;  %9047 = vst [vmem:[#allocation65_spill] sm:$0xff] %v4996_v19  ;;  %v5014_v43 = vsel %vm562_vm3, %v4845_v17, %v4843_v25  ;;  %v2079_v19 = vld [vmem:[%s8787_s3 + $0x260] sm:$0xff] }
 0x11f   : > { %9045 = vst [vmem:[#allocation63_spill] sm:$0xff] %v4987_v53  ;;  %v4993_v61 = vsel %vm629_vm4, %v4987_v53, %v614_v0  ;;  %9049 = vst [vmem:[#allocation67_spill] sm:$0xff] %v5014_v43  ;;  %v5035_v17 = vmul.f32 %v2076_v58, %v5014_v43  ;;  %v2095_v58 = vld [vmem:[%s8787_s3 + $0x2e0] sm:$0xff] }
 0x120   : > { %9046 = vst [vmem:[#allocation64_spill] sm:$0xff] %v4993_v61  ;;  %v4999_v21 = vmul.f32 %v2091_v27, %v4993_v61  ;;  %828 = vrot.lane.b32.xlu1 %v4302_v16, %s4161_s13  ;;  %826 = vrot.lane.b32.xlu0 %v4292_v14, %s4161_s13 }
 0x121   : > { %9053 = vst [vmem:[#allocation71_spill] sm:$0xff] %v5035_v17  ;;  %v5077_v17 = vsel %vm562_vm3, %v4861_v42, %v4859_v23 }
 0x122   : > { %9048 = vst [vmem:[#allocation66_spill] sm:$0xff] %v4999_v21  ;;  %v5018_v27 = vpop.permute.xlu1 %617  ;;  %v5026_v61 = vpop.permute.xlu0 %615  ;;  %9060 = vst [vmem:[#allocation78_spill] sm:$0xff] %v5077_v17 }
 0x123   : > { %9050 = vst [vmem:[#allocation68_spill] sm:$0xff] %v5018_v27  ;;  %9051 = vst [vmem:[#allocation69_spill] sm:$0xff] %v5026_v61  ;;  %v5030_v39 = vsel %vm629_vm4, %v614_v0, %v5026_v61  ;;  %v5048_v0 = vsel %vm562_vm3, %v4851_v22, %v4861_v42 }
 0x124   : > { %9052 = vst [vmem:[#allocation70_spill] sm:$0xff] %v5030_v39  ;;  %867 = vrot.lane.b32.xlu1 %v5006_v3, %s4154_s27  ;;  %v5038_v1 = vmul.f32 %v2092_v59, %v5030_v39  ;;  %865 = vrot.lane.b32.xlu0 %v5024_v56, %s4154_s27  ;;  %9055 = vst [vmem:[#allocation73_spill] sm:$0xff] %v5048_v0  ;;  %v5064_v22 = vmul.f32 %v2079_v19, %v5048_v0  ;;  %v2080_v59 = vld [vmem:[%s8787_s3 + $0x268] sm:$0xff]  ;;  %v2102_v39 = vld [vmem:[%s8787_s3 + $0x318] sm:$0xff] }
 0x125   : > { %v2096_v19 = vld [vmem:[%s8787_s3 + $0x2e8] sm:$0xff]  ;;  %v5095_v42 = vmul.f32 %v2080_v59, %v5077_v17 }
 0x126   : > { %9054 = vst [vmem:[#allocation72_spill] sm:$0xff] %v5038_v1  ;;  %v622_v21 = vpop.permute.xlu1 %621  ;;  %v5053_v61 = vpop.permute.xlu0 %619  ;;  %9058 = vst [vmem:[#allocation76_spill] sm:$0xff] %v5064_v22 }
 0x127   : > { %9056 = vst [vmem:[#allocation74_spill] sm:$0xff] %v5053_v61  ;;  %v5059_v25 = vsel %vm629_vm4, %v5053_v61, %v622_v21  ;;  %9064 = vst [vmem:[#allocation82_spill] sm:$0xff] %v5095_v42 }
 0x128   : > { %9057 = vst [vmem:[#allocation75_spill] sm:$0xff] %v5059_v25  ;;  %875 = vrot.lane.b32.xlu1 %v5006_v3, %s4155_s28  ;;  %v5067_v27 = vmul.f32 %v2095_v58, %v5059_v25  ;;  %873 = vrot.lane.b32.xlu0 %v5024_v56, %s4155_s28  ;;  %s4162_s28 = smov 33  }
 0x12a   : > { %9059 = vst [vmem:[#allocation77_spill] sm:$0xff] %v5067_v27  ;;  %v5079_v1 = vpop.permute.xlu1 %625  ;;  %v5086_v25 = vpop.permute.xlu0 %623 }
 0x12b   : > { %9061 = vst [vmem:[#allocation79_spill] sm:$0xff] %v5079_v1  ;;  %9062 = vst [vmem:[#allocation80_spill] sm:$0xff] %v5086_v25  ;;  %v5090_v0 = vsel %vm629_vm4, %v622_v21, %v5086_v25 }
 0x12c   : > { %9063 = vst [vmem:[#allocation81_spill] sm:$0xff] %v5090_v0  ;;  %883 = vrot.lane.b32.xlu1 %v5006_v3, %s4156_s29  ;;  %v5098_v23 = vmul.f32 %v2096_v19, %v5090_v0  ;;  %881 = vrot.lane.b32.xlu0 %v5024_v56, %s4156_s29  ;;  %s4165_s29 = smov 17  }
 0x12e   : > { %9065 = vst [vmem:[#allocation83_spill] sm:$0xff] %v5098_v23  ;;  %v663_v1 = vpop.permute.xlu1 %662  ;;  %v5102_v58 = vpop.permute.xlu0 %627 }
 0x12f   : > { %9066 = vst [vmem:[#allocation84_spill] sm:$0xff] %v5102_v58 }
 0x130   : > { %891 = vrot.lane.b32.xlu1 %v5006_v3, %s4157_s30  ;;  %889 = vrot.lane.b32.xlu0 %v5024_v56, %s4157_s30  ;;  %s4163_s30 = smov 32  }
 0x132   : > { %v5110_v21 = vpop.permute.xlu1 %666  ;;  %v665_v59 = vpop.permute.xlu0 %664 }
 0x134   : > { %899 = vrot.lane.b32.xlu1 %v5006_v3, %s4158_s25  ;;  %897 = vrot.lane.b32.xlu0 %v5024_v56, %s4158_s25  ;;  %s4166_s25 = smov 16  }
 0x136   : > { %v671_v19 = vpop.permute.xlu1 %670  ;;  %v5116_v27 = vpop.permute.xlu0 %668 }
 0x137   : > { %v5198_v43 = vsel %vm696_vm5, %v5116_v27, %v671_v19 }
 0x138   : > { %907 = vrot.lane.b32.xlu1 %v5006_v3, %s4159_s7  ;;  %905 = vrot.lane.b32.xlu0 %v5024_v56, %s4159_s7  ;;  %v2534_v31 = vmul.f32 %v2102_v39, %v5198_v43  ;;  %s4168_s7 = smov 1  }
 0x13a   : > { %v5122_v22 = vpop.permute.xlu1 %674  ;;  %v5124_v42 = vpop.permute.xlu0 %672 }
 0x13b   : > { %9067 = vst [vmem:[#allocation85_spill] sm:$0xff] %v5122_v22 }
 0x13c   : > { %916 = vrot.lane.b32.xlu1 %v4242_v4, %s4162_s28  ;;  %914 = vrot.lane.b32.xlu0 %v4245_v5, %s4162_s28 }
 0x13e   : > { %v5130_v23 = vpop.permute.xlu1 %678  ;;  %v5132_v25 = vpop.permute.xlu0 %676 }
 0x13f   : > { %9068 = vst [vmem:[#allocation86_spill] sm:$0xff] %v5130_v23  ;;  %9069 = vst [vmem:[#allocation87_spill] sm:$0xff] %v5132_v25  ;;  %v2101_v25 = vld [vmem:[%s8787_s3 + $0x310] sm:$0xff] }
 0x140   : > { %920 = vrot.lane.b32.xlu1 %v4252_v6, %s4162_s28  ;;  %918 = vrot.lane.b32.xlu0 %v4255_v7, %s4162_s28 }
 0x142   : > { %v5138_v58 = vpop.permute.xlu1 %682  ;;  %v5140_v0 = vpop.permute.xlu0 %680 }
 0x143   : > { %9070 = vst [vmem:[#allocation88_spill] sm:$0xff] %v5138_v58 }
 0x144   : > { %924 = vrot.lane.b32.xlu1 %v4262_v8, %s4162_s28  ;;  %922 = vrot.lane.b32.xlu0 %v4265_v9, %s4162_s28 }
 0x146   : > { %v5146_v4 = vpop.permute.xlu1 %686  ;;  %v5148_v5 = vpop.permute.xlu0 %684 }
 0x147   : > { %9071 = vst [vmem:[#allocation89_spill] sm:$0xff] %v5146_v4  ;;  %9072 = vst [vmem:[#allocation90_spill] sm:$0xff] %v5148_v5  ;;  %v2099_v5 = vld [vmem:[%s8787_s3 + $0x300] sm:$0xff] }
 0x148   : > { %928 = vrot.lane.b32.xlu1 %v4272_v10, %s4162_s28  ;;  %926 = vrot.lane.b32.xlu0 %v4275_v11, %s4162_s28 }
 0x14a   : > { %v5154_v6 = vpop.permute.xlu1 %690  ;;  %v5156_v7 = vpop.permute.xlu0 %688 }
 0x14b   : > { %9073 = vst [vmem:[#allocation91_spill] sm:$0xff] %v5154_v6 }
 0x14c   : > { %932 = vrot.lane.b32.xlu1 %v4282_v12, %s4162_s28  ;;  %930 = vrot.lane.b32.xlu0 %v4285_v13, %s4162_s28  ;;  %v2100_v12 = vld [vmem:[%s8787_s3 + $0x308] sm:$0xff]  ;;  %v698_v13 = vsel %vm696_vm5, %v665_v59, %v5110_v21 }
 0x14d   : > { %v2532_v61 = vmul.f32 %v2100_v12, %v698_v13  ;;  %v2117_v12 = vld [vmem:[%s8787_s3 + $0x390] sm:$0xff]  ;;  %v5213_v13 = vld [vmem:[%s4219_s26 + $0x28] sm:$0xff] }
 0x14e   : > { %v5162_v8 = vpop.permute.xlu1 %694  ;;  %v5164_v9 = vpop.permute.xlu0 %692 }
 0x14f   : > { %9074 = vst [vmem:[#allocation92_spill] sm:$0xff] %v5162_v8  ;;  %9075 = vst [vmem:[#allocation93_spill] sm:$0xff] %v5164_v9 }
 0x150   : > { %936 = vrot.lane.b32.xlu1 %v4292_v14, %s4162_s28  ;;  %934 = vrot.lane.b32.xlu0 %v4295_v15, %s4162_s28  ;;  %v292_v14 = vld [vmem:[%s4219_s26 + $0x98] sm:$0xff]  ;;  %v2115_v15 = vld [vmem:[%s8787_s3 + $0x380] sm:$0xff] }
 0x152   : > { %v732_v10 = vpop.permute.xlu1 %731  ;;  %v730_v11 = vpop.permute.xlu0 %729 }
 0x153   : > { %v764_v8 = vsel %vm763_vm6, %v730_v11, %v732_v10 }
 0x154   : > { %940 = vrot.lane.b32.xlu1 %v5024_v56, %s4162_s28  ;;  %938 = vrot.lane.b32.xlu0 %v4302_v16, %s4162_s28  ;;  %v2116_v56 = vld [vmem:[%s8787_s3 + $0x388] sm:$0xff]  ;;  %v697_v16 = vsel %vm696_vm5, %v663_v1, %v665_v59  ;;  %v5205_v1 = vsel %vm696_vm5, %v671_v19, %v5124_v42  ;;  %v2547_v59 = vmul.f32 %v2115_v15, %v764_v8  ;;  %v2118_v19 = vld [vmem:[%s8787_s3 + $0x398] sm:$0xff] }
 0x155   : > { %v2119_v8 = vld [vmem:[%s8787_s3 + $0x3a0] sm:$0xff]  ;;  %v5237_v55 = vmul.f32 %v2103_v2, %v5205_v1 }
 0x156   : > { %v736_v9 = vpop.permute.xlu1 %735  ;;  %v734_v17 = vpop.permute.xlu0 %733  ;;  %v5225_v15 = vld [vmem:[%s4219_s26 + $0x20] sm:$0xff] }
 0x157   : > { %v765_v11 = vsel %vm763_vm6, %v732_v10, %v734_v17  ;;  %9076 = vst [vmem:[#allocation94_spill] sm:$0xff] %v5237_v55 }
 0x158   : > { %944 = vrot.lane.b32.xlu1 %v292_v14, %s4162_s28  ;;  %v2548_v10 = vmul.f32 %v2116_v56, %v765_v11  ;;  %942 = vrot.lane.b32.xlu0 %v5006_v3, %s4162_s28  ;;  %v5216_v14 = vsel %vm763_vm6, %v734_v17, %v736_v9  ;;  %v2531_v56 = vmul.f32 %v2099_v5, %v697_v16 }
 0x159   : > { %v5230_v3 = vsel %vm696_vm5, %v5110_v21, %v5116_v27  ;;  %v5255_v21 = vld [vmem:[%s4219_s26 + $0x38] sm:$0xff] }
 0x15a   : > { %v740_v63 = vpop.permute.xlu1 %739  ;;  %v738_v17 = vpop.permute.xlu0 %737  ;;  %v3681_v11 = vpack.c.bf16 %v2548_v10, %v2532_v61  ;;  %v2549_v61 = vmul.f32 %v2117_v12, %v5216_v14  ;;  %v3683_v2 = vpack.c.bf16 %v2547_v59, %v2531_v56  ;;  %v5263_v10 = vsel %vm696_vm5, %v5124_v42, %v5122_v22  ;;  %v5271_v59 = vld [vmem:[%s4219_s26 + $0x30] sm:$0xff]  ;;  %v5293_v56 = vld [vmem:[%s4219_s26 + $0x48] sm:$0xff] }
 0x15b   : > { %v5240_v5 = vsel %vm763_vm6, %v736_v9, %v738_v17  ;;  %v5243_v16 = vsel %vm763_vm6, %v738_v17, %v740_v63  ;;  %v2104_v9 = vld [vmem:[%s8787_s3 + $0x328] sm:$0xff] }
 0x15c   : > { %981 = vrot.lane.b32.xlu1 %v5213_v13, %s4163_s30  ;;  %v2550_v27 = vmul.f32 %v2118_v19, %v5240_v5  ;;  %v5250_v39 = vmul.f32 %v2119_v8, %v5243_v16  ;;  %979 = vrot.lane.b32.xlu0 %v5225_v15, %s4163_s30  ;;  %v2120_v19 = vld [vmem:[%s8787_s3 + $0x3a8] sm:$0xff]  ;;  %v2533_v8 = vmul.f32 %v2101_v25, %v5230_v3 }
 0x15d   : > { %3682 = vmatprep.subr.bf16.mxu0 %v3681_v11  ;;  %v5285_v22 = vmul.f32 %v2104_v9, %v5263_v10  ;;  %v2123_v9 = vld [vmem:[%s8787_s3 + $0x3c0] sm:$0xff] }
 0x15e   : > { %9077 = vst [vmem:[#allocation95_spill] sm:$0xff] %v5250_v39  ;;  %v5265_v12 = vpop.permute.xlu1 %743  ;;  %3684 = vmatpush1.bf16.msra.mxu0 %v3683_v2  ;;  %v5276_v17 = vpop.permute.xlu0 %741  ;;  %v3733_v42 = vpack.c.bf16 %v2550_v27, %v2534_v31  ;;  %v3735_v2 = vpack.c.bf16 %v2549_v61, %v2533_v8  ;;  %v5301_v31 = vsel %vm696_vm5, %v5130_v23, %v5140_v0 }
 0x15f   : > { %9078 = vst [vmem:[#allocation96_spill] sm:$0xff] %v5265_v12  ;;  %9079 = vst [vmem:[#allocation97_spill] sm:$0xff] %v5276_v17  ;;  %v5280_v11 = vsel %vm763_vm6, %v740_v63, %v5276_v17  ;;  %v2107_v63 = vld [vmem:[%s8787_s3 + $0x340] sm:$0xff]  ;;  %v5333_v8 = vsel %vm696_vm5, %v5140_v0, %v5138_v58  ;;  %v2150_v17 = vld [vmem:[%s8787_s3 + $0x498] sm:$0xff] }
 0x160   : > { %985 = vrot.lane.b32.xlu1 %v5255_v21, %s4163_s30  ;;  %9080 = vst [vmem:[#allocation98_spill] sm:$0xff] %v5285_v22  ;;  %v5288_v25 = vmul.f32 %v2120_v19, %v5280_v11  ;;  %983 = vrot.lane.b32.xlu0 %v5271_v59, %s4163_s30  ;;  %9082 = vst [vmem:[#allocation100_spill] sm:$0xff] %v5301_v31  ;;  %v5307_v19 = vld [vmem:[%s4219_s26 + $0x40] sm:$0xff]  ;;  %v2582_v12 = vmul.f32 %v4113_v29, %v2150_v17  ;;  %v2181_v29 = vld [vmem:[%s8787_s3 + $0x590] sm:$0xff] }
 0x161   : > { %3734 = vmatprep.subr.bf16.mxu1 %v3733_v42  ;;  %v5320_v42 = vmul.f32 %v2107_v63, %v5301_v31  ;;  %9087 = vst [vmem:[#allocation105_spill] sm:$0xff] %v5333_v8  ;;  %v2124_v63 = vld [vmem:[%s8787_s3 + $0x3c8] sm:$0xff] }
 0x162   : > { %9081 = vst [vmem:[#allocation99_spill] sm:$0xff] %v5288_v25  ;;  %v748_v27 = vpop.permute.xlu1 %747  ;;  %3736 = vmatpush1.bf16.msra.mxu1 %v3735_v2  ;;  %v5309_v61 = vpop.permute.xlu0 %745  ;;  %v2108_v2 = vld [vmem:[%s8787_s3 + $0x348] sm:$0xff] }
 0x163   : > { %9083 = vst [vmem:[#allocation101_spill] sm:$0xff] %v5309_v61  ;;  %v5315_v55 = vsel %vm763_vm6, %v5309_v61, %v748_v27  ;;  %9085 = vst [vmem:[#allocation103_spill] sm:$0xff] %v5320_v42  ;;  %v5351_v0 = vmul.f32 %v2108_v2, %v5333_v8  ;;  %v2127_v2 = vld [vmem:[%s8787_s3 + $0x3e0] sm:$0xff] }
 0x164   : > { %9084 = vst [vmem:[#allocation102_spill] sm:$0xff] %v5315_v55  ;;  %989 = vrot.lane.b32.xlu1 %v5293_v56, %s4163_s30  ;;  %v5323_v39 = vmul.f32 %v2123_v9, %v5315_v55  ;;  %987 = vrot.lane.b32.xlu0 %v5307_v19, %s4163_s30  ;;  %v2111_v9 = vld [vmem:[%s8787_s3 + $0x360] sm:$0xff] }
 0x165   : > { %9091 = vst [vmem:[#allocation109_spill] sm:$0xff] %v5351_v0  ;;  %v5393_v0 = vsel %vm696_vm5, %v5156_v7, %v5154_v6  ;;  %v4114_v61 = vld [vmem:[%s4219_s26 + $0x20] sm:$0xff] }
 0x166   : > { %9086 = vst [vmem:[#allocation104_spill] sm:$0xff] %v5323_v39  ;;  %v5335_v22 = vpop.permute.xlu1 %751  ;;  %v5342_v55 = vpop.permute.xlu0 %749  ;;  %9098 = vst [vmem:[#allocation116_spill] sm:$0xff] %v5393_v0 }
 0x167   : > { %9088 = vst [vmem:[#allocation106_spill] sm:$0xff] %v5335_v22  ;;  %9089 = vst [vmem:[#allocation107_spill] sm:$0xff] %v5342_v55  ;;  %v5346_v31 = vsel %vm763_vm6, %v748_v27, %v5342_v55  ;;  %v5364_v27 = vsel %vm696_vm5, %v5146_v4, %v5156_v7 }
 0x168   : > { %9090 = vst [vmem:[#allocation108_spill] sm:$0xff] %v5346_v31  ;;  %1032 = vrot.lane.b32.xlu1 %v5213_v13, %s4164_s8  ;;  %v5354_v58 = vmul.f32 %v2124_v63, %v5346_v31  ;;  %1030 = vrot.lane.b32.xlu0 %v5225_v15, %s4164_s8  ;;  %9093 = vst [vmem:[#allocation111_spill] sm:$0xff] %v5364_v27  ;;  %v5380_v4 = vmul.f32 %v2111_v9, %v5364_v27  ;;  %v2112_v63 = vld [vmem:[%s8787_s3 + $0x368] sm:$0xff] }
 0x169   : > { %v2128_v9 = vld [vmem:[%s8787_s3 + $0x3e8] sm:$0xff]  ;;  %v5411_v7 = vmul.f32 %v2112_v63, %v5393_v0  ;;  %v4112_v0 = vld [vmem:[%s4219_s26 + $0x10] sm:$0xff] }
 0x16a   : > { %9092 = vst [vmem:[#allocation110_spill] sm:$0xff] %v5354_v58  ;;  %v756_v42 = vpop.permute.xlu1 %755  ;;  %v5369_v39 = vpop.permute.xlu0 %753  ;;  %9096 = vst [vmem:[#allocation114_spill] sm:$0xff] %v5380_v4  ;;  %v2148_v63 = vld [vmem:[%s8787_s3 + $0x488] sm:$0xff] }
 0x16b   : > { %9094 = vst [vmem:[#allocation112_spill] sm:$0xff] %v5369_v39  ;;  %v5375_v55 = vsel %vm763_vm6, %v5369_v39, %v756_v42  ;;  %9102 = vst [vmem:[#allocation120_spill] sm:$0xff] %v5411_v7  ;;  %v2131_v7 = vld [vmem:[%s8787_s3 + $0x400] sm:$0xff] }
 0x16c   : > { %9095 = vst [vmem:[#allocation113_spill] sm:$0xff] %v5375_v55  ;;  %1081 = vrot.lane.b32.xlu1 %v5225_v15, %s4165_s29  ;;  %v5383_v22 = vmul.f32 %v2127_v2, %v5375_v55  ;;  %1034 = vrot.lane.b32.xlu0 %v5271_v59, %s4164_s8 }
 0x16e   : > { %9097 = vst [vmem:[#allocation115_spill] sm:$0xff] %v5383_v22  ;;  %v5395_v58 = vpop.permute.xlu1 %759  ;;  %v5402_v55 = vpop.permute.xlu0 %757  ;;  %v2180_v22 = vld [vmem:[%s8787_s3 + $0x588] sm:$0xff] }
 0x16f   : > { %9099 = vst [vmem:[#allocation117_spill] sm:$0xff] %v5395_v58  ;;  %9100 = vst [vmem:[#allocation118_spill] sm:$0xff] %v5402_v55  ;;  %v5406_v27 = vsel %vm763_vm6, %v756_v42, %v5402_v55  ;;  %v2164_v55 = vld [vmem:[%s8787_s3 + $0x508] sm:$0xff]  ;;  %v2612_v31 = vmul.f32 %v2180_v22, %v4572_v48  ;;  %v2179_v48 = vld [vmem:[%s8787_s3 + $0x580] sm:$0xff] }
 0x170   : > { %9101 = vst [vmem:[#allocation119_spill] sm:$0xff] %v5406_v27  ;;  %1085 = vrot.lane.b32.xlu1 %v5271_v59, %s4165_s29  ;;  %v5414_v6 = vmul.f32 %v2128_v9, %v5406_v27  ;;  %1083 = vrot.lane.b32.xlu0 %v5213_v13, %s4165_s29  ;;  %v2147_v9 = vld [vmem:[%s8787_s3 + $0x480] sm:$0xff]  ;;  %v2611_v62 = vmul.f32 %v2179_v48, %v4599_v33 }
 0x171   : > { %v2579_v39 = vmul.f32 %v4112_v0, %v2147_v9 }
 0x172   : > { %9103 = vst [vmem:[#allocation121_spill] sm:$0xff] %v5414_v6  ;;  %v797_v2 = vpop.permute.xlu1 %796  ;;  %v5418_v4 = vpop.permute.xlu0 %761  ;;  %v2132_v6 = vld [vmem:[%s8787_s3 + $0x408] sm:$0xff] }
 0x173   : > { %9104 = vst [vmem:[#allocation122_spill] sm:$0xff] %v5418_v4  ;;  %v4111_v4 = vld [vmem:[%s4219_s26 + $0x18] sm:$0xff] }
 0x174   : > { %1038 = vrot.lane.b32.xlu1 %v5307_v19, %s4164_s8  ;;  %1036 = vrot.lane.b32.xlu0 %v5255_v21, %s4164_s8  ;;  %v2580_v27 = vmul.f32 %v4111_v4, %v2148_v63  ;;  %v2149_v4 = vld [vmem:[%s8787_s3 + $0x490] sm:$0xff]  ;;  %v2182_v63 = vld [vmem:[%s8787_s3 + $0x598] sm:$0xff] }
 0x175   : > { %v2581_v24 = vmul.f32 %v4114_v61, %v2149_v4  ;;  %v2614_v17 = vmul.f32 %v2182_v63, %v4627_v38  ;;  %v5514_v38 = vsel %vm361_vm0, %v4426_v36, %v4424_v35  ;;  %v2228_v63 = vld [vmem:[%s8787_s3 + $0x708] sm:$0xff]  ;;  %v2213_v36 = vld [vmem:[%s8787_s3 + $0x690] sm:$0xff] }
 0x176   : > { %v801_v42 = vpop.permute.xlu1 %800  ;;  %v799_v58 = vpop.permute.xlu0 %798 }
 0x177   : > { %v831_v8 = vsel %vm830_vm7, %v797_v2, %v799_v58  ;;  %v832_v25 = vsel %vm830_vm7, %v799_v58, %v801_v42  ;;  %v2596_v58 = vmul.f32 %v2164_v55, %v4433_v40  ;;  %v5466_v2 = vsel %vm361_vm0, %v4424_v35, %v4445_v46  ;;  %v2163_v55 = vld [vmem:[%s8787_s3 + $0x500] sm:$0xff] }
 0x178   : > { %1089 = vrot.lane.b32.xlu1 %v5307_v19, %s4165_s29  ;;  %v2563_v22 = vmul.f32 %v2131_v7, %v831_v8  ;;  %v2564_v0 = vmul.f32 %v2132_v6, %v832_v25  ;;  %1087 = vrot.lane.b32.xlu0 %v5255_v21, %s4165_s29  ;;  %v2133_v6 = vld [vmem:[%s8787_s3 + $0x410] sm:$0xff]  ;;  %v2134_v25 = vld [vmem:[%s8787_s3 + $0x418] sm:$0xff]  ;;  %v2595_v33 = vmul.f32 %v2163_v55, %v4416_v32 }
 0x179   : > { %v2227_v55 = vld [vmem:[%s8787_s3 + $0x700] sm:$0xff] }
 0x17a   : > { %v5471_v9 = vpop.permute.xlu1 %804  ;;  %v803_v8 = vpop.permute.xlu0 %802  ;;  %v3685_v7 = vpack.c.bf16 %v2580_v27, %v2564_v0  ;;  %v3687_v23 = vpack.c.bf16 %v2579_v39, %v2563_v22  ;;  %v3689_v39 = vpack.c.bf16 %v2612_v31, %v2596_v58  ;;  %v2244_v31 = vld [vmem:[%s8787_s3 + $0x788] sm:$0xff]  ;;  %v2198_v58 = vld [vmem:[%s8787_s3 + $0x618] sm:$0xff]  ;;  %v3691_v35 = vpack.c.bf16 %v2611_v62, %v2595_v33 }
 0x17b   : > { %v833_v53 = vsel %vm830_vm7, %v801_v42, %v803_v8  ;;  %v834_v52 = vsel %vm830_vm7, %v803_v8, %v5471_v9  ;;  %v2214_v42 = vld [vmem:[%s8787_s3 + $0x698] sm:$0xff]  ;;  %v2660_v8 = vmul.f32 %v2228_v63, %v4930_v60  ;;  %v2245_v60 = vld [vmem:[%s8787_s3 + $0x790] sm:$0xff]  ;;  %v2659_v33 = vmul.f32 %v2227_v55, %v4912_v34 }
 0x17c   : > { %1134 = vrot.lane.b32.xlu1 %v5213_v13, %s4166_s25  ;;  %v2565_v61 = vmul.f32 %v2133_v6, %v833_v53  ;;  %v2566_v27 = vmul.f32 %v2134_v25, %v834_v52  ;;  %1132 = vrot.lane.b32.xlu0 %v5225_v15, %s4166_s25  ;;  %v2165_v52 = vld [vmem:[%s8787_s3 + $0x510] sm:$0xff]  ;;  %v2598_v53 = vmul.f32 %v2166_v28, %v5466_v2  ;;  %v2246_v62 = vld [vmem:[%s8787_s3 + $0x798] sm:$0xff] }
 0x17d   : > { %3686 = vmatprep.subr.bf16.mxu0 %v3685_v7  ;;  %v2646_v28 = vmul.f32 %v2214_v42, %v4948_v37  ;;  %v2597_v6 = vmul.f32 %v2165_v52, %v5514_v38  ;;  %v2197_v25 = vld [vmem:[%s8787_s3 + $0x610] sm:$0xff]  ;;  %v5657_v55 = vld [vmem:[%s4219_s26 + $0x58] sm:$0xff] }
 0x17e   : > { %3688 = vmatpush1.bf16.msra.mxu0 %v3687_v23  ;;  %v5506_v4 = vpop.permute.xlu1 %808  ;;  %v5517_v48 = vpop.permute.xlu0 %806  ;;  %v3737_v22 = vpack.c.bf16 %v2582_v12, %v2566_v27  ;;  %v3739_v0 = vpack.c.bf16 %v2581_v24, %v2565_v61  ;;  %v2613_v23 = vmul.f32 %v2181_v29, %v4579_v26  ;;  %v2243_v26 = vld [vmem:[%s8787_s3 + $0x780] sm:$0xff]  ;;  %v2676_v24 = vmul.f32 %v2244_v31, %v5198_v43 }
 0x17f   : > { %3690 = vmatprep.subr.bf16.mxu0 %v3689_v39  ;;  %v3741_v12 = vpack.c.bf16 %v2614_v17, %v2598_v53  ;;  %v2630_v43 = vmul.f32 %v2198_v58, %v4643_v30  ;;  %v9106_v39 = vpack.c.bf16 %v4817_v47, %v4811_v20  ;;  %v2645_v29 = vmul.f32 %v2213_v36, %v4904_v54  ;;  %v2230_v17 = vld [vmem:[%s8787_s3 + $0x718] sm:$0xff] }
 0x180   : > { %1183 = vrot.lane.b32.xlu1 %v5225_v15, %s4167_s11  ;;  %1136 = vrot.lane.b32.xlu0 %v5271_v59, %s4166_s25  ;;  %v2675_v30 = vmul.f32 %v2243_v26, %v5230_v3  ;;  %v3743_v61 = vpack.c.bf16 %v2613_v23, %v2597_v6  ;;  %v2678_v27 = vmul.f32 %v2246_v62, %v5263_v10  ;;  %v2229_v10 = vld [vmem:[%s8787_s3 + $0x710] sm:$0xff] }
 0x181   : > { %3738 = vmatprep.subr.bf16.mxu1 %v3737_v22  ;;  %v3745_v54 = vpack.c.bf16 %v2646_v28, %v2630_v43  ;;  %v3697_v20 = vpack.c.bf16 %v2676_v24, %v2660_v8  ;;  %v2629_v47 = vmul.f32 %v2197_v25, %v4612_v41  ;;  %v9107_v3 = vpack.c.bf16 %v4814_v44, %v4808_v57 }
 0x182   : > { %3692 = vmatpush1.bf16.msra.mxu0 %v3691_v35  ;;  %3740 = vmatpush1.bf16.msra.mxu1 %v3739_v0  ;;  %v5542_v37 = vpop.permute.xlu1 %812  ;;  %v5552_v7 = vpop.permute.xlu0 %810  ;;  %v2662_v31 = vmul.f32 %v2230_v17, %v4964_v18  ;;  %v2677_v41 = vmul.f32 %v2245_v60, %v5205_v1  ;;  %v3699_v57 = vpack.c.bf16 %v2675_v30, %v2659_v33  ;;  %v5668_v17 = vld [vmem:[%s4219_s26 + $0x60] sm:$0xff] }
 0x183   : > { %9105 = vst [vmem:[#allocation123_spill] sm:$0xff] %v5542_v37  ;;  %3742 = vmatprep.subr.bf16.mxu1 %v3741_v12  ;;  %3694 = vmatprep.subr.bf16.mxu0 %v9106_v39  ;;  %v3747_v44 = vpack.c.bf16 %v2645_v29, %v2629_v47  ;;  %v2661_v53 = vmul.f32 %v2229_v10, %v4933_v51  ;;  %v5638_v12 = vld [vmem:[%s4219_s26 + $0x50] sm:$0xff] }
 0x184   : > { %1187 = vrot.lane.b32.xlu1 %v5271_v59, %s4167_s11  ;;  %1185 = vrot.lane.b32.xlu0 %v5213_v13, %s4167_s11  ;;  %v3749_v34 = vpack.c.bf16 %v2678_v27, %v2662_v31  ;;  %v5694_v47 = vsel %vm361_vm0, %v4445_v46, %v4443_v45 }
 0x185   : > { %v3751_v1 = vpack.c.bf16 %v2677_v41, %v2661_v53 }
 0x186   : > { %3696 = vmatpush1.bf16.msra.mxu0 %v9107_v3  ;;  %3744 = vmatpush1.bf16.msra.mxu1 %v3743_v61  ;;  %v5575_v42 = vpop.permute.xlu1 %816  ;;  %v5581_v52 = vpop.permute.xlu0 %814 }
 0x187   : > { %9108 = vst [vmem:[#allocation124_spill] sm:$0xff] %v5575_v42  ;;  %3746 = vmatprep.subr.bf16.mxu1 %v3745_v54  ;;  %9109 = vst [vmem:[#allocation125_spill] sm:$0xff] %v5581_v52  ;;  %3698 = vmatprep.subr.bf16.mxu0 %v3697_v20 }
 0x188   : > { %1140 = vrot.lane.b32.xlu1 %v5307_v19, %s4166_s25  ;;  %1138 = vrot.lane.b32.xlu0 %v5255_v21, %s4166_s25 }
 0x18a   : > { %3700 = vmatpush1.bf16.msra.mxu0 %v3699_v57  ;;  %3748 = vmatpush1.bf16.msra.mxu1 %v3747_v44  ;;  %v5589_v18 = vpop.permute.xlu1 %820  ;;  %v5591_v22 = vpop.permute.xlu0 %818 }
 0x18b   : > { %9110 = vst [vmem:[#allocation126_spill] sm:$0xff] %v5589_v18  ;;  %3750 = vmatprep.subr.bf16.mxu1 %v3749_v34  ;;  %9111 = vst [vmem:[#allocation127_spill] sm:$0xff] %v5591_v22 }
 0x18c   : > { %1191 = vrot.lane.b32.xlu1 %v5307_v19, %s4167_s11  ;;  %1189 = vrot.lane.b32.xlu0 %v5255_v21, %s4167_s11 }
 0x18e   : > { %3752 = vmatpush1.bf16.msra.mxu1 %v3751_v1  ;;  %v5597_v0 = vpop.permute.xlu1 %824  ;;  %v5599_v23 = vpop.permute.xlu0 %822 }
 0x18f   : > { %9112 = vst [vmem:[#allocation128_spill] sm:$0xff] %v5597_v0  ;;  %9113 = vst [vmem:[#allocation129_spill] sm:$0xff] %v5599_v23 }
 0x190   : > { %1236 = vrot.lane.b32.xlu1 %v5213_v13, %s4168_s7  ;;  %1234 = vrot.lane.b32.xlu0 %v5225_v15, %s4168_s7 }
 0x192   : > { %v5605_v51 = vpop.permute.xlu1 %828  ;;  %v5607_v58 = vpop.permute.xlu0 %826 }
 0x193   : > { %9114 = vst [vmem:[#allocation130_spill] sm:$0xff] %v5605_v51  ;;  %9115 = vst [vmem:[#allocation131_spill] sm:$0xff] %v5607_v58 }
 0x194   : > { %1240 = vrot.lane.b32.xlu1 %v5255_v21, %s4168_s7  ;;  %1238 = vrot.lane.b32.xlu0 %v5271_v59, %s4168_s7 }
 0x196   : > { %v5613_v63 = vpop.permute.xlu1 %867  ;;  %v5615_v35 = vpop.permute.xlu0 %865 }
 0x197   : > { %9116 = vst [vmem:[#allocation132_spill] sm:$0xff] %v5613_v63  ;;  %9117 = vst [vmem:[#allocation133_spill] sm:$0xff] %v5615_v35 }
 0x198   : > { %1287 = vrot.lane.b32.xlu1 %v5213_v13, %s4154_s27  ;;  %1242 = vrot.lane.b32.xlu0 %v5307_v19, %s4168_s7 }
 0x19a   : > { %v5621_v36 = vpop.permute.xlu1 %875  ;;  %v5623_v28 = vpop.permute.xlu0 %873 }
 0x19b   : > { %9118 = vst [vmem:[#allocation134_spill] sm:$0xff] %v5621_v36  ;;  %9119 = vst [vmem:[#allocation135_spill] sm:$0xff] %v5623_v28 }
 0x19c   : > { %1291 = vrot.lane.b32.xlu1 %v5255_v21, %s4154_s27  ;;  %1289 = vrot.lane.b32.xlu0 %v5271_v59, %s4154_s27 }
 0x19e   : > { %v5629_v26 = vpop.permute.xlu1 %883  ;;  %v5631_v24 = vpop.permute.xlu0 %881 }
 0x19f   : > { %9120 = vst [vmem:[#allocation136_spill] sm:$0xff] %v5629_v26  ;;  %9121 = vst [vmem:[#allocation137_spill] sm:$0xff] %v5631_v24 }
 0x1a0   : > { %1293 = vrot.lane.b32.xlu1 %v5307_v19, %s4154_s27  ;;  %1285 = vrot.lane.b32.xlu0 %v5225_v15, %s4154_s27 }
 0x1a2   : > { %v5640_v6 = vpop.permute.xlu1 %891  ;;  %v5642_v62 = vpop.permute.xlu0 %889 }
 0x1a3   : > { %9122 = vst [vmem:[#allocation138_spill] sm:$0xff] %v5640_v6  ;;  %9123 = vst [vmem:[#allocation139_spill] sm:$0xff] %v5642_v62 }
 0x1a4   : > { %991 = vrot.lane.b32.xlu1 %v5638_v12, %s4163_s30  ;;  %1295 = vrot.lane.b32.xlu0 %v5293_v56, %s4154_s27 }
 0x1a6   : > { %v5648_v25 = vpop.permute.xlu1 %899  ;;  %v5650_v43 = vpop.permute.xlu0 %897 }
 0x1a7   : > { %9124 = vst [vmem:[#allocation140_spill] sm:$0xff] %v5648_v25  ;;  %9125 = vst [vmem:[#allocation141_spill] sm:$0xff] %v5650_v43 }
 0x1a8   : > { %1343 = vrot.lane.b32.xlu1 %v5514_v38, %s4160_s10  ;;  %1341 = vrot.lane.b32.xlu0 %v4433_v40, %s4160_s10 }
 0x1aa   : > { %v5659_v8 = vpop.permute.xlu1 %907  ;;  %v5661_v39 = vpop.permute.xlu0 %905 }
 0x1ab   : > { %9126 = vst [vmem:[#allocation142_spill] sm:$0xff] %v5659_v8  ;;  %9127 = vst [vmem:[#allocation143_spill] sm:$0xff] %v5661_v39 }
 0x1ac   : > { %993 = vrot.lane.b32.xlu1 %v5657_v55, %s4163_s30  ;;  %1339 = vrot.lane.b32.xlu0 %v4416_v32, %s4160_s10 }
 0x1ae   : > { %v917_v29 = vpop.permute.xlu1 %916  ;;  %v915_v30 = vpop.permute.xlu0 %914 }
 0x1af   : > { %v947_v20 = vsel %vm946_vm8, %v915_v30, %v917_v29 }
 0x1b0   : > { %1040 = vrot.lane.b32.xlu1 %v5293_v56, %s4164_s8  ;;  %995 = vrot.lane.b32.xlu0 %v5668_v17, %s4163_s30 }
 0x1b2   : > { %v921_v40 = vpop.permute.xlu1 %920  ;;  %v919_v61 = vpop.permute.xlu0 %918 }
 0x1b3   : > { %v948_v10 = vsel %vm946_vm8, %v917_v29, %v919_v61  ;;  %v949_v6 = vsel %vm946_vm8, %v919_v61, %v921_v40 }
 0x1b4   : > { %1091 = vrot.lane.b32.xlu1 %v5293_v56, %s4165_s29  ;;  %1042 = vrot.lane.b32.xlu0 %v5638_v12, %s4164_s8 }
 0x1b6   : > { %v5678_v60 = vpop.permute.xlu1 %924  ;;  %v5680_v32 = vpop.permute.xlu0 %922 }
 0x1b7   : > { %v950_v58 = vsel %vm946_vm8, %v921_v40, %v5680_v32 }
 0x1b8   : > { %1345 = vrot.lane.b32.xlu1 %v5466_v2, %s4160_s10  ;;  %1093 = vrot.lane.b32.xlu0 %v5638_v12, %s4165_s29 }
 0x1ba   : > { %v5686_v27 = vpop.permute.xlu1 %928  ;;  %v5688_v54 = vpop.permute.xlu0 %926 }
 0x1bc   : > { %1375 = vrot.lane.b32.xlu1 %v947_v20, %s4160_s10  ;;  %1347 = vrot.lane.b32.xlu0 %v5694_v47, %s4160_s10 }
 0x1be   : > { %v5699_v33 = vpop.permute.xlu1 %932  ;;  %v5701_v3 = vpop.permute.xlu0 %930 }
 0x1bf   : > { %9128 = vst [vmem:[#allocation144_spill] sm:$0xff] %v5699_v33  ;;  %9129 = vst [vmem:[#allocation145_spill] sm:$0xff] %v5701_v3 }
 0x1c0   : > { %1377 = vrot.lane.b32.xlu0 %v948_v10, %s4160_s10 }
 0x1c2   : > { %v5705_v31 = vpop.permute.xlu1 %936  ;;  %v5707_v41 = vpop.permute.xlu0 %934 }
 0x1c3   : > { %9130 = vst [vmem:[#allocation146_spill] sm:$0xff] %v5705_v31  ;;  %9131 = vst [vmem:[#allocation147_spill] sm:$0xff] %v5707_v41 }
 0x1c6   : > { %v5709_v57 = vpop.permute.xlu1 %940  ;;  %v5711_v46 = vpop.permute.xlu0 %938 }
 0x1c7   : > { %9132 = vst [vmem:[#allocation148_spill] sm:$0xff] %v5709_v57  ;;  %9133 = vst [vmem:[#allocation149_spill] sm:$0xff] %v5711_v46 }
 0x1ca   : > { %v5713_v44 = vpop.permute.xlu1 %944  ;;  %v5715_v34 = vpop.permute.xlu0 %942 }
 0x1cb   : > { %9134 = vst [vmem:[#allocation150_spill] sm:$0xff] %v5713_v44  ;;  %9135 = vst [vmem:[#allocation151_spill] sm:$0xff] %v5715_v34 }
 0x1ce   : > { %v982_v53 = vpop.permute.xlu1 %981  ;;  %v980_v1 = vpop.permute.xlu0 %979 }
 0x1cf   : > { %v1014_v20 = vsel %vm1013_vm9, %v980_v1, %v982_v53 }
 0x1d0   : > { %1409 = vrot.lane.b32.xlu1 %v1014_v20, %s4160_s10 }
 0x1d2   : > { %v986_v29 = vpop.permute.xlu1 %985  ;;  %v984_v10 = vpop.permute.xlu0 %983 }
 0x1d3   : > { %v1015_v43 = vsel %vm1013_vm9, %v982_v53, %v984_v10  ;;  %v1016_v36 = vsel %vm1013_vm9, %v984_v10, %v986_v29 }
 0x1d4   : > { %1373 = vrot.lane.b32.xlu1 %v915_v30, %s4160_s10  ;;  %1411 = vrot.lane.b32.xlu0 %v1015_v43, %s4160_s10 }
 0x1d6   : > { %v5722_v25 = vpop.permute.xlu1 %989  ;;  %v5724_v39 = vpop.permute.xlu0 %987 }
 0x1d8   : > { %1044 = vrot.lane.b32.xlu1 %v5657_v55, %s4164_s8  ;;  %1407 = vrot.lane.b32.xlu0 %v980_v1, %s4160_s10 }
 0x1da   : > { %v1033_v8 = vpop.permute.xlu1 %1032  ;;  %v1031_v26 = vpop.permute.xlu0 %1030 }
 0x1db   : > { %v1065_v23 = vsel %vm1064_vm10, %v1031_v26, %v1033_v8 }
 0x1dc   : > { %1095 = vrot.lane.b32.xlu1 %v5657_v55, %s4165_s29  ;;  %1046 = vrot.lane.b32.xlu0 %v5668_v17, %s4164_s8 }
 0x1de   : > { %v1082_v30 = vpop.permute.xlu1 %1081  ;;  %v1035_v53 = vpop.permute.xlu0 %1034 }
 0x1e0   : > { %1142 = vrot.lane.b32.xlu1 %v5293_v56, %s4166_s25  ;;  %1097 = vrot.lane.b32.xlu0 %v5668_v17, %s4165_s29 }
 0x1e2   : > { %v1086_v43 = vpop.permute.xlu1 %1085  ;;  %v1084_v20 = vpop.permute.xlu0 %1083 }
 0x1e3   : > { %v1116_v40 = vsel %vm1115_vm11, %v1082_v30, %v1084_v20  ;;  %v1117_v44 = vsel %vm1115_vm11, %v1084_v20, %v1086_v43 }
 0x1e4   : > { %1193 = vrot.lane.b32.xlu1 %v5293_v56, %s4167_s11  ;;  %1144 = vrot.lane.b32.xlu0 %v5638_v12, %s4166_s25 }
 0x1e6   : > { %v5741_v1 = vpop.permute.xlu1 %1038  ;;  %v1037_v24 = vpop.permute.xlu0 %1036 }
 0x1e7   : > { %v1068_v63 = vsel %vm1064_vm10, %v1037_v24, %v5741_v1 }
 0x1e8   : > { %1379 = vrot.lane.b32.xlu1 %v949_v6, %s4160_s10  ;;  %1195 = vrot.lane.b32.xlu0 %v5638_v12, %s4167_s11  ;;  %v1017_v6 = vsel %vm1013_vm9, %v986_v29, %v5724_v39 }
 0x1ea   : > { %v5747_v62 = vpop.permute.xlu1 %1089  ;;  %v1088_v28 = vpop.permute.xlu0 %1087 }
 0x1ec   : > { %1413 = vrot.lane.b32.xlu1 %v1016_v36, %s4160_s10  ;;  %1381 = vrot.lane.b32.xlu0 %v950_v58, %s4160_s10  ;;  %v1066_v58 = vsel %vm1064_vm10, %v1033_v8, %v1035_v53 }
 0x1ee   : > { %v1135_v51 = vpop.permute.xlu1 %1134  ;;  %v1133_v61 = vpop.permute.xlu0 %1132 }
 0x1ef   : > { %v1167_v22 = vsel %vm1166_vm12, %v1133_v61, %v1135_v51 }
 0x1f0   : > { %1415 = vrot.lane.b32.xlu0 %v1017_v6, %s4160_s10  ;;  %1443 = vrot.lane.b32.xlu1 %v1065_v23, %s4160_s10 }
 0x1f2   : > { %v1184_v10 = vpop.permute.xlu1 %1183  ;;  %v5760_v0 = vpop.permute.xlu0 %1136 }
 0x1f4   : > { %1445 = vrot.lane.b32.xlu0 %v1066_v58, %s4160_s10  ;;  %1477 = vrot.lane.b32.xlu1 %v1116_v40, %s4160_s10  ;;  %v1067_v58 = vsel %vm1064_vm10, %v1035_v53, %v1037_v24 }
 0x1f6   : > { %v5765_v36 = vpop.permute.xlu1 %1187  ;;  %v1186_v29 = vpop.permute.xlu0 %1185 }
 0x1f8   : > { %1479 = vrot.lane.b32.xlu0 %v1117_v44, %s4160_s10  ;;  %1441 = vrot.lane.b32.xlu1 %v1031_v26, %s4160_s10 }
 0x1fa   : > { %v5770_v23 = vpop.permute.xlu1 %1140  ;;  %v5772_v6 = vpop.permute.xlu0 %1138 }
 0x1fc   : > { %1475 = vrot.lane.b32.xlu0 %v1082_v30, %s4160_s10  ;;  %1146 = vrot.lane.b32.xlu1 %v5657_v55, %s4166_s25 }
 0x1fe   : > { %v5777_v8 = vpop.permute.xlu1 %1191  ;;  %v5779_v40 = vpop.permute.xlu0 %1189 }
 0x200   : > { %1148 = vrot.lane.b32.xlu0 %v5668_v17, %s4166_s25  ;;  %1197 = vrot.lane.b32.xlu1 %v5657_v55, %s4167_s11 }
 0x202   : > { %v5785_v26 = vpop.permute.xlu1 %1236  ;;  %v5787_v44 = vpop.permute.xlu0 %1234 }
 0x204   : > { %1199 = vrot.lane.b32.xlu0 %v5668_v17, %s4167_s11  ;;  %1244 = vrot.lane.b32.xlu1 %v5293_v56, %s4168_s7  ;;  %v1118_v56 = vsel %vm1115_vm11, %v1086_v43, %v1088_v28  ;;  %v1168_v43 = vsel %vm1166_vm12, %v1135_v51, %v5760_v0  ;;  %v2260_v51 = vld [vmem:[%s8787_s3 + $0x808] sm:$0xff] }
 0x205   : > { %v2692_v42 = vmul.f32 %v2260_v51, %v5240_v5 }
 0x206   : > { %v5793_v30 = vpop.permute.xlu1 %1240  ;;  %v5795_v20 = vpop.permute.xlu0 %1238 }
 0x208   : > { %1246 = vrot.lane.b32.xlu0 %v5638_v12, %s4168_s7  ;;  %1447 = vrot.lane.b32.xlu1 %v1067_v58, %s4160_s10  ;;  %v1119_v58 = vsel %vm1115_vm11, %v1088_v28, %v5747_v62 }
 0x20a   : > { %v5801_v34 = vpop.permute.xlu1 %1287  ;;  %v5803_v57 = vpop.permute.xlu0 %1242 }
 0x20c   : > { %1449 = vrot.lane.b32.xlu0 %v1068_v63, %s4160_s10  ;;  %1481 = vrot.lane.b32.xlu1 %v1118_v56, %s4160_s10  ;;  %v1218_v56 = vsel %vm1217_vm13, %v1184_v10, %v1186_v29 }
 0x20e   : > { %v5810_v53 = vpop.permute.xlu1 %1291  ;;  %v5812_v35 = vpop.permute.xlu0 %1289 }
 0x210   : > { %1483 = vrot.lane.b32.xlu0 %v1119_v58, %s4160_s10  ;;  %1511 = vrot.lane.b32.xlu1 %v1167_v22, %s4160_s10  ;;  %v1219_v22 = vsel %vm1217_vm13, %v1186_v29, %v5765_v36 }
 0x212   : > { %v5819_v24 = vpop.permute.xlu1 %1293  ;;  %v5821_v63 = vpop.permute.xlu0 %1285 }
 0x214   : > { %1513 = vrot.lane.b32.xlu0 %v1168_v43, %s4160_s10  ;;  %1545 = vrot.lane.b32.xlu1 %v1218_v56, %s4160_s10  ;;  %v2276_v43 = vld [vmem:[%s8787_s3 + $0x888] sm:$0xff] }
 0x216   : > { %v5828_v28 = vpop.permute.xlu1 %991  ;;  %v5830_v18 = vpop.permute.xlu0 %1295 }
 0x218   : > { %1547 = vrot.lane.b32.xlu0 %v1219_v22, %s4160_s10  ;;  %1509 = vrot.lane.b32.xlu1 %v1133_v61, %s4160_s10  ;;  %v2259_v61 = vld [vmem:[%s8787_s3 + $0x800] sm:$0xff] }
 0x219   : > { %v2275_v22 = vld [vmem:[%s8787_s3 + $0x880] sm:$0xff] }
 0x21a   : > { %v1344_v58 = vpop.permute.xlu1 %1343  ;;  %v1342_v56 = vpop.permute.xlu0 %1341 }
 0x21b   : > { %v1682_v52 = vsel %vm763_vm6, %v1342_v56, %v1344_v58 }
 0x21c   : > { %v2708_v31 = vmul.f32 %v2276_v43, %v1682_v52  ;;  %1543 = vrot.lane.b32.xlu0 %v1184_v10, %s4160_s10  ;;  %1248 = vrot.lane.b32.xlu1 %v5657_v55, %s4168_s7  ;;  %v1169_v52 = vsel %vm1166_vm12, %v5760_v0, %v5772_v6  ;;  %v2691_v10 = vmul.f32 %v2259_v61, %v5216_v14 }
 0x21d   : > { %v1220_v14 = vsel %vm1217_vm13, %v5765_v36, %v5779_v40  ;;  %v1270_v61 = vsel %vm1268_vm14, %v5785_v26, %v5795_v20 }
 0x21e   : > { %v5850_v29 = vpop.permute.xlu1 %993  ;;  %v1340_v46 = vpop.permute.xlu0 %1339  ;;  %v3701_v41 = vpack.c.bf16 %v2708_v31, %v2692_v42  ;;  %v1170_v31 = vsel %vm1166_vm12, %v5772_v6, %v5770_v23  ;;  %v1269_v6 = vsel %vm1268_vm14, %v5787_v44, %v5785_v26 }
 0x21f   : > { %v1681_v5 = vsel %vm763_vm6, %v1340_v46, %v1342_v56  ;;  %v1221_v46 = vsel %vm1217_vm13, %v5779_v40, %v5777_v8  ;;  %v2262_v40 = vld [vmem:[%s8787_s3 + $0x818] sm:$0xff] }
 0x220   : > { %v2707_v51 = vmul.f32 %v2275_v22, %v1681_v5  ;;  %1250 = vrot.lane.b32.xlu0 %v5668_v17, %s4168_s7  ;;  %1515 = vrot.lane.b32.xlu1 %v1169_v52, %s4160_s10  ;;  %v2277_v22 = vld [vmem:[%s8787_s3 + $0x890] sm:$0xff]  ;;  %v2278_v52 = vld [vmem:[%s8787_s3 + $0x898] sm:$0xff] }
 0x221   : > { %3702 = vmatprep.subr.bf16.mxu0 %v3701_v41 }
 0x222   : > { %v5863_v43 = vpop.permute.xlu1 %1040  ;;  %v5865_v33 = vpop.permute.xlu0 %995  ;;  %v3703_v42 = vpack.c.bf16 %v2707_v51, %v2691_v10  ;;  %v2694_v51 = vmul.f32 %v2262_v40, %v5280_v11  ;;  %v1271_v11 = vsel %vm1268_vm14, %v5795_v20, %v5793_v30  ;;  %v1321_v40 = vsel %vm361_vm0, %v5812_v35, %v5810_v53 }
 0x224   : > { %1517 = vrot.lane.b32.xlu0 %v1170_v31, %s4160_s10  ;;  %1549 = vrot.lane.b32.xlu1 %v1220_v14, %s4160_s10 }
 0x225   : > { %3704 = vmatpush1.bf16.msra.mxu0 %v3703_v42 }
 0x226   : > { %v5875_v0 = vpop.permute.xlu1 %1091  ;;  %v5877_v41 = vpop.permute.xlu0 %1042 }
 0x228   : > { %1551 = vrot.lane.b32.xlu0 %v1221_v46, %s4160_s10  ;;  %1579 = vrot.lane.b32.xlu1 %v1269_v6, %s4160_s10 }
 0x22a   : > { %v1346_v36 = vpop.permute.xlu1 %1345  ;;  %v5887_v56 = vpop.permute.xlu0 %1093 }
 0x22b   : > { %v1683_v5 = vsel %vm763_vm6, %v1344_v58, %v1346_v36 }
 0x22c   : > { %1613 = vrot.lane.b32.xlu1 %v5213_v13, %s4160_s10  ;;  %1581 = vrot.lane.b32.xlu0 %v1270_v61, %s4160_s10  ;;  %v2261_v13 = vld [vmem:[%s8787_s3 + $0x810] sm:$0xff]  ;;  %v2709_v42 = vmul.f32 %v2277_v22, %v1683_v5 }
 0x22d   : > { %v2693_v58 = vmul.f32 %v2261_v13, %v5243_v16  ;;  %v1272_v16 = vsel %vm1268_vm14, %v5793_v30, %v5803_v57  ;;  %v2308_v30 = vld [vmem:[%s8787_s3 + $0x988] sm:$0xff] }
 0x22e   : > { %v5905_v26 = vpop.permute.xlu0 %1347 }
 0x22f   : > { %9136 = vst [vmem:[#allocation152_spill] sm:$0xff] %v5905_v26  ;;  %v1684_v10 = vsel %vm763_vm6, %v1346_v36, %v5905_v26  ;;  %v3755_v46 = vpack.c.bf16 %v2709_v42, %v2693_v58  ;;  %v1319_v36 = vsel %vm361_vm0, %v5821_v63, %v5801_v34  ;;  %v1322_v42 = vsel %vm361_vm0, %v5810_v53, %v5819_v24 }
 0x230   : > { %v2710_v31 = vmul.f32 %v2278_v52, %v1684_v10  ;;  %1297 = vrot.lane.b32.xlu1 %v5638_v12, %s4154_s27  ;;  %1615 = vrot.lane.b32.xlu0 %v5271_v59, %s4160_s10  ;;  %v1376_v59 = vpop.permute.xlu1 %1375  ;;  %v5937_v12 = vld [vmem:[%s8785_s1 + $0x8] sm:$0xff]  ;;  %v2291_v52 = vld [vmem:[%s8787_s3 + $0x900] sm:$0xff] }
 0x231   : > { %3658 = vmatprep.mubr.msk.f32.mxu0 %vm2869_vm15, %v5937_v12  ;;  %3659 = vmatprep.mubr.msk.f32.mxu1 %vm2869_vm15, %v5937_v12 }
 0x232   : > { %v3753_v14 = vpack.c.bf16 %v2710_v31, %v2694_v51  ;;  %v1323_v31 = vsel %vm361_vm0, %v5819_v24, %v5830_v18 }
 0x234   : > { %1577 = vrot.lane.b32.xlu1 %v5787_v44, %s4160_s10  ;;  %1299 = vrot.lane.b32.xlu0 %v5657_v55, %s4154_s27  ;;  %v1320_v44 = vsel %vm361_vm0, %v5801_v34, %v5812_v35  ;;  %v2307_v34 = vld [vmem:[%s8787_s3 + $0x980] sm:$0xff] }
 0x235   : > { %3754 = vmatprep.subr.bf16.mxu1 %v3753_v14 }
 0x236   : > { %3756 = vmatpush1.bf16.msra.mxu1 %v3755_v46  ;;  %v5994_v46 = vld [vmem:[%s4219_s26 + $0x70] sm:$0xff] }
 0x238   : > { %1583 = vrot.lane.b32.xlu1 %v1271_v11, %s4160_s10  ;;  %1611 = vrot.lane.b32.xlu0 %v5225_v15, %s4160_s10  ;;  %v5944_v15 = vld [vmem:[%s4219_s26 + $0x68] sm:$0xff] }
 0x23c   : > { %1617 = vrot.lane.b32.xlu1 %v5255_v21, %s4160_s10  ;;  %1585 = vrot.lane.b32.xlu0 %v1272_v16, %s4160_s10  ;;  %v5950_v21 = vpop.permute.xlu0 %1377 }
 0x240   : > { %1301 = vrot.lane.b32.xlu1 %v5668_v17, %s4154_s27  ;;  %1619 = vrot.lane.b32.xlu0 %v5307_v19, %s4160_s10  ;;  %v2292_v19 = vld [vmem:[%s8787_s3 + $0x908] sm:$0xff]  ;;  %v1698_v17 = vsel %vm763_vm6, %v1376_v59, %v5950_v21 }
 0x241   : > { %v2724_v22 = vmul.f32 %v2292_v19, %v1698_v17  ;;  %v6023_v19 = vld [vmem:[%s4219_s26 + $0x78] sm:$0xff]  ;;  %v6026_v17 = vld [vmem:[%s4219_s26 + $0x80] sm:$0xff] }
 0x242   : > { %v1410_v55 = vpop.permute.xlu1 %1409 }
 0x244   : > { %1303 = vrot.lane.b32.xlu0 %v5944_v15, %s4154_s27  ;;  %1647 = vrot.lane.b32.xlu1 %v1320_v44, %s4160_s10  ;;  %v6016_v44 = vsel %vm361_vm0, %v4453_v50, %v4451_v49 }
 0x245   : > { %9137 = vst [vmem:[#allocation153_spill] sm:$0xff] %v6016_v44 }
 0x246   : > { %v1374_v20 = vpop.permute.xlu1 %1373  ;;  %v1412_v6 = vpop.permute.xlu0 %1411 }
 0x247   : > { %v1714_v61 = vsel %vm763_vm6, %v1410_v55, %v1412_v6  ;;  %v1697_v13 = vsel %vm763_vm6, %v1374_v20, %v1376_v59 }
 0x248   : > { %v2740_v5 = vmul.f32 %v2308_v30, %v1714_v61  ;;  %1649 = vrot.lane.b32.xlu0 %v1321_v40, %s4160_s10  ;;  %1645 = vrot.lane.b32.xlu1 %v1319_v36, %s4160_s10  ;;  %v2723_v58 = vmul.f32 %v2291_v52, %v1697_v13  ;;  %v2309_v40 = vld [vmem:[%s8787_s3 + $0x990] sm:$0xff]  ;;  %v2310_v13 = vld [vmem:[%s8787_s3 + $0x998] sm:$0xff] }
 0x24a   : > { %v5982_v63 = vpop.permute.xlu1 %1044  ;;  %v1408_v35 = vpop.permute.xlu0 %1407  ;;  %v3705_v10 = vpack.c.bf16 %v2740_v5, %v2724_v22  ;;  %v2294_v5 = vld [vmem:[%s8787_s3 + $0x918] sm:$0xff] }
 0x24b   : > { %v1713_v51 = vsel %vm763_vm6, %v1408_v35, %v1410_v55  ;;  %v6011_v55 = vsel %vm361_vm0, %v4443_v45, %v4453_v50 }
 0x24c   : > { %v2739_v14 = vmul.f32 %v2307_v34, %v1713_v51  ;;  %1651 = vrot.lane.b32.xlu0 %v1322_v42, %s4160_s10  ;;  %1653 = vrot.lane.b32.xlu1 %v1323_v31, %s4160_s10  ;;  %v9140_v42 = vld [vmem:[#allocation3_spill] sm:$0xff] }
 0x24d   : > { %3706 = vmatprep.subr.bf16.mxu0 %v3705_v10  ;;  %v2293_v10 = vld [vmem:[%s8787_s3 + $0x910] sm:$0xff]  ;;  %v6072_v31 = vsel %vm361_vm0, %v4451_v49, %v9140_v42  ;;  %v951_v49 = vsel %vm946_vm8, %v5680_v32, %v5678_v60  ;;  %v2340_v32 = vld [vmem:[%s8787_s3 + $0xa88] sm:$0xff] }
 0x24e   : > { %v5996_v11 = vpop.permute.xlu1 %1095  ;;  %v5998_v16 = vpop.permute.xlu0 %1046  ;;  %v3707_v53 = vpack.c.bf16 %v2739_v14, %v2723_v58  ;;  %9141 = vst [vmem:[#allocation3_spill] sm:$0xff] %v6072_v31  ;;  %v9142_v58 = vld [vmem:[#allocation2_spill] sm:$0xff] }
 0x24f   : > { %v6077_v14 = vsel %vm361_vm0, %v9140_v42, %v9142_v58 }
 0x250   : > { %997 = vrot.lane.b32.xlu0 %v5944_v15, %s4163_s30  ;;  %999 = vrot.lane.b32.xlu1 %v5994_v46, %s4163_s30  ;;  %9143 = vst [vmem:[#allocation2_spill] sm:$0xff] %v6077_v14 }
 0x251   : > { %3708 = vmatpush1.bf16.msra.mxu0 %v3707_v53 }
 0x252   : > { %v6004_v24 = vpop.permute.xlu1 %1142  ;;  %v6006_v59 = vpop.permute.xlu0 %1097 }
 0x254   : > { %1349 = vrot.lane.b32.xlu0 %v6011_v55, %s4160_s10  ;;  %1351 = vrot.lane.b32.xlu1 %v6016_v44, %s4160_s10 }
 0x256   : > { %v6028_v30 = vpop.permute.xlu1 %1193  ;;  %v6030_v20 = vpop.permute.xlu0 %1144 }
 0x258   : > { %1001 = vrot.lane.b32.xlu0 %v6023_v19, %s4163_s30  ;;  %1003 = vrot.lane.b32.xlu1 %v6026_v17, %s4163_s30 }
 0x25a   : > { %v1380_v45 = vpop.permute.xlu1 %1379  ;;  %v6036_v50 = vpop.permute.xlu0 %1195 }
 0x25c   : > { %1048 = vrot.lane.b32.xlu0 %v5944_v15, %s4164_s8  ;;  %1050 = vrot.lane.b32.xlu1 %v5994_v46, %s4164_s8 }
 0x25e   : > { %v1414_v36 = vpop.permute.xlu1 %1413  ;;  %v6042_v61 = vpop.permute.xlu0 %1381 }
 0x25f   : > { %9138 = vst [vmem:[#allocation154_spill] sm:$0xff] %v6042_v61  ;;  %v1715_v22 = vsel %vm763_vm6, %v1412_v6, %v1414_v36  ;;  %v1700_v52 = vsel %vm763_vm6, %v1380_v45, %v6042_v61  ;;  %v1699_v6 = vsel %vm763_vm6, %v5950_v21, %v1380_v45 }
 0x260   : > { %1099 = vrot.lane.b32.xlu0 %v5944_v15, %s4165_s29  ;;  %1101 = vrot.lane.b32.xlu1 %v5994_v46, %s4165_s29  ;;  %v2741_v53 = vmul.f32 %v2309_v40, %v1715_v22  ;;  %v2726_v61 = vmul.f32 %v2294_v5, %v1700_v52  ;;  %v2725_v21 = vmul.f32 %v2293_v10, %v1699_v6  ;;  %v2324_v5 = vld [vmem:[%s8787_s3 + $0xa08] sm:$0xff] }
 0x261   : > { %v952_v40 = vsel %vm946_vm8, %v5678_v60, %v5688_v54  ;;  %v1019_v10 = vsel %vm1013_vm9, %v5722_v25, %v5828_v28 }
 0x262   : > { %v1444_v34 = vpop.permute.xlu1 %1443  ;;  %v6060_v35 = vpop.permute.xlu0 %1415  ;;  %v3759_v22 = vpack.c.bf16 %v2741_v53, %v2725_v21 }
 0x263   : > { %9139 = vst [vmem:[#allocation155_spill] sm:$0xff] %v6060_v35  ;;  %v1716_v51 = vsel %vm763_vm6, %v1414_v36, %v6060_v35 }
 0x264   : > { %v2742_v26 = vmul.f32 %v2310_v13, %v1716_v51  ;;  %1353 = vrot.lane.b32.xlu0 %v6072_v31, %s4160_s10  ;;  %1355 = vrot.lane.b32.xlu1 %v6077_v14, %s4160_s10  ;;  %v1018_v13 = vsel %vm1013_vm9, %v5724_v39, %v5722_v25  ;;  %v2339_v39 = vld [vmem:[%s8787_s3 + $0xa80] sm:$0xff] }
 0x266   : > { %v1478_v45 = vpop.permute.xlu1 %1477  ;;  %v1446_v36 = vpop.permute.xlu0 %1445  ;;  %v3757_v35 = vpack.c.bf16 %v2742_v26, %v2726_v61 }
 0x267   : > { %v1730_v52 = vsel %vm763_vm6, %v1444_v34, %v1446_v36 }
 0x268   : > { %1383 = vrot.lane.b32.xlu0 %v951_v49, %s4160_s10  ;;  %1385 = vrot.lane.b32.xlu1 %v952_v40, %s4160_s10  ;;  %v2756_v6 = vmul.f32 %v2324_v5, %v1730_v52 }
 0x269   : > { %3758 = vmatprep.subr.bf16.mxu1 %v3757_v35  ;;  %v2323_v35 = vld [vmem:[%s8787_s3 + $0xa00] sm:$0xff] }
 0x26a   : > { %3760 = vmatpush1.bf16.msra.mxu1 %v3759_v22  ;;  %v1442_v26 = vpop.permute.xlu1 %1441  ;;  %v1480_v61 = vpop.permute.xlu0 %1479 }
 0x26b   : > { %v1746_v60 = vsel %vm763_vm6, %v1478_v45, %v1480_v61  ;;  %v1729_v42 = vsel %vm763_vm6, %v1442_v26, %v1444_v34 }
 0x26c   : > { %v2772_v51 = vmul.f32 %v2340_v32, %v1746_v60  ;;  %1417 = vrot.lane.b32.xlu0 %v1018_v13, %s4160_s10  ;;  %1419 = vrot.lane.b32.xlu1 %v1019_v10, %s4160_s10  ;;  %v2755_v40 = vmul.f32 %v2323_v35, %v1729_v42  ;;  %v2341_v35 = vld [vmem:[%s8787_s3 + $0xa90] sm:$0xff] }
 0x26e   : > { %v6114_v53 = vpop.permute.xlu1 %1146  ;;  %v1476_v21 = vpop.permute.xlu0 %1475  ;;  %v3709_v25 = vpack.c.bf16 %v2772_v51, %v2756_v6  ;;  %v954_v6 = vsel %vm946_vm8, %v5686_v27, %v5701_v3  ;;  %v953_v51 = vsel %vm946_vm8, %v5688_v54, %v5686_v27  ;;  %v2342_v27 = vld [vmem:[%s8787_s3 + $0xa98] sm:$0xff] }
 0x26f   : > { %v1745_v49 = vsel %vm763_vm6, %v1476_v21, %v1478_v45 }
 0x270   : > { %v2771_v22 = vmul.f32 %v2339_v39, %v1745_v49  ;;  %1052 = vrot.lane.b32.xlu0 %v6023_v19, %s4164_s8  ;;  %1054 = vrot.lane.b32.xlu1 %v6026_v17, %s4164_s8  ;;  %v2326_v39 = vld [vmem:[%s8787_s3 + $0xa18] sm:$0xff]  ;;  %v2325_v49 = vld [vmem:[%s8787_s3 + $0xa10] sm:$0xff] }
 0x271   : > { %3710 = vmatprep.subr.bf16.mxu0 %v3709_v25 }
 0x272   : > { %v6121_v34 = vpop.permute.xlu1 %1197  ;;  %v6123_v5 = vpop.permute.xlu0 %1148  ;;  %v3711_v52 = vpack.c.bf16 %v2771_v22, %v2755_v40  ;;  %v1021_v22 = vsel %vm1013_vm9, %v5850_v29, %v5865_v33 }
 0x273   : > { %9144 = vst [vmem:[#allocation156_spill] sm:$0xff] %v6123_v5 }
 0x274   : > { %1103 = vrot.lane.b32.xlu0 %v6023_v19, %s4165_s29  ;;  %1105 = vrot.lane.b32.xlu1 %v6026_v17, %s4165_s29 }
 0x275   : > { %3712 = vmatpush1.bf16.msra.mxu0 %v3711_v52  ;;  %v1020_v52 = vsel %vm1013_vm9, %v5828_v28, %v5850_v29  ;;  %v2356_v29 = vld [vmem:[%s8787_s3 + $0xb08] sm:$0xff] }
 0x276   : > { %v6129_v45 = vpop.permute.xlu1 %1244  ;;  %v6131_v32 = vpop.permute.xlu0 %1199 }
 0x277   : > { %9145 = vst [vmem:[#allocation157_spill] sm:$0xff] %v6131_v32 }
 0x278   : > { %1152 = vrot.lane.b32.xlu1 %v5994_v46, %s4166_s25  ;;  %1150 = vrot.lane.b32.xlu0 %v5944_v15, %s4166_s25 }
 0x27a   : > { %v1448_v26 = vpop.permute.xlu1 %1447  ;;  %v6137_v60 = vpop.permute.xlu0 %1246 }
 0x27c   : > { %1203 = vrot.lane.b32.xlu1 %v5994_v46, %s4167_s11  ;;  %1201 = vrot.lane.b32.xlu0 %v5944_v15, %s4167_s11 }
 0x27e   : > { %v1482_v13 = vpop.permute.xlu1 %1481  ;;  %v6143_v10 = vpop.permute.xlu0 %1449 }
 0x27f   : > { %9146 = vst [vmem:[#allocation158_spill] sm:$0xff] %v6143_v10  ;;  %v1747_v42 = vsel %vm763_vm6, %v1480_v61, %v1482_v13  ;;  %v1732_v21 = vsel %vm763_vm6, %v1448_v26, %v6143_v10  ;;  %v1731_v61 = vsel %vm763_vm6, %v1446_v36, %v1448_v26 }
 0x280   : > { %1389 = vrot.lane.b32.xlu1 %v954_v6, %s4160_s10  ;;  %1387 = vrot.lane.b32.xlu0 %v953_v51, %s4160_s10  ;;  %v2773_v6 = vmul.f32 %v2341_v35, %v1747_v42  ;;  %v2758_v51 = vmul.f32 %v2326_v39, %v1732_v21  ;;  %v2757_v10 = vmul.f32 %v2325_v49, %v1731_v61  ;;  %v2371_v49 = vld [vmem:[%s8787_s3 + $0xb80] sm:$0xff] }
 0x282   : > { %v1512_v54 = vpop.permute.xlu1 %1511  ;;  %v6165_v25 = vpop.permute.xlu0 %1483  ;;  %v3763_v28 = vpack.c.bf16 %v2773_v6, %v2757_v10  ;;  %v1120_v10 = vsel %vm1115_vm11, %v5747_v62, %v5875_v0 }
 0x283   : > { %9147 = vst [vmem:[#allocation159_spill] sm:$0xff] %v6165_v25  ;;  %v1748_v40 = vsel %vm763_vm6, %v1482_v13, %v6165_v25  ;;  %v1070_v13 = vsel %vm1064_vm10, %v5863_v43, %v5877_v41  ;;  %v1069_v25 = vsel %vm1064_vm10, %v5741_v1, %v5863_v43  ;;  %v1121_v43 = vsel %vm1115_vm11, %v5875_v0, %v5887_v56 }
 0x284   : > { %v2774_v14 = vmul.f32 %v2342_v27, %v1748_v40  ;;  %1423 = vrot.lane.b32.xlu1 %v1021_v22, %s4160_s10  ;;  %1421 = vrot.lane.b32.xlu0 %v1020_v52, %s4160_s10 }
 0x286   : > { %v1546_v36 = vpop.permute.xlu1 %1545  ;;  %v1514_v26 = vpop.permute.xlu0 %1513  ;;  %v3761_v3 = vpack.c.bf16 %v2774_v14, %v2758_v51  ;;  %v2372_v14 = vld [vmem:[%s8787_s3 + $0xb88] sm:$0xff] }
 0x287   : > { %v1762_v35 = vsel %vm763_vm6, %v1512_v54, %v1514_v26 }
 0x288   : > { %1453 = vrot.lane.b32.xlu1 %v1070_v13, %s4160_s10  ;;  %1451 = vrot.lane.b32.xlu0 %v1069_v25, %s4160_s10  ;;  %v2788_v21 = vmul.f32 %v2356_v29, %v1762_v35  ;;  %v2358_v35 = vld [vmem:[%s8787_s3 + $0xb18] sm:$0xff] }
 0x289   : > { %3762 = vmatprep.subr.bf16.mxu1 %v3761_v3  ;;  %v2355_v3 = vld [vmem:[%s8787_s3 + $0xb00] sm:$0xff] }
 0x28a   : > { %3764 = vmatpush1.bf16.msra.mxu1 %v3763_v28  ;;  %v1510_v42 = vpop.permute.xlu1 %1509  ;;  %v1548_v39 = vpop.permute.xlu0 %1547  ;;  %v2373_v28 = vld [vmem:[%s8787_s3 + $0xb90] sm:$0xff] }
 0x28b   : > { %v1778_v1 = vsel %vm763_vm6, %v1546_v36, %v1548_v39  ;;  %v1761_v25 = vsel %vm763_vm6, %v1510_v42, %v1512_v54  ;;  %v2374_v42 = vld [vmem:[%s8787_s3 + $0xb98] sm:$0xff] }
 0x28c   : > { %v2804_v27 = vmul.f32 %v2372_v14, %v1778_v1  ;;  %1487 = vrot.lane.b32.xlu1 %v1121_v43, %s4160_s10  ;;  %1485 = vrot.lane.b32.xlu0 %v1120_v10, %s4160_s10  ;;  %v2787_v22 = vmul.f32 %v2355_v3, %v1761_v25 }
 0x28e   : > { %v6212_v61 = vpop.permute.xlu1 %1248  ;;  %v1544_v40 = vpop.permute.xlu0 %1543  ;;  %v3713_v62 = vpack.c.bf16 %v2804_v27, %v2788_v21  ;;  %v1071_v21 = vsel %vm1064_vm10, %v5877_v41, %v5982_v63  ;;  %v1072_v27 = vsel %vm1064_vm10, %v5982_v63, %v5998_v16  ;;  %v1123_v41 = vsel %vm1115_vm11, %v5996_v11, %v6006_v59 }
 0x28f   : > { %v1777_v0 = vsel %vm763_vm6, %v1544_v40, %v1546_v36 }
 0x290   : > { %v2803_v52 = vmul.f32 %v2371_v49, %v1777_v0  ;;  %1156 = vrot.lane.b32.xlu1 %v6026_v17, %s4166_s25  ;;  %1154 = vrot.lane.b32.xlu0 %v6023_v19, %s4166_s25 }
 0x291   : > { %3714 = vmatprep.subr.bf16.mxu0 %v3713_v62 }
 0x292   : > { %v1516_v54 = vpop.permute.xlu1 %1515  ;;  %v6219_v6 = vpop.permute.xlu0 %1250  ;;  %v3715_v51 = vpack.c.bf16 %v2803_v52, %v2787_v22  ;;  %v1122_v22 = vsel %vm1115_vm11, %v5887_v56, %v5996_v11  ;;  %v2388_v52 = vld [vmem:[%s8787_s3 + $0xc08] sm:$0xff] }
 0x293   : > { %9148 = vst [vmem:[#allocation160_spill] sm:$0xff] %v6219_v6  ;;  %v2404_v56 = vld [vmem:[%s8787_s3 + $0xc88] sm:$0xff] }
 0x294   : > { %1207 = vrot.lane.b32.xlu1 %v6026_v17, %s4167_s11  ;;  %1205 = vrot.lane.b32.xlu0 %v6023_v19, %s4167_s11 }
 0x295   : > { %3716 = vmatpush1.bf16.msra.mxu0 %v3715_v51 }
 0x296   : > { %v1550_v36 = vpop.permute.xlu1 %1549  ;;  %v6225_v13 = vpop.permute.xlu0 %1517 }
 0x297   : > { %9149 = vst [vmem:[#allocation161_spill] sm:$0xff] %v6225_v13  ;;  %v1779_v29 = vsel %vm763_vm6, %v1548_v39, %v1550_v36  ;;  %v1764_v14 = vsel %vm763_vm6, %v1516_v54, %v6225_v13  ;;  %v1763_v39 = vsel %vm763_vm6, %v1514_v26, %v1516_v54 }
 0x298   : > { %1254 = vrot.lane.b32.xlu1 %v5994_v46, %s4168_s7  ;;  %1252 = vrot.lane.b32.xlu0 %v5944_v15, %s4168_s7  ;;  %v2357_v15 = vld [vmem:[%s8787_s3 + $0xb10] sm:$0xff]  ;;  %v2805_v3 = vmul.f32 %v2373_v28, %v1779_v29  ;;  %v2790_v25 = vmul.f32 %v2358_v35, %v1764_v14  ;;  %v1171_v28 = vsel %vm1166_vm12, %v5770_v23, %v6004_v24 }
 0x299   : > { %v2789_v40 = vmul.f32 %v2357_v15, %v1763_v39  ;;  %v1172_v29 = vsel %vm1166_vm12, %v6004_v24, %v6030_v20  ;;  %v1223_v23 = vsel %vm1217_vm13, %v6028_v30, %v6036_v50  ;;  %v2387_v24 = vld [vmem:[%s8787_s3 + $0xc00] sm:$0xff] }
 0x29a   : > { %v1580_v1 = vpop.permute.xlu1 %1579  ;;  %v6243_v43 = vpop.permute.xlu0 %1551 }
 0x29b   : > { %9150 = vst [vmem:[#allocation162_spill] sm:$0xff] %v6243_v43  ;;  %v1780_v10 = vsel %vm763_vm6, %v1550_v36, %v6243_v43  ;;  %v3767_v63 = vpack.c.bf16 %v2805_v3, %v2789_v40 }
 0x29c   : > { %v2806_v49 = vmul.f32 %v2374_v42, %v1780_v10  ;;  %1455 = vrot.lane.b32.xlu0 %v1071_v21, %s4160_s10  ;;  %1457 = vrot.lane.b32.xlu1 %v1072_v27, %s4160_s10  ;;  %v1222_v10 = vsel %vm1217_vm13, %v5777_v8, %v6028_v30  ;;  %v2403_v27 = vld [vmem:[%s8787_s3 + $0xc80] sm:$0xff] }
 0x29e   : > { %v1614_v26 = vpop.permute.xlu1 %1613  ;;  %v1582_v62 = vpop.permute.xlu0 %1581  ;;  %v3765_v0 = vpack.c.bf16 %v2806_v49, %v2790_v25 }
 0x29f   : > { %v1794_v54 = vsel %vm763_vm6, %v1580_v1, %v1582_v62 }
 0x2a0   : > { %1489 = vrot.lane.b32.xlu0 %v1122_v22, %s4160_s10  ;;  %1491 = vrot.lane.b32.xlu1 %v1123_v41, %s4160_s10  ;;  %v2820_v35 = vmul.f32 %v2388_v52, %v1794_v54  ;;  %v1173_v22 = vsel %vm1166_vm12, %v6030_v20, %v6114_v53  ;;  %v2405_v41 = vld [vmem:[%s8787_s3 + $0xc90] sm:$0xff]  ;;  %v2390_v52 = vld [vmem:[%s8787_s3 + $0xc18] sm:$0xff] }
 0x2a1   : > { %3766 = vmatprep.subr.bf16.mxu1 %v3765_v0 }
 0x2a2   : > { %3768 = vmatpush1.bf16.msra.mxu1 %v3767_v63  ;;  %v6274_v51 = vpop.permute.xlu1 %1297  ;;  %v1616_v11 = vpop.permute.xlu0 %1615 }
 0x2a3   : > { %v1810_v36 = vsel %vm763_vm6, %v1614_v26, %v1616_v11 }
 0x2a4   : > { %v2836_v14 = vmul.f32 %v2404_v56, %v1810_v36  ;;  %1519 = vrot.lane.b32.xlu0 %v1171_v28, %s4160_s10  ;;  %1521 = vrot.lane.b32.xlu1 %v1172_v29, %s4160_s10  ;;  %v1224_v29 = vsel %vm1217_vm13, %v6036_v50, %v6121_v34  ;;  %v2007_v50 = vld [vmem:[%s8787_s3 + $0x20] sm:$0xff] }
 0x2a6   : > { %v1578_v42 = vpop.permute.xlu1 %1577  ;;  %v6285_v15 = vpop.permute.xlu0 %1299  ;;  %v3717_v39 = vpack.c.bf16 %v2836_v14, %v2820_v35  ;;  %v1225_v35 = vsel %vm1217_vm13, %v6121_v34, %v6131_v32  ;;  %v2023_v14 = vld [vmem:[%s8787_s3 + $0xa0] sm:$0xff]  ;;  %v2024_v34 = vld [vmem:[%s8787_s3 + $0xa8] sm:$0xff]  ;;  %v9184_v32 = vld [vmem:[#allocation97_spill] sm:$0xff] }
 0x2a7   : > { %v1793_v21 = vsel %vm763_vm6, %v1578_v42, %v1580_v1 }
 0x2a8   : > { %1553 = vrot.lane.b32.xlu0 %v1222_v10, %s4160_s10  ;;  %1555 = vrot.lane.b32.xlu1 %v1223_v23, %s4160_s10  ;;  %v2819_v30 = vmul.f32 %v2387_v24, %v1793_v21  ;;  %v2008_v23 = vld [vmem:[%s8787_s3 + $0x28] sm:$0xff]  ;;  %v2026_v24 = vld [vmem:[%s8787_s3 + $0xb8] sm:$0xff] }
 0x2a9   : > { %3718 = vmatprep.subr.bf16.mxu0 %v3717_v39 }
 0x2aa   : > { %v1584_v8 = vpop.permute.xlu1 %1583  ;;  %v1612_v3 = vpop.permute.xlu0 %1611 }
 0x2ab   : > { %v1809_v25 = vsel %vm763_vm6, %v1612_v3, %v1614_v26  ;;  %v1174_v26 = vsel %vm1166_vm12, %v6114_v53, %v6123_v5  ;;  %v2406_v53 = vld [vmem:[%s8787_s3 + $0xc98] sm:$0xff]  ;;  %v1795_v36 = vsel %vm763_vm6, %v1582_v62, %v1584_v8  ;;  %v2025_v62 = vld [vmem:[%s8787_s3 + $0xb0] sm:$0xff] }
 0x2ac   : > { %v2835_v49 = vmul.f32 %v2403_v27, %v1809_v25  ;;  %1258 = vrot.lane.b32.xlu1 %v6026_v17, %s4168_s7  ;;  %1256 = vrot.lane.b32.xlu0 %v6023_v19, %s4168_s7  ;;  %v2010_v25 = vld [vmem:[%s8787_s3 + $0x38] sm:$0xff] }
 0x2ae   : > { %v1618_v40 = vpop.permute.xlu1 %1617  ;;  %v6307_v0 = vpop.permute.xlu0 %1585  ;;  %v3719_v1 = vpack.c.bf16 %v2835_v49, %v2819_v30  ;;  %v2009_v30 = vld [vmem:[%s8787_s3 + $0x30] sm:$0xff]  ;;  %v6374_v49 = vmul.f32 %v2023_v14, %v5514_v38  ;;  %v2167_v38 = vld [vmem:[%s8787_s3 + $0x520] sm:$0xff] }
 0x2af   : > { %9151 = vst [vmem:[#allocation163_spill] sm:$0xff] %v6307_v0  ;;  %v1811_v63 = vsel %vm763_vm6, %v1616_v11, %v1618_v40  ;;  %v1796_v20 = vsel %vm763_vm6, %v1584_v8, %v6307_v0  ;;  %v2389_v11 = vld [vmem:[%s8787_s3 + $0xc10] sm:$0xff]  ;;  %v9189_v0 = vld [vmem:[#allocation99_spill] sm:$0xff] }
 0x2b0   : > { %1523 = vrot.lane.b32.xlu0 %v1173_v22, %s4160_s10  ;;  %1525 = vrot.lane.b32.xlu1 %v1174_v26, %s4160_s10  ;;  %v2837_v42 = vmul.f32 %v2405_v41, %v1811_v63  ;;  %v2822_v39 = vmul.f32 %v2390_v52, %v1796_v20  ;;  %v2821_v21 = vmul.f32 %v2389_v11, %v1795_v36  ;;  %v4115_v22 = vld [vmem:[%s4219_s26 + $0x20] sm:$0xff]  ;;  %v4116_v63 = vld [vmem:[%s4219_s26 + $0x28] sm:$0xff] }
 0x2b1   : > { %3720 = vmatpush1.bf16.msra.mxu0 %v3719_v1  ;;  %v1274_v1 = vsel %vm1268_vm14, %v6129_v45, %v6137_v60  ;;  %v6383_v26 = vmul.f32 %v4115_v22, %v2007_v50  ;;  %v6386_v41 = vmul.f32 %v2024_v34, %v5466_v2  ;;  %v2440_v52 = vmul.f32 %v4116_v63, %v2008_v23  ;;  %v2419_v2 = vld [vmem:[%s8787_s3 + $0xd00] sm:$0xff]  ;;  %v6407_v11 = vld [vmem:[%s4219_s26 + $0x38] sm:$0xff]  ;;  %v2169_v14 = vld [vmem:[%s8787_s3 + $0x530] sm:$0xff] }
 0x2b2   : > { %v6329_v54 = vpop.permute.xlu1 %1301  ;;  %v6331_v56 = vpop.permute.xlu0 %1619  ;;  %v6398_v20 = vmul.f32 %v2026_v24, %v6011_v55  ;;  %v6410_v36 = vmul.f32 %v6407_v11, %v2010_v25  ;;  %v2170_v50 = vld [vmem:[%s8787_s3 + $0x538] sm:$0xff] }
 0x2b3   : > { %9152 = vst [vmem:[#allocation164_spill] sm:$0xff] %v6331_v56  ;;  %v1812_v28 = vsel %vm763_vm6, %v1618_v40, %v6331_v56  ;;  %v1273_v40 = vsel %vm1268_vm14, %v5803_v57, %v6129_v45  ;;  %v3771_v57 = vpack.c.bf16 %v2837_v42, %v2821_v21  ;;  %v6395_v45 = vmul.f32 %v2025_v62, %v5694_v47  ;;  %v4119_v21 = vld [vmem:[%s4219_s26 + $0x48] sm:$0xff]  ;;  %v9155_v63 = vld [vmem:[#allocation25_spill] sm:$0xff] }
 0x2b4   : > { %v2838_v10 = vmul.f32 %v2406_v53, %v1812_v28  ;;  %1557 = vrot.lane.b32.xlu0 %v1224_v29, %s4160_s10  ;;  %1559 = vrot.lane.b32.xlu1 %v1225_v35, %s4160_s10  ;;  %v2420_v53 = vld [vmem:[%s8787_s3 + $0xd08] sm:$0xff]  ;;  %v6413_v28 = vld [vmem:[%s4219_s26 + $0x30] sm:$0xff]  ;;  %v3775_v23 = vpack.c.bf16 %v6374_v49, %v6383_v26  ;;  %v3773_v25 = vpack.c.bf16 %v6386_v41, %v2440_v52  ;;  %v9154_v41 = vld [vmem:[#allocation21_spill] sm:$0xff] }
 0x2b5   : > { %v6416_v29 = vmul.f32 %v6413_v28, %v2009_v30  ;;  %v2168_v35 = vld [vmem:[%s8787_s3 + $0x528] sm:$0xff]  ;;  %v2421_v49 = vld [vmem:[%s8787_s3 + $0xd10] sm:$0xff]  ;;  %v4121_v56 = vld [vmem:[%s4219_s26 + $0x58] sm:$0xff] }
 0x2b6   : > { %v1648_v27 = vpop.permute.xlu1 %1647  ;;  %v6365_v8 = vpop.permute.xlu0 %1303  ;;  %v3769_v3 = vpack.c.bf16 %v2838_v10, %v2822_v39  ;;  %v6425_v10 = vmul.f32 %v2167_v38, %v5694_v47  ;;  %v6440_v30 = vmul.f32 %v2168_v35, %v6011_v55  ;;  %v2057_v55 = vld [vmem:[%s8787_s3 + $0x1b0] sm:$0xff]  ;;  %v9157_v35 = vld [vmem:[#allocation5_spill] sm:$0xff] }
 0x2b7   : > { %v9153_v26 = vld [vmem:[#allocation20_spill] sm:$0xff] }
 0x2b8   : > { %1587 = vrot.lane.b32.xlu0 %v1273_v40, %s4160_s10  ;;  %1589 = vrot.lane.b32.xlu1 %v1274_v1, %s4160_s10  ;;  %v6443_v40 = vmul.f32 %v2169_v14, %v6016_v44  ;;  %v3825_v1 = vpack.c.bf16 %v6398_v20, %v6410_v36  ;;  %v6461_v38 = vsel %vm495_vm2, %v9154_v41, %v9153_v26  ;;  %v2867_v36 = vld [vmem:[%s8785_s1] sm:$0xff]  ;;  %v9170_v44 = vld [vmem:[#allocation59_spill] sm:$0xff] }
 0x2b9   : > { %3770 = vmatprep.subr.bf16.mxu1 %v3769_v3  ;;  %v4120_v3 = vld [vmem:[%s4219_s26 + $0x50] sm:$0xff]  ;;  %v6469_v52 = vsel %vm495_vm2, %v9153_v26, %v9155_v63  ;;  %v6472_v20 = vmul.f32 %v2170_v50, %v6072_v31  ;;  %v6482_v14 = vsel %vm361_vm0, %v9142_v58, %v9157_v35  ;;  %v2042_v50 = vld [vmem:[%s8787_s3 + $0x138] sm:$0xff] }
 0x2ba   : > { %3772 = vmatpush1.bf16.msra.mxu1 %v3771_v57  ;;  %v1646_v42 = vpop.permute.xlu1 %1645  ;;  %v1650_v39 = vpop.permute.xlu0 %1649  ;;  %v2058_v57 = vld [vmem:[%s8787_s3 + $0x1b8] sm:$0xff]  ;;  %v9161_v31 = vld [vmem:[#allocation4_spill] sm:$0xff] }
 0x2bb   : > { %v1825_v34 = vsel %vm763_vm6, %v1646_v42, %v1648_v27  ;;  %v1826_v62 = vsel %vm763_vm6, %v1648_v27, %v1650_v39  ;;  %v2422_v27 = vld [vmem:[%s8787_s3 + $0xd18] sm:$0xff]  ;;  %v2041_v42 = vld [vmem:[%s8787_s3 + $0x130] sm:$0xff] }
 0x2bc   : > { %v2851_v24 = vmul.f32 %v2419_v2, %v1825_v34  ;;  %1621 = vrot.lane.b32.xlu0 %v4119_v21, %s4160_s10  ;;  %1623 = vrot.lane.b32.xlu1 %v4120_v3, %s4160_s10  ;;  %v2852_v47 = vmul.f32 %v2420_v53, %v1826_v62  ;;  %v2183_v34 = vld [vmem:[%s8787_s3 + $0x5a0] sm:$0xff]  ;;  %v9158_v62 = vld [vmem:[#allocation11_spill] sm:$0xff]  ;;  %v9159_v21 = vld [vmem:[#allocation9_spill] sm:$0xff] }
 0x2bd   : > { %v435_v3 = vsel %vm428_vm1, %v9159_v21, %v9158_v62  ;;  %v6509_v21 = vsel %vm361_vm0, %v9157_v35, %v9161_v31 }
 0x2be   : > { %v6474_v2 = vpop.permute.xlu1 %1653  ;;  %v1652_v53 = vpop.permute.xlu0 %1651  ;;  %2925 = vmatprep.subr.mxu0 %v2852_v47  ;;  %v9160_v47 = vld [vmem:[#allocation10_spill] sm:$0xff]  ;;  %9162 = vst [vmem:[#allocation21_spill] sm:$0xff] %v6509_v21  ;;  %v6526_v35 = vmul.f32 %v2041_v42, %v435_v3  ;;  %v9166_v42 = vld [vmem:[#allocation49_spill] sm:$0xff] }
 0x2bf   : > { %9156 = vst [vmem:[#allocation20_spill] sm:$0xff] %v6474_v2  ;;  %v436_v58 = vsel %vm428_vm1, %v9158_v62, %v9160_v47  ;;  %v1827_v26 = vsel %vm763_vm6, %v1650_v39, %v1652_v53  ;;  %v1828_v41 = vsel %vm763_vm6, %v1652_v53, %v6474_v2  ;;  %2926 = vmatpush1.msra.mxu0 %v2851_v24  ;;  %v2184_v39 = vld [vmem:[%s8787_s3 + $0x5a8] sm:$0xff] }
 0x2c0   : > { %1305 = vrot.lane.b32.xlu0 %v5994_v46, %s4154_s27  ;;  %1307 = vrot.lane.b32.xlu1 %v6023_v19, %s4154_s27  ;;  %v2854_v63 = vmul.f32 %v2422_v27, %v1828_v41  ;;  %v2853_v22 = vmul.f32 %v2421_v49, %v1827_v26  ;;  %v6515_v53 = vmul.f32 %v2057_v55, %v6461_v38  ;;  %v2090_v46 = vld [vmem:[%s8787_s3 + $0x2b8] sm:$0xff]  ;;  %v9163_v19 = vld [vmem:[#allocation63_spill] sm:$0xff]  ;;  %v9164_v27 = vld [vmem:[#allocation58_spill] sm:$0xff] }
 0x2c1   : > { %v2490_v24 = vmul.f32 %v2058_v57, %v6469_v52  ;;  %v6524_v49 = vsel %vm629_vm4, %v9164_v27, %v9163_v19  ;;  %3774 = vmatprep.subr.bf16.mxu0 %v3773_v25  ;;  %2938 = vmatmul.mubr.f32.vlgmr.msra.gmra.mrb[0].mxu0 %v2867_v36  ;;  %v2474_v62 = vmul.f32 %v2042_v50, %v436_v58  ;;  %v2186_v55 = vld [vmem:[%s8787_s3 + $0x5b8] sm:$0xff]  ;;  %v9165_v41 = vld [vmem:[#allocation48_spill] sm:$0xff] }
 0x2c2   : > { %v6528_v47 = vmul.f32 %v2183_v34, %v435_v3  ;;  %3776 = vmatpush1.bf16.msra.mxu0 %v3775_v23  ;;  %v6533_v57 = vpop.permute.xlu1 %999  ;;  %2996 = vmatprep.subr.mxu1 %v2854_v63  ;;  %v6535_v26 = vpop.permute.xlu0 %997  ;;  %v2074_v25 = vld [vmem:[%s8787_s3 + $0x238] sm:$0xff]  ;;  %v6543_v50 = vsel %vm562_vm3, %v9166_v42, %v9165_v41  ;;  %v9167_v34 = vld [vmem:[#allocation23_spill] sm:$0xff]  ;;  %v9168_v3 = vld [vmem:[#allocation22_spill] sm:$0xff]  ;;  %v1275_v23 = vsel %vm1268_vm14, %v6137_v60, %v6212_v61 }
 0x2c3   : > { %v9169_v19 = vpack.c.bf16 %v9167_v34, %v9168_v3  ;;  %2997 = vmatpush1.msra.mxu1 %v2853_v22  ;;  %v1276_v63 = vsel %vm1268_vm14, %v6212_v61, %v6219_v6  ;;  %v6554_v2 = vmul.f32 %v2184_v39, %v436_v58  ;;  %v2089_v41 = vld [vmem:[%s8787_s3 + $0x2b0] sm:$0xff]  ;;  %v6562_v34 = vsel %vm629_vm4, %v9170_v44, %v9164_v27  ;;  %v2152_v60 = vld [vmem:[%s8787_s3 + $0x4a8] sm:$0xff]  ;;  %v9171_v61 = vld [vmem:[#allocation29_spill] sm:$0xff] }
 0x2c4   : > { %v2522_v22 = vmul.f32 %v2090_v46, %v6524_v49  ;;  %1591 = vrot.lane.b32.xlu0 %v1275_v23, %s4160_s10  ;;  %1593 = vrot.lane.b32.xlu1 %v1276_v63, %s4160_s10  ;;  %v6571_v58 = vmul.f32 %v2186_v55, %v9171_v61  ;;  %v3831_v39 = vpack.c.bf16 %v6515_v53, %v6526_v35  ;;  %v2122_v46 = vld [vmem:[%s8787_s3 + $0x3b8] sm:$0xff]  ;;  %v2136_v55 = vld [vmem:[%s8787_s3 + $0x428] sm:$0xff]  ;;  %v9175_v53 = vld [vmem:[#allocation18_spill] sm:$0xff] }
 0x2c5   : > { %3778 = vmatprep.subr.bf16.mxu0 %v9169_v19  ;;  %3826 = vmatprep.subr.bf16.mxu1 %v3825_v1  ;;  %v3829_v44 = vpack.c.bf16 %v2490_v24, %v2474_v62  ;;  %v2506_v27 = vmul.f32 %v2074_v25, %v6543_v50  ;;  %v9172_v3 = vld [vmem:[#allocation101_spill] sm:$0xff]  ;;  %v9173_v19 = vld [vmem:[#allocation96_spill] sm:$0xff]  ;;  %v836_v1 = vsel %vm830_vm7, %v5517_v48, %v5506_v4  ;;  %v9178_v61 = vld [vmem:[#allocation47_spill] sm:$0xff] }
 0x2c6   : > { %3009 = vmatmul.mubr.f32.vlgmr.msra.gmra.mrb[0].mxu1 %v2867_v36  ;;  %v6582_v23 = vsel %vm763_vm6, %v9173_v19, %v9172_v3  ;;  %v9174_v36 = vld [vmem:[#allocation19_spill] sm:$0xff]  ;;  %v9177_v35 = vpack.c.bf16 %v6395_v45, %v6416_v29  ;;  %v6596_v62 = vpop.permute.xlu1 %1351  ;;  %v6598_v25 = vpop.permute.xlu0 %1349  ;;  %v2073_v63 = vld [vmem:[%s8787_s3 + $0x230] sm:$0xff]  ;;  %v6606_v3 = vsel %vm562_vm3, %v9178_v61, %v9166_v42  ;;  %v2151_v45 = vld [vmem:[%s8787_s3 + $0x4a0] sm:$0xff]  ;;  %3660 = vmatprep.mubr.msk.f32.mxu0 %vm2869_vm15, %v5937_v12 }
 0x2c7   : > { %v9176_v24 = vpack.c.bf16 %v9174_v36, %v9175_v53  ;;  %v2521_v36 = vmul.f32 %v2089_v41, %v6562_v34  ;;  %v9179_v29 = vld [vmem:[#allocation61_spill] sm:$0xff]  ;;  %v9180_v53 = vld [vmem:[#allocation60_spill] sm:$0xff]  ;;  %v9182_v42 = vld [vmem:[#allocation86_spill] sm:$0xff]  ;;  %3661 = vmatprep.mubr.msk.f32.mxu1 %vm2869_vm15, %v5937_v12 }
 0x2c8   : > { %3828 = vmatpush1.bf16.msra.mxu1 %v9177_v35  ;;  %v2584_v35 = vmul.f32 %v6407_v11, %v2152_v60  ;;  %v2106_v6 = vld [vmem:[%s8787_s3 + $0x338] sm:$0xff]  ;;  %v9183_v61 = vld [vmem:[#allocation87_spill] sm:$0xff]  ;;  %1625 = vrot.lane.b32.xlu0 %v4121_v56, %s4160_s10  ;;  %v3833_v11 = vpack.c.bf16 %v2522_v22, %v2506_v27  ;;  %v835_v56 = vsel %vm830_vm7, %v5471_v9, %v5517_v48 }
 0x2c9   : > { %3780 = vmatpush1.bf16.msra.mxu0 %v9176_v24  ;;  %3830 = vmatprep.subr.bf16.mxu1 %v3829_v44  ;;  %v9181_v24 = vpack.c.bf16 %v9179_v29, %v9180_v53  ;;  %v6622_v41 = vsel %vm696_vm5, %v9183_v61, %v9182_v42  ;;  %v6627_v44 = vsel %vm763_vm6, %v9184_v32, %v9173_v19  ;;  %v4122_v29 = vld [vmem:[%s4219_s26 + $0x60] sm:$0xff]  ;;  %v2154_v60 = vld [vmem:[%s8787_s3 + $0x4b8] sm:$0xff]  ;;  %v2121_v53 = vld [vmem:[%s8787_s3 + $0x3b0] sm:$0xff] }
 0x2ca   : > { %1627 = vrot.lane.b32.xlu1 %v4122_v29, %s4160_s10  ;;  %v2135_v32 = vld [vmem:[%s8787_s3 + $0x420] sm:$0xff]  ;;  %v2568_v19 = vmul.f32 %v2136_v55, %v836_v1  ;;  %v6647_v22 = vld [vmem:[%s4219_s26 + $0x88] sm:$0xff]  ;;  %v2505_v27 = vmul.f32 %v2073_v63, %v6606_v3  ;;  %v2138_v42 = vld [vmem:[%s8787_s3 + $0x438] sm:$0xff]  ;;  %v838_v9 = vsel %vm830_vm7, %v5552_v7, %v5542_v37  ;;  %v6664_v29 = vpop.permute.xlu1 %1003  ;;  %v6666_v12 = vpop.permute.xlu0 %1001  ;;  %v2538_v37 = vmul.f32 %v2106_v6, %v6622_v41 }
 0x2cb   : > { %3782 = vmatprep.subr.bf16.mxu0 %v9181_v24  ;;  %v2554_v24 = vmul.f32 %v2122_v46, %v6582_v23  ;;  %v2583_v46 = vmul.f32 %v6413_v28, %v2151_v45  ;;  %v9185_v48 = vld [vmem:[#allocation57_spill] sm:$0xff]  ;;  %v9186_v55 = vld [vmem:[#allocation56_spill] sm:$0xff]  ;;  %v2553_v43 = vmul.f32 %v2121_v53, %v6627_v44  ;;  %v2567_v13 = vmul.f32 %v2135_v32, %v835_v56  ;;  %v9192_v56 = vld [vmem:[#allocation95_spill] sm:$0xff] }
 0x2cc   : > { %v9187_v1 = vpack.c.bf16 %v9185_v48, %v9186_v55  ;;  %3832 = vmatpush1.bf16.msra.mxu1 %v3831_v39  ;;  %v2105_v28 = vld [vmem:[%s8787_s3 + $0x330] sm:$0xff]  ;;  %v9188_v63 = vld [vmem:[#allocation85_spill] sm:$0xff]  ;;  %v9190_v48 = vld [vmem:[#allocation98_spill] sm:$0xff]  ;;  %v3835_v5 = vpack.c.bf16 %v2521_v36, %v2505_v27  ;;  %1309 = vrot.lane.b32.xlu0 %v6026_v17, %s4154_s27  ;;  %v2570_v36 = vmul.f32 %v2138_v42, %v838_v9 }
 0x2cd   : > { %v6674_v45 = vsel %vm696_vm5, %v9188_v63, %v9183_v61  ;;  %3834 = vmatprep.subr.bf16.mxu1 %v3833_v11  ;;  %v9191_v55 = vpack.c.bf16 %v9189_v0, %v9190_v48  ;;  %v6681_v39 = vld [vmem:[%s4219_s26 + $0x48] sm:$0xff]  ;;  %v2153_v61 = vld [vmem:[%s8787_s3 + $0x4b0] sm:$0xff]  ;;  %v837_v0 = vsel %vm830_vm7, %v5506_v4, %v5552_v7  ;;  %v3837_v11 = vpack.c.bf16 %v2554_v24, %v2538_v37  ;;  %v9193_v27 = vld [vmem:[#allocation94_spill] sm:$0xff] }
 0x2ce   : > { %3784 = vmatpush1.bf16.msra.mxu0 %v9187_v1  ;;  %v2586_v1 = vmul.f32 %v6681_v39, %v2154_v60  ;;  %1311 = vrot.lane.b32.xlu1 %v6647_v22, %s4154_s27  ;;  %v2137_v6 = vld [vmem:[%s8787_s3 + $0x430] sm:$0xff]  ;;  %v3789_v60 = vpack.c.bf16 %v2584_v35, %v2568_v19  ;;  %v2216_v17 = vld [vmem:[%s8787_s3 + $0x6a8] sm:$0xff]  ;;  %v2537_v32 = vmul.f32 %v2105_v28, %v6674_v45  ;;  %v6708_v4 = vpop.permute.xlu1 %1050  ;;  %v6710_v7 = vpop.permute.xlu0 %1048  ;;  %v2199_v24 = vld [vmem:[%s8787_s3 + $0x620] sm:$0xff] }
 0x2cf   : > { %3786 = vmatprep.subr.bf16.mxu0 %v9191_v55  ;;  %v2185_v53 = vld [vmem:[%s8787_s3 + $0x5b0] sm:$0xff]  ;;  %v9194_v63 = vpack.c.bf16 %v9192_v56, %v9193_v27  ;;  %v3793_v37 = vpack.c.bf16 %v6554_v2, %v6440_v30  ;;  %v3795_v35 = vpack.c.bf16 %v6528_v47, %v6425_v10  ;;  %v2215_v19 = vld [vmem:[%s8787_s3 + $0x6a0] sm:$0xff]  ;;  %v1324_v10 = vsel %vm361_vm0, %v5830_v18, %v6274_v51  ;;  %v2200_v2 = vld [vmem:[%s8787_s3 + $0x628] sm:$0xff] }
 0x2d0   : > { %3836 = vmatpush1.bf16.msra.mxu1 %v3835_v5  ;;  %v2217_v5 = vld [vmem:[%s8787_s3 + $0x6b0] sm:$0xff]  ;;  %v6726_v42 = vld [vmem:[%s4219_s26 + $0x40] sm:$0xff]  ;;  %v1325_v30 = vsel %vm361_vm0, %v6274_v51, %v6285_v15  ;;  %v3839_v47 = vpack.c.bf16 %v2553_v43, %v2537_v32  ;;  %v3791_v28 = vpack.c.bf16 %v2583_v46, %v2567_v13  ;;  %v2569_v48 = vmul.f32 %v2137_v6, %v837_v0  ;;  %v2202_v6 = vld [vmem:[%s8787_s3 + $0x638] sm:$0xff] }
 0x2d1   : > { %v2585_v9 = vmul.f32 %v6726_v42, %v2153_v61  ;;  %3838 = vmatprep.subr.bf16.mxu1 %v3837_v11  ;;  %1655 = vrot.lane.b32.xlu0 %v1324_v10, %s4160_s10  ;;  %v9195_v55 = vld [vmem:[#allocation24_spill] sm:$0xff]  ;;  %v2648_v51 = vmul.f32 %v2216_v17, %v6543_v50  ;;  %v2218_v11 = vld [vmem:[%s8787_s3 + $0x6b8] sm:$0xff]  ;;  %v3841_v43 = vpack.c.bf16 %v2586_v1, %v2570_v36  ;;  %v2248_v50 = vld [vmem:[%s8787_s3 + $0x7a8] sm:$0xff] }
 0x2d2   : > { %3788 = vmatpush1.bf16.msra.mxu0 %v9194_v63  ;;  %1657 = vrot.lane.b32.xlu1 %v1325_v30, %s4160_s10  ;;  %v6741_v61 = vmul.f32 %v2185_v53, %v9195_v55  ;;  %v2201_v18 = vld [vmem:[%s8787_s3 + $0x630] sm:$0xff]  ;;  %v3845_v13 = vpack.c.bf16 %v6571_v58, %v6472_v20  ;;  %v2631_v46 = vmul.f32 %v2199_v24, %v6461_v38  ;;  %v6763_v1 = vpop.permute.xlu1 %1101  ;;  %v6765_v20 = vpop.permute.xlu0 %1099  ;;  %v9197_v36 = vld [vmem:[#allocation26_spill] sm:$0xff]  ;;  %v9198_v32 = vld [vmem:[#allocation67_spill] sm:$0xff] }
 0x2d3   : > { %3790 = vmatprep.subr.bf16.mxu0 %v3789_v60  ;;  %v2647_v0 = vmul.f32 %v2215_v19, %v6606_v3  ;;  %v9196_v60 = vld [vmem:[#allocation62_spill] sm:$0xff]  ;;  %v2632_v38 = vmul.f32 %v2200_v2, %v6469_v52  ;;  %v1326_v58 = vsel %vm361_vm0, %v6285_v15, %v6329_v54  ;;  %v1327_v3 = vsel %vm361_vm0, %v6329_v54, %v6365_v8  ;;  %v2232_v52 = vld [vmem:[%s8787_s3 + $0x728] sm:$0xff]  ;;  %v9199_v15 = vld [vmem:[#allocation32_spill] sm:$0xff] }
 0x2d4   : > { %v6758_v53 = vmul.f32 %v2217_v5, %v9196_v60  ;;  %3840 = vmatpush1.bf16.msra.mxu1 %v3839_v47  ;;  %v6775_v17 = vmul.f32 %v2201_v18, %v9197_v36  ;;  %v2650_v56 = vmul.f32 %v2218_v11, %v9198_v32  ;;  %v2247_v27 = vld [vmem:[%s8787_s3 + $0x7a0] sm:$0xff]  ;;  %v3843_v63 = vpack.c.bf16 %v2585_v9, %v2569_v48  ;;  %v2249_v19 = vld [vmem:[%s8787_s3 + $0x7b0] sm:$0xff]  ;;  %v2234_v18 = vld [vmem:[%s8787_s3 + $0x738] sm:$0xff] }
 0x2d5   : > { %3842 = vmatprep.subr.bf16.mxu1 %v3841_v43  ;;  %1659 = vrot.lane.b32.xlu0 %v1326_v58, %s4160_s10  ;;  %v2634_v54 = vmul.f32 %v2202_v6, %v9199_v15  ;;  %v2680_v24 = vmul.f32 %v2248_v50, %v6622_v41  ;;  %v3797_v5 = vpack.c.bf16 %v2648_v51, %v2632_v38  ;;  %v6795_v10 = vld [vmem:[%s4219_s26 + $0x90] sm:$0xff]  ;;  %v2250_v41 = vld [vmem:[%s8787_s3 + $0x7b8] sm:$0xff]  ;;  %v2279_v11 = vld [vmem:[%s8787_s3 + $0x8a0] sm:$0xff] }
 0x2d6   : > { %3792 = vmatpush1.bf16.msra.mxu0 %v3791_v28  ;;  %1661 = vrot.lane.b32.xlu1 %v1327_v3, %s4160_s10  ;;  %v3847_v9 = vpack.c.bf16 %v6741_v61, %v6443_v40  ;;  %v3799_v30 = vpack.c.bf16 %v2647_v0, %v2631_v46  ;;  %v3851_v2 = vpack.c.bf16 %v6758_v53, %v6775_v17  ;;  %v2233_v47 = vld [vmem:[%s8787_s3 + $0x730] sm:$0xff]  ;;  %v2280_v28 = vld [vmem:[%s8787_s3 + $0x8a8] sm:$0xff]  ;;  %v6813_v48 = vpop.permute.xlu1 %1355  ;;  %v1354_v55 = vpop.permute.xlu0 %1353  ;;  %v9204_v58 = vld [vmem:[#allocation70_spill] sm:$0xff] }
 0x2d7   : > { %3794 = vmatprep.subr.bf16.mxu0 %v3793_v37  ;;  %v2231_v37 = vld [vmem:[%s8787_s3 + $0x720] sm:$0xff]  ;;  %v1686_v40 = vsel %vm763_vm6, %v6598_v25, %v6596_v62  ;;  %v2664_v61 = vmul.f32 %v2232_v52, %v6524_v49  ;;  %v2679_v51 = vmul.f32 %v2247_v27, %v6674_v45  ;;  %v9200_v43 = vld [vmem:[#allocation152_spill] sm:$0xff]  ;;  %v2264_v0 = vld [vmem:[%s8787_s3 + $0x828] sm:$0xff]  ;;  %v3849_v45 = vpack.c.bf16 %v2650_v56, %v2634_v54 }
 0x2d8   : > { %3844 = vmatpush1.bf16.msra.mxu1 %v3843_v63  ;;  %v2663_v46 = vmul.f32 %v2231_v37, %v6562_v34  ;;  %v9201_v6 = vld [vmem:[#allocation100_spill] sm:$0xff]  ;;  %v2263_v34 = vld [vmem:[%s8787_s3 + $0x820] sm:$0xff]  ;;  %v2712_v50 = vmul.f32 %v2280_v28, %v1686_v40  ;;  %v2666_v3 = vmul.f32 %v2234_v18, %v9204_v58  ;;  %v2282_v17 = vld [vmem:[%s8787_s3 + $0x8b8] sm:$0xff]  ;;  %v1688_v32 = vsel %vm763_vm6, %v1354_v55, %v6813_v48 }
 0x2d9   : > { %3846 = vmatprep.subr.bf16.mxu1 %v3845_v13  ;;  %v2681_v49 = vmul.f32 %v2249_v19, %v9201_v6  ;;  %1005 = vrot.lane.b32.xlu0 %v6647_v22, %s4163_s30  ;;  %v9202_v60 = vld [vmem:[#allocation64_spill] sm:$0xff]  ;;  %v3801_v38 = vpack.c.bf16 %v2680_v24, %v2664_v61  ;;  %v2696_v63 = vmul.f32 %v2264_v0, %v6582_v23  ;;  %v2266_v15 = vld [vmem:[%s8787_s3 + $0x838] sm:$0xff]  ;;  %v2295_v24 = vld [vmem:[%s8787_s3 + $0x920] sm:$0xff] }
 0x2da   : > { %3796 = vmatpush1.bf16.msra.mxu0 %v3795_v35  ;;  %v1685_v35 = vsel %vm763_vm6, %v9200_v43, %v6598_v25  ;;  %1007 = vrot.lane.b32.xlu1 %v6795_v10, %s4163_s30  ;;  %v2665_v53 = vmul.f32 %v2233_v47, %v9202_v60  ;;  %v9203_v25 = vld [vmem:[#allocation105_spill] sm:$0xff]  ;;  %v6846_v56 = vpop.permute.xlu1 %1385  ;;  %v1384_v52 = vpop.permute.xlu0 %1383  ;;  %v3803_v27 = vpack.c.bf16 %v2679_v51, %v2663_v46  ;;  %v2281_v54 = vld [vmem:[%s8787_s3 + $0x8b0] sm:$0xff]  ;;  %v2312_v28 = vld [vmem:[%s8787_s3 + $0x9a8] sm:$0xff] }
 0x2db   : > { %3798 = vmatprep.subr.bf16.mxu0 %v3797_v5  ;;  %v2682_v13 = vmul.f32 %v2250_v41, %v9203_v25  ;;  %v2711_v36 = vmul.f32 %v2279_v11, %v1685_v35  ;;  %v1687_v37 = vsel %vm763_vm6, %v6596_v62, %v1354_v55  ;;  %v2695_v19 = vmul.f32 %v2263_v34, %v6627_v44  ;;  %v2296_v5 = vld [vmem:[%s8787_s3 + $0x928] sm:$0xff]  ;;  %v2311_v62 = vld [vmem:[%s8787_s3 + $0x9a0] sm:$0xff]  ;;  %v6879_v55 = vld [vmem:[%s4219_s26 + $0x98] sm:$0xff] }
 0x2dc   : > { %3848 = vmatpush1.bf16.msra.mxu1 %v3847_v9  ;;  %v3855_v23 = vpack.c.bf16 %v2681_v49, %v2665_v53  ;;  %v9205_v9 = vld [vmem:[#allocation154_spill] sm:$0xff]  ;;  %v2714_v47 = vmul.f32 %v2282_v17, %v1688_v32  ;;  %v1702_v44 = vsel %vm763_vm6, %v1384_v52, %v6846_v56  ;;  %v3805_v40 = vpack.c.bf16 %v2712_v50, %v2696_v63  ;;  %v9206_v18 = vld [vmem:[#allocation108_spill] sm:$0xff]  ;;  %v9207_v0 = vld [vmem:[#allocation155_spill] sm:$0xff] }
 0x2dd   : > { %3850 = vmatprep.subr.bf16.mxu1 %v3849_v45  ;;  %1357 = vrot.lane.b32.xlu0 %v6482_v14, %s4160_s10  ;;  %v3853_v41 = vpack.c.bf16 %v2682_v13, %v2666_v3  ;;  %v6882_v61 = vld [vmem:[%s4219_s26 + $0xa0] sm:$0xff]  ;;  %v2698_v51 = vmul.f32 %v2266_v15, %v9206_v18  ;;  %v3807_v11 = vpack.c.bf16 %v2711_v36, %v2695_v19  ;;  %v2265_v6 = vld [vmem:[%s8787_s3 + $0x830] sm:$0xff]  ;;  %v9211_v15 = vld [vmem:[#allocation7_spill] sm:$0xff] }
 0x2de   : > { %3800 = vmatpush1.bf16.msra.mxu0 %v3799_v30  ;;  %v1701_v30 = vsel %vm763_vm6, %v9205_v9, %v1384_v52  ;;  %1359 = vrot.lane.b32.xlu1 %v6509_v21, %s4160_s10  ;;  %v2713_v43 = vmul.f32 %v2281_v54, %v1687_v37  ;;  %v1420_v35 = vpop.permute.xlu1 %1419  ;;  %v1418_v46 = vpop.permute.xlu0 %1417  ;;  %v2728_v53 = vmul.f32 %v2296_v5, %v1702_v44  ;;  %v9208_v34 = vld [vmem:[#allocation102_spill] sm:$0xff]  ;;  %v9215_v5 = vld [vmem:[#allocation144_spill] sm:$0xff]  ;;  %v9216_v9 = vld [vmem:[#allocation145_spill] sm:$0xff] }
 0x2df   : > { %3802 = vmatprep.subr.bf16.mxu0 %v3801_v38  ;;  %v2727_v49 = vmul.f32 %v2295_v24, %v1701_v30  ;;  %v1717_v45 = vsel %vm763_vm6, %v9207_v0, %v1418_v46  ;;  %v1718_v60 = vsel %vm763_vm6, %v1418_v46, %v1420_v35  ;;  %v2697_v50 = vmul.f32 %v2265_v6, %v9208_v34  ;;  %v9213_v37 = vld [vmem:[#allocation6_spill] sm:$0xff]  ;;  %v9217_v30 = vld [vmem:[#allocation147_spill] sm:$0xff] }
 0x2e0   : > { %3852 = vmatpush1.bf16.msra.mxu1 %v3851_v2  ;;  %v2743_v25 = vmul.f32 %v2311_v62, %v1717_v45  ;;  %v2744_v13 = vmul.f32 %v2312_v28, %v1718_v60  ;;  %v3857_v2 = vpack.c.bf16 %v2714_v47, %v2698_v51  ;;  %v6919_v54 = vsel %vm361_vm0, %v9161_v31, %v9211_v15  ;;  %v2298_v51 = vld [vmem:[%s8787_s3 + $0x938] sm:$0xff]  ;;  %v9218_v34 = vld [vmem:[#allocation158_spill] sm:$0xff] }
 0x2e1   : > { %3854 = vmatprep.subr.bf16.mxu1 %v3853_v41  ;;  %1009 = vrot.lane.b32.xlu0 %v6879_v55, %s4163_s30  ;;  %v3859_v17 = vpack.c.bf16 %v2713_v43, %v2697_v50  ;;  %9212 = vst [vmem:[#allocation11_spill] sm:$0xff] %v6919_v54  ;;  %v6924_v24 = vsel %vm361_vm0, %v9211_v15, %v9213_v37  ;;  %v2344_v15 = vld [vmem:[%s8787_s3 + $0xaa8] sm:$0xff] }
 0x2e2   : > { %3804 = vmatpush1.bf16.msra.mxu0 %v3803_v27  ;;  %1011 = vrot.lane.b32.xlu1 %v6882_v61, %s4163_s30  ;;  %v3811_v38 = vpack.c.bf16 %v2743_v25, %v2727_v49  ;;  %v6896_v58 = vpop.permute.xlu1 %1054  ;;  %v6898_v3 = vpop.permute.xlu0 %1052  ;;  %v3809_v36 = vpack.c.bf16 %v2744_v13, %v2728_v53  ;;  %9214 = vst [vmem:[#allocation9_spill] sm:$0xff] %v6924_v24 }
 0x2e3   : > { %3806 = vmatprep.subr.bf16.mxu0 %v3805_v40  ;;  %9209 = vst [vmem:[#allocation25_spill] sm:$0xff] %v6896_v58  ;;  %v955_v31 = vsel %vm946_vm8, %v9216_v9, %v9215_v5  ;;  %v956_v62 = vsel %vm946_vm8, %v9215_v5, %v9217_v30  ;;  %v1023_v41 = vsel %vm1013_vm9, %v6535_v26, %v6533_v57  ;;  %v2297_v40 = vld [vmem:[%s8787_s3 + $0x930] sm:$0xff] }
 0x2e4   : > { %3856 = vmatpush1.bf16.msra.mxu1 %v3855_v23  ;;  %v1022_v28 = vsel %vm1013_vm9, %v5865_v33, %v6535_v26  ;;  %v2313_v33 = vld [vmem:[%s8787_s3 + $0x9b0] sm:$0xff]  ;;  %v2314_v26 = vld [vmem:[%s8787_s3 + $0x9b8] sm:$0xff] }
 0x2e5   : > { %3858 = vmatprep.subr.bf16.mxu1 %v3857_v2  ;;  %1056 = vrot.lane.b32.xlu0 %v6647_v22, %s4164_s8 }
 0x2e6   : > { %3808 = vmatpush1.bf16.msra.mxu0 %v3807_v11  ;;  %1058 = vrot.lane.b32.xlu1 %v6795_v10, %s4164_s8  ;;  %v6904_v32 = vpop.permute.xlu1 %1105  ;;  %v6906_v52 = vpop.permute.xlu0 %1103 }
 0x2e7   : > { %3810 = vmatprep.subr.bf16.mxu0 %v3809_v36  ;;  %9210 = vst [vmem:[#allocation5_spill] sm:$0xff] %v6904_v32 }
 0x2e8   : > { %3860 = vmatpush1.bf16.msra.mxu1 %v3859_v17  ;;  %v2343_v17 = vld [vmem:[%s8787_s3 + $0xaa0] sm:$0xff] }
 0x2e9   : > { %1107 = vrot.lane.b32.xlu0 %v6647_v22, %s4165_s29 }
 0x2ea   : > { %3812 = vmatpush1.bf16.msra.mxu0 %v3811_v38  ;;  %1109 = vrot.lane.b32.xlu1 %v6795_v10, %s4165_s29  ;;  %v6912_v27 = vpop.permute.xlu1 %1152  ;;  %v6914_v63 = vpop.permute.xlu0 %1150  ;;  %v2328_v38 = vld [vmem:[%s8787_s3 + $0xa28] sm:$0xff] }
 0x2ed   : > { %1361 = vrot.lane.b32.xlu0 %v6919_v54, %s4160_s10 }
 0x2ee   : > { %1363 = vrot.lane.b32.xlu1 %v6924_v24, %s4160_s10  ;;  %v6930_v23 = vpop.permute.xlu1 %1203  ;;  %v6932_v19 = vpop.permute.xlu0 %1201 }
 0x2f1   : > { %1391 = vrot.lane.b32.xlu0 %v955_v31, %s4160_s10 }
 0x2f2   : > { %1393 = vrot.lane.b32.xlu1 %v956_v62, %s4160_s10  ;;  %v6942_v47 = vpop.permute.xlu1 %1389  ;;  %v1388_v44 = vpop.permute.xlu0 %1387  ;;  %v9219_v62 = vld [vmem:[#allocation159_spill] sm:$0xff] }
 0x2f3   : > { %v1703_v18 = vsel %vm763_vm6, %v6846_v56, %v1388_v44  ;;  %v1704_v11 = vsel %vm763_vm6, %v1388_v44, %v6942_v47 }
 0x2f4   : > { %v2729_v46 = vmul.f32 %v2297_v40, %v1703_v18  ;;  %v2730_v0 = vmul.f32 %v2298_v51, %v1704_v11 }
 0x2f5   : > { %1425 = vrot.lane.b32.xlu0 %v1022_v28, %s4160_s10 }
 0x2f6   : > { %1427 = vrot.lane.b32.xlu1 %v1023_v41, %s4160_s10  ;;  %v6968_v56 = vpop.permute.xlu1 %1423  ;;  %v1422_v43 = vpop.permute.xlu0 %1421 }
 0x2f7   : > { %v1719_v6 = vsel %vm763_vm6, %v1420_v35, %v1422_v43  ;;  %v1720_v49 = vsel %vm763_vm6, %v1422_v43, %v6968_v56  ;;  %v2327_v35 = vld [vmem:[%s8787_s3 + $0xa20] sm:$0xff] }
 0x2f8   : > { %v2745_v45 = vmul.f32 %v2313_v33, %v1719_v6  ;;  %v2746_v60 = vmul.f32 %v2314_v26, %v1720_v49  ;;  %v9222_v6 = vld [vmem:[#allocation149_spill] sm:$0xff]  ;;  %v9223_v49 = vld [vmem:[#allocation146_spill] sm:$0xff] }
 0x2f9   : > { %1060 = vrot.lane.b32.xlu0 %v6879_v55, %s4164_s8 }
 0x2fa   : > { %1062 = vrot.lane.b32.xlu1 %v6882_v61, %s4164_s8  ;;  %v3863_v53 = vpack.c.bf16 %v2745_v45, %v2729_v46  ;;  %v1454_v25 = vpop.permute.xlu1 %1453  ;;  %v1452_v13 = vpop.permute.xlu0 %1451  ;;  %v3861_v2 = vpack.c.bf16 %v2746_v60, %v2730_v0  ;;  %v958_v0 = vsel %vm946_vm8, %v9223_v49, %v9222_v6  ;;  %v957_v45 = vsel %vm946_vm8, %v9217_v30, %v9223_v49 }
 0x2fb   : > { %v1733_v50 = vsel %vm763_vm6, %v9218_v34, %v1452_v13  ;;  %v1734_v36 = vsel %vm763_vm6, %v1452_v13, %v1454_v25  ;;  %v1025_v13 = vsel %vm1013_vm9, %v6666_v12, %v6664_v29  ;;  %v1074_v34 = vsel %vm1064_vm10, %v6710_v7, %v6708_v4 }
 0x2fc   : > { %3862 = vmatprep.subr.bf16.mxu1 %v3861_v2  ;;  %v2759_v31 = vmul.f32 %v2327_v35, %v1733_v50  ;;  %v2760_v28 = vmul.f32 %v2328_v38, %v1734_v36  ;;  %v1024_v2 = vsel %vm1013_vm9, %v6533_v57, %v6666_v12  ;;  %v1073_v50 = vsel %vm1064_vm10, %v5998_v16, %v6710_v7  ;;  %v2329_v38 = vld [vmem:[%s8787_s3 + $0xa30] sm:$0xff]  ;;  %v2330_v12 = vld [vmem:[%s8787_s3 + $0xa38] sm:$0xff] }
 0x2fd   : > { %1111 = vrot.lane.b32.xlu0 %v6879_v55, %s4165_s29  ;;  %3864 = vmatpush1.bf16.msra.mxu1 %v3863_v53  ;;  %v2345_v16 = vld [vmem:[%s8787_s3 + $0xab0] sm:$0xff]  ;;  %v2346_v7 = vld [vmem:[%s8787_s3 + $0xab8] sm:$0xff] }
 0x2fe   : > { %1113 = vrot.lane.b32.xlu1 %v6882_v61, %s4165_s29  ;;  %v1488_v5 = vpop.permute.xlu1 %1487  ;;  %v1486_v9 = vpop.permute.xlu0 %1485 }
 0x2ff   : > { %v1749_v44 = vsel %vm763_vm6, %v9219_v62, %v1486_v9  ;;  %v1750_v41 = vsel %vm763_vm6, %v1486_v9, %v1488_v5 }
 0x300   : > { %v2775_v40 = vmul.f32 %v2343_v17, %v1749_v44  ;;  %v2776_v18 = vmul.f32 %v2344_v15, %v1750_v41  ;;  %v1125_v15 = vsel %vm1115_vm11, %v6765_v20, %v6763_v1  ;;  %v1124_v44 = vsel %vm1115_vm11, %v6006_v59, %v6765_v20  ;;  %v2360_v59 = vld [vmem:[%s8787_s3 + $0xb28] sm:$0xff] }
 0x301   : > { %1158 = vrot.lane.b32.xlu0 %v6647_v22, %s4166_s25 }
 0x302   : > { %1160 = vrot.lane.b32.xlu1 %v6795_v10, %s4166_s25  ;;  %v3815_v51 = vpack.c.bf16 %v2775_v40, %v2759_v31  ;;  %v7003_v11 = vpop.permute.xlu1 %1156  ;;  %v7005_v33 = vpop.permute.xlu0 %1154  ;;  %v3813_v26 = vpack.c.bf16 %v2776_v18, %v2760_v28 }
 0x303   : > { %9220 = vst [vmem:[#allocation10_spill] sm:$0xff] %v7003_v11 }
 0x304   : > { %3814 = vmatprep.subr.bf16.mxu0 %v3813_v26 }
 0x305   : > { %1209 = vrot.lane.b32.xlu0 %v6647_v22, %s4167_s11  ;;  %3816 = vmatpush1.bf16.msra.mxu0 %v3815_v51 }
 0x306   : > { %1211 = vrot.lane.b32.xlu1 %v6795_v10, %s4167_s11  ;;  %v7011_v43 = vpop.permute.xlu1 %1207  ;;  %v7013_v46 = vpop.permute.xlu0 %1205 }
 0x307   : > { %9221 = vst [vmem:[#allocation4_spill] sm:$0xff] %v7011_v43 }
 0x309   : > { %1395 = vrot.lane.b32.xlu0 %v957_v45, %s4160_s10 }
 0x30a   : > { %1397 = vrot.lane.b32.xlu1 %v958_v0, %s4160_s10  ;;  %v7023_v60 = vpop.permute.xlu1 %1254  ;;  %v7025_v53 = vpop.permute.xlu0 %1252  ;;  %v9226_v0 = vld [vmem:[#allocation161_spill] sm:$0xff] }
 0x30d   : > { %1429 = vrot.lane.b32.xlu0 %v1024_v2, %s4160_s10  ;;  %v2376_v2 = vld [vmem:[%s8787_s3 + $0xba8] sm:$0xff] }
 0x30e   : > { %1431 = vrot.lane.b32.xlu1 %v1025_v13, %s4160_s10  ;;  %v7035_v30 = vpop.permute.xlu1 %1457  ;;  %v1456_v35 = vpop.permute.xlu0 %1455  ;;  %v2375_v13 = vld [vmem:[%s8787_s3 + $0xba0] sm:$0xff] }
 0x30f   : > { %9224 = vst [vmem:[#allocation63_spill] sm:$0xff] %v7035_v30  ;;  %v1735_v57 = vsel %vm763_vm6, %v1454_v25, %v1456_v35  ;;  %v1736_v36 = vsel %vm763_vm6, %v1456_v35, %v7035_v30 }
 0x310   : > { %v2761_v9 = vmul.f32 %v2329_v38, %v1735_v57  ;;  %v2762_v41 = vmul.f32 %v2330_v12, %v1736_v36  ;;  %v9227_v38 = vld [vmem:[#allocation162_spill] sm:$0xff] }
 0x311   : > { %1459 = vrot.lane.b32.xlu0 %v1073_v50, %s4160_s10 }
 0x312   : > { %1461 = vrot.lane.b32.xlu1 %v1074_v34, %s4160_s10  ;;  %v7060_v25 = vpop.permute.xlu1 %1491  ;;  %v1490_v17 = vpop.permute.xlu0 %1489 }
 0x313   : > { %9225 = vst [vmem:[#allocation58_spill] sm:$0xff] %v7060_v25  ;;  %v1751_v31 = vsel %vm763_vm6, %v1488_v5, %v1490_v17  ;;  %v1752_v62 = vsel %vm763_vm6, %v1490_v17, %v7060_v25  ;;  %v2359_v5 = vld [vmem:[%s8787_s3 + $0xb20] sm:$0xff] }
 0x314   : > { %v2777_v28 = vmul.f32 %v2345_v16, %v1751_v31  ;;  %v2778_v40 = vmul.f32 %v2346_v7, %v1752_v62 }
 0x315   : > { %1493 = vrot.lane.b32.xlu0 %v1124_v44, %s4160_s10 }
 0x316   : > { %1495 = vrot.lane.b32.xlu1 %v1125_v15, %s4160_s10  ;;  %v3867_v18 = vpack.c.bf16 %v2777_v28, %v2761_v9  ;;  %v1522_v51 = vpop.permute.xlu1 %1521  ;;  %v1520_v26 = vpop.permute.xlu0 %1519  ;;  %v3865_v49 = vpack.c.bf16 %v2778_v40, %v2762_v41  ;;  %v1076_v41 = vsel %vm1064_vm10, %v6898_v3, %v6896_v58  ;;  %v1075_v28 = vsel %vm1064_vm10, %v6708_v4, %v6898_v3  ;;  %v2361_v40 = vld [vmem:[%s8787_s3 + $0xb30] sm:$0xff]  ;;  %v2378_v3 = vld [vmem:[%s8787_s3 + $0xbb8] sm:$0xff] }
 0x317   : > { %v1765_v45 = vsel %vm763_vm6, %v9226_v0, %v1520_v26  ;;  %v1766_v20 = vsel %vm763_vm6, %v1520_v26, %v1522_v51  ;;  %v2377_v4 = vld [vmem:[%s8787_s3 + $0xbb0] sm:$0xff] }
 0x318   : > { %3866 = vmatprep.subr.bf16.mxu1 %v3865_v49  ;;  %v2791_v50 = vmul.f32 %v2359_v5, %v1765_v45  ;;  %v2792_v36 = vmul.f32 %v2360_v59, %v1766_v20  ;;  %v1127_v5 = vsel %vm1115_vm11, %v6906_v52, %v6904_v32  ;;  %v1126_v20 = vsel %vm1115_vm11, %v6763_v1, %v6906_v52  ;;  %v2391_v1 = vld [vmem:[%s8787_s3 + $0xc20] sm:$0xff]  ;;  %v9232_v52 = vld [vmem:[#allocation163_spill] sm:$0xff] }
 0x319   : > { %1162 = vrot.lane.b32.xlu0 %v6879_v55, %s4166_s25  ;;  %3868 = vmatpush1.bf16.msra.mxu1 %v3867_v18 }
 0x31a   : > { %1164 = vrot.lane.b32.xlu1 %v6882_v61, %s4166_s25  ;;  %v1556_v35 = vpop.permute.xlu1 %1555  ;;  %v1554_v34 = vpop.permute.xlu0 %1553 }
 0x31b   : > { %v1781_v57 = vsel %vm763_vm6, %v9227_v38, %v1554_v34  ;;  %v1782_v12 = vsel %vm763_vm6, %v1554_v34, %v1556_v35 }
 0x31c   : > { %v2807_v16 = vmul.f32 %v2375_v13, %v1781_v57  ;;  %v2808_v7 = vmul.f32 %v2376_v2, %v1782_v12 }
 0x31d   : > { %1213 = vrot.lane.b32.xlu0 %v6879_v55, %s4167_s11 }
 0x31e   : > { %1215 = vrot.lane.b32.xlu1 %v6882_v61, %s4167_s11  ;;  %v3819_v17 = vpack.c.bf16 %v2807_v16, %v2791_v50  ;;  %v7099_v15 = vpop.permute.xlu1 %1258  ;;  %v7101_v9 = vpop.permute.xlu0 %1256  ;;  %v3817_v31 = vpack.c.bf16 %v2808_v7, %v2792_v36  ;;  %v9231_v36 = vld [vmem:[#allocation156_spill] sm:$0xff] }
 0x31f   : > { %9228 = vst [vmem:[#allocation48_spill] sm:$0xff] %v7099_v15  ;;  %v1175_v16 = vsel %vm1166_vm12, %v9231_v36, %v6914_v63  ;;  %v2394_v36 = vld [vmem:[%s8787_s3 + $0xc38] sm:$0xff] }
 0x320   : > { %3818 = vmatprep.subr.bf16.mxu0 %v3817_v31 }
 0x321   : > { %1260 = vrot.lane.b32.xlu0 %v6647_v22, %s4168_s7  ;;  %3820 = vmatpush1.bf16.msra.mxu0 %v3819_v17  ;;  %v2362_v22 = vld [vmem:[%s8787_s3 + $0xb38] sm:$0xff]  ;;  %v2392_v17 = vld [vmem:[%s8787_s3 + $0xc28] sm:$0xff] }
 0x322   : > { %1262 = vrot.lane.b32.xlu1 %v6795_v10, %s4168_s7  ;;  %v7107_v62 = vpop.permute.xlu1 %1525  ;;  %v1524_v44 = vpop.permute.xlu0 %1523 }
 0x323   : > { %9229 = vst [vmem:[#allocation49_spill] sm:$0xff] %v7107_v62  ;;  %v1767_v18 = vsel %vm763_vm6, %v1522_v51, %v1524_v44  ;;  %v1768_v26 = vsel %vm763_vm6, %v1524_v44, %v7107_v62  ;;  %v2408_v44 = vld [vmem:[%s8787_s3 + $0xca8] sm:$0xff]  ;;  %v2139_v62 = vld [vmem:[%s8787_s3 + $0x440] sm:$0xff] }
 0x324   : > { %v2793_v0 = vmul.f32 %v2361_v40, %v1767_v18  ;;  %v2794_v13 = vmul.f32 %v2362_v22, %v1768_v26  ;;  %v1227_v40 = vsel %vm1217_vm13, %v6932_v19, %v6930_v23  ;;  %v9233_v22 = vld [vmem:[#allocation164_spill] sm:$0xff] }
 0x325   : > { %1463 = vrot.lane.b32.xlu0 %v1075_v28, %s4160_s10 }
 0x326   : > { %1465 = vrot.lane.b32.xlu1 %v1076_v41, %s4160_s10  ;;  %v7132_v51 = vpop.permute.xlu1 %1559  ;;  %v1558_v49 = vpop.permute.xlu0 %1557 }
 0x327   : > { %9230 = vst [vmem:[#allocation23_spill] sm:$0xff] %v7132_v51  ;;  %v1783_v45 = vsel %vm763_vm6, %v1556_v35, %v1558_v49  ;;  %v1784_v59 = vsel %vm763_vm6, %v1558_v49, %v7132_v51  ;;  %v1176_v35 = vsel %vm1166_vm12, %v6914_v63, %v6912_v27  ;;  %v2407_v63 = vld [vmem:[%s8787_s3 + $0xca0] sm:$0xff] }
 0x328   : > { %v2809_v2 = vmul.f32 %v2377_v4, %v1783_v45  ;;  %v2810_v34 = vmul.f32 %v2378_v3, %v1784_v59  ;;  %v9234_v3 = vld [vmem:[#allocation157_spill] sm:$0xff] }
 0x329   : > { %1497 = vrot.lane.b32.xlu0 %v1126_v20, %s4160_s10  ;;  %v1226_v49 = vsel %vm1217_vm13, %v9234_v3, %v6932_v19  ;;  %v2030_v3 = vld [vmem:[%s8787_s3 + $0xd8] sm:$0xff] }
 0x32a   : > { %1499 = vrot.lane.b32.xlu1 %v1127_v5, %s4160_s10  ;;  %v3871_v50 = vpack.c.bf16 %v2809_v2, %v2793_v0  ;;  %v1590_v38 = vpop.permute.xlu1 %1589  ;;  %v1588_v57 = vpop.permute.xlu0 %1587  ;;  %v3869_v12 = vpack.c.bf16 %v2810_v34, %v2794_v13 }
 0x32b   : > { %v1797_v7 = vsel %vm763_vm6, %v9232_v52, %v1588_v57  ;;  %v1798_v31 = vsel %vm763_vm6, %v1588_v57, %v1590_v38  ;;  %v1177_v57 = vsel %vm1166_vm12, %v6912_v27, %v7005_v33  ;;  %v2409_v27 = vld [vmem:[%s8787_s3 + $0xcb0] sm:$0xff]  ;;  %v1229_v52 = vsel %vm1217_vm13, %v7013_v46, %v7011_v43 }
 0x32c   : > { %3870 = vmatprep.subr.bf16.mxu1 %v3869_v12  ;;  %v2823_v18 = vmul.f32 %v2391_v1, %v1797_v7  ;;  %v2824_v5 = vmul.f32 %v2392_v17, %v1798_v31  ;;  %v2393_v12 = vld [vmem:[%s8787_s3 + $0xc30] sm:$0xff]  ;;  %v2027_v7 = vld [vmem:[%s8787_s3 + $0xc0] sm:$0xff] }
 0x32d   : > { %1527 = vrot.lane.b32.xlu0 %v1175_v16, %s4160_s10  ;;  %3872 = vmatpush1.bf16.msra.mxu1 %v3871_v50  ;;  %v1178_v50 = vsel %vm1166_vm12, %v7005_v33, %v7003_v11  ;;  %v2410_v33 = vld [vmem:[%s8787_s3 + $0xcb8] sm:$0xff] }
 0x32e   : > { %1529 = vrot.lane.b32.xlu1 %v1176_v35, %s4160_s10  ;;  %v1624_v41 = vpop.permute.xlu1 %1623  ;;  %v1622_v28 = vpop.permute.xlu0 %1621 }
 0x32f   : > { %v1813_v26 = vsel %vm763_vm6, %v9233_v22, %v1622_v28  ;;  %v1814_v4 = vsel %vm763_vm6, %v1622_v28, %v1624_v41  ;;  %v2011_v28 = vld [vmem:[%s8787_s3 + $0x40] sm:$0xff] }
 0x330   : > { %v2839_v0 = vmul.f32 %v2407_v63, %v1813_v26  ;;  %v2840_v45 = vmul.f32 %v2408_v44, %v1814_v4  ;;  %v1228_v44 = vsel %vm1217_vm13, %v6930_v23, %v7013_v46  ;;  %v2029_v26 = vld [vmem:[%s8787_s3 + $0xd0] sm:$0xff]  ;;  %v2012_v23 = vld [vmem:[%s8787_s3 + $0x48] sm:$0xff]  ;;  %v9237_v46 = vld [vmem:[#allocation153_spill] sm:$0xff] }
 0x331   : > { %1561 = vrot.lane.b32.xlu0 %v1226_v49, %s4160_s10  ;;  %v7241_v4 = vmul.f32 %v2027_v7, %v9237_v46  ;;  %v7289_v7 = vld [vmem:[%s4219_s26 + $0x58] sm:$0xff]  ;;  %v9242_v46 = vld [vmem:[#allocation12_spill] sm:$0xff] }
 0x332   : > { %1563 = vrot.lane.b32.xlu1 %v1227_v40, %s4160_s10  ;;  %v3823_v59 = vpack.c.bf16 %v2839_v0, %v2823_v18  ;;  %v7179_v20 = vpop.permute.xlu1 %1307  ;;  %v7181_v13 = vpop.permute.xlu0 %1305  ;;  %v3821_v2 = vpack.c.bf16 %v2840_v45, %v2824_v5 }
 0x333   : > { %v1328_v30 = vsel %vm361_vm0, %v6365_v8, %v7181_v13 }
 0x334   : > { %3822 = vmatprep.subr.bf16.mxu0 %v3821_v2  ;;  %v2014_v2 = vld [vmem:[%s8787_s3 + $0x58] sm:$0xff] }
 0x335   : > { %1264 = vrot.lane.b32.xlu0 %v6879_v55, %s4168_s7  ;;  %3824 = vmatpush1.bf16.msra.mxu0 %v3823_v59  ;;  %v7251_v59 = vmul.f32 %v6726_v42, %v2011_v28  ;;  %v9238_v42 = vld [vmem:[#allocation160_spill] sm:$0xff] }
 0x336   : > { %1266 = vrot.lane.b32.xlu1 %v6882_v61, %s4168_s7  ;;  %v7187_v19 = vpop.permute.xlu1 %1593  ;;  %v1592_v34 = vpop.permute.xlu0 %1591  ;;  %v2173_v28 = vld [vmem:[%s8787_s3 + $0x550] sm:$0xff] }
 0x337   : > { %9235 = vst [vmem:[#allocation22_spill] sm:$0xff] %v7187_v19  ;;  %v1799_v35 = vsel %vm763_vm6, %v1590_v38, %v1592_v34  ;;  %v1800_v16 = vsel %vm763_vm6, %v1592_v34, %v7187_v19  ;;  %v2013_v34 = vld [vmem:[%s8787_s3 + $0x50] sm:$0xff]  ;;  %v9268_v19 = vld [vmem:[#allocation71_spill] sm:$0xff] }
 0x338   : > { %v2825_v17 = vmul.f32 %v2393_v12, %v1799_v35  ;;  %v2826_v40 = vmul.f32 %v2394_v36, %v1800_v16  ;;  %v1277_v12 = vsel %vm1268_vm14, %v9238_v42, %v7025_v53  ;;  %v9239_v35 = vld [vmem:[#allocation3_spill] sm:$0xff]  ;;  %v7274_v16 = vmul.f32 %v6681_v39, %v2012_v23  ;;  %v9241_v23 = vld [vmem:[#allocation14_spill] sm:$0xff] }
 0x339   : > { %1531 = vrot.lane.b32.xlu0 %v1177_v57, %s4160_s10  ;;  %v1278_v57 = vsel %vm1268_vm14, %v7025_v53, %v7023_v60  ;;  %v2423_v53 = vld [vmem:[%s8787_s3 + $0xd20] sm:$0xff]  ;;  %v7292_v39 = vmul.f32 %v7289_v7, %v2014_v2  ;;  %v9244_v2 = vld [vmem:[#allocation20_spill] sm:$0xff]  ;;  %v4128_v42 = vld [vmem:[%s4219_s26 + $0x68] sm:$0xff] }
 0x33a   : > { %1533 = vrot.lane.b32.xlu1 %v1178_v50, %s4160_s10  ;;  %v1626_v1 = vpop.permute.xlu0 %1625  ;;  %v2171_v50 = vld [vmem:[%s8787_s3 + $0x540] sm:$0xff] }
 0x33b   : > { %v1815_v31 = vsel %vm763_vm6, %v1624_v41, %v1626_v1  ;;  %v2028_v41 = vld [vmem:[%s8787_s3 + $0xc8] sm:$0xff] }
 0x33c   : > { %v7212_v38 = vpop.permute.xlu1 %1627  ;;  %v2841_v18 = vmul.f32 %v2409_v27, %v1815_v31  ;;  %v7269_v36 = vmul.f32 %v2028_v41, %v9239_v35  ;;  %v9240_v27 = vld [vmem:[#allocation2_spill] sm:$0xff] }
 0x33d   : > { %9236 = vst [vmem:[#allocation59_spill] sm:$0xff] %v7212_v38  ;;  %v1816_v63 = vsel %vm763_vm6, %v1626_v1, %v7212_v38  ;;  %1565 = vrot.lane.b32.xlu0 %v1228_v44, %s4160_s10  ;;  %v7280_v1 = vmul.f32 %v2030_v3, %v6482_v14  ;;  %v2172_v44 = vld [vmem:[%s8787_s3 + $0x548] sm:$0xff]  ;;  %v2187_v41 = vld [vmem:[%s8787_s3 + $0x5c0] sm:$0xff]  ;;  %v439_v3 = vsel %vm428_vm1, %v9242_v46, %v9241_v23  ;;  %v9267_v38 = vld [vmem:[#allocation72_spill] sm:$0xff] }
 0x33e   : > { %v2842_v22 = vmul.f32 %v2410_v33, %v1816_v63  ;;  %1567 = vrot.lane.b32.xlu1 %v1229_v52, %s4160_s10  ;;  %v3875_v49 = vpack.c.bf16 %v2841_v18, %v2825_v17  ;;  %v7248_v0 = vpop.permute.xlu0 %1309  ;;  %v7277_v33 = vmul.f32 %v2029_v26, %v9240_v27  ;;  %v2424_v52 = vld [vmem:[%s8787_s3 + $0xd28] sm:$0xff]  ;;  %v7295_v17 = vld [vmem:[%s4219_s26 + $0x50] sm:$0xff]  ;;  %v7301_v63 = vmul.f32 %v2171_v50, %v9240_v27 }
 0x33f   : > { %v7298_v31 = vmul.f32 %v7295_v17, %v2013_v34  ;;  %v2188_v26 = vld [vmem:[%s8787_s3 + $0x5c8] sm:$0xff]  ;;  %v3877_v35 = vpack.c.bf16 %v7269_v36, %v7274_v16  ;;  %v2045_v27 = vld [vmem:[%s8787_s3 + $0x150] sm:$0xff]  ;;  %v3929_v36 = vpack.c.bf16 %v7280_v1, %v7292_v39  ;;  %v7354_v46 = vmul.f32 %v2187_v41, %v439_v3  ;;  %v2062_v1 = vld [vmem:[%s8787_s3 + $0x1d8] sm:$0xff] }
 0x340   : > { %v7246_v5 = vpop.permute.xlu1 %1311  ;;  %v3873_v45 = vpack.c.bf16 %v2842_v22, %v2826_v40  ;;  %v3879_v22 = vpack.c.bf16 %v7241_v4, %v7251_v59  ;;  %v2174_v59 = vld [vmem:[%s8787_s3 + $0x558] sm:$0xff]  ;;  %v9247_v39 = vld [vmem:[#allocation36_spill] sm:$0xff]  ;;  %v9269_v51 = vpack.c.bf16 %v9267_v38, %v9268_v19 }
 0x341   : > { %1595 = vrot.lane.b32.xlu0 %v1277_v12, %s4160_s10  ;;  %v3931_v16 = vpack.c.bf16 %v7277_v33, %v7298_v31  ;;  %v4131_v38 = vld [vmem:[%s4219_s26 + $0x78] sm:$0xff] }
 0x342   : > { %1597 = vrot.lane.b32.xlu1 %v1278_v57, %s4160_s10  ;;  %3874 = vmatprep.subr.bf16.mxu1 %v3873_v45  ;;  %v9243_v45 = vld [vmem:[#allocation13_spill] sm:$0xff]  ;;  %v4127_v57 = vld [vmem:[%s4219_s26 + $0x70] sm:$0xff] }
 0x343   : > { %3876 = vmatpush1.bf16.msra.mxu1 %v3875_v49  ;;  %v1656_v18 = vpop.permute.xlu0 %1655  ;;  %v440_v49 = vsel %vm428_vm1, %v9241_v23, %v9243_v45  ;;  %v7342_v23 = vmul.f32 %v2173_v28, %v6509_v21  ;;  %v9245_v28 = vld [vmem:[#allocation30_spill] sm:$0xff]  ;;  %v9246_v45 = vld [vmem:[#allocation31_spill] sm:$0xff] }
 0x344   : > { %v1658_v40 = vpop.permute.xlu1 %1657  ;;  %v1829_v34 = vsel %vm763_vm6, %v9244_v2, %v1656_v18  ;;  %v7364_v2 = vsel %vm495_vm2, %v9246_v45, %v9245_v28  ;;  %v7372_v33 = vsel %vm495_vm2, %v9245_v28, %v9247_v39  ;;  %v7390_v45 = vmul.f32 %v2045_v27, %v439_v3  ;;  %v9250_v39 = vld [vmem:[#allocation74_spill] sm:$0xff]  ;;  %v9251_v3 = vld [vmem:[#allocation68_spill] sm:$0xff] }
 0x345   : > { %v1830_v4 = vsel %vm763_vm6, %v1656_v18, %v1658_v40  ;;  %v2855_v50 = vmul.f32 %v2423_v53, %v1829_v34  ;;  %1629 = vrot.lane.b32.xlu0 %v4128_v42, %s4160_s10  ;;  %v7339_v18 = vmul.f32 %v2172_v44, %v6482_v14  ;;  %v2425_v53 = vld [vmem:[%s8787_s3 + $0xd30] sm:$0xff]  ;;  %v7356_v14 = vmul.f32 %v2188_v26, %v440_v49  ;;  %v2046_v26 = vld [vmem:[%s8787_s3 + $0x158] sm:$0xff]  ;;  %v2155_v21 = vld [vmem:[%s8787_s3 + $0x4c0] sm:$0xff] }
 0x346   : > { %1631 = vrot.lane.b32.xlu1 %v4127_v57, %s4160_s10  ;;  %v2856_v12 = vmul.f32 %v2424_v52, %v1830_v4  ;;  %v2426_v52 = vld [vmem:[%s8787_s3 + $0xd38] sm:$0xff]  ;;  %v2061_v44 = vld [vmem:[%s8787_s3 + $0x1d0] sm:$0xff]  ;;  %v7380_v34 = vmul.f32 %v2174_v59, %v6919_v54  ;;  %v7406_v27 = vsel %vm629_vm4, %v9251_v3, %v9250_v39 }
 0x347   : > { %v1660_v41 = vpop.permute.xlu0 %1659  ;;  %v9249_v42 = vld [vmem:[#allocation8_spill] sm:$0xff] }
 0x348   : > { %v7374_v31 = vpop.permute.xlu1 %1661  ;;  %3067 = vmatprep.subr.mxu0 %v2856_v12  ;;  %v1831_v4 = vsel %vm763_vm6, %v1658_v40, %v1660_v41  ;;  %v7388_v28 = vsel %vm361_vm0, %v9213_v37, %v9249_v42  ;;  %v7397_v40 = vmul.f32 %v2061_v44, %v7364_v2  ;;  %v2094_v37 = vld [vmem:[%s8787_s3 + $0x2d8] sm:$0xff] }
 0x349   : > { %9248 = vst [vmem:[#allocation29_spill] sm:$0xff] %v7374_v31  ;;  %v1832_v57 = vsel %vm763_vm6, %v1660_v41, %v7374_v31  ;;  %3068 = vmatpush1.msra.mxu0 %v2855_v50  ;;  %v2857_v12 = vmul.f32 %v2425_v53, %v1831_v4  ;;  %1313 = vrot.lane.b32.xlu0 %v6795_v10, %s4154_s27  ;;  %v4129_v10 = vld [vmem:[%s8785_s1] sm:$0xff]  ;;  %v2190_v53 = vld [vmem:[%s8787_s3 + $0x5d8] sm:$0xff] }
 0x34a   : > { %1315 = vrot.lane.b32.xlu1 %v6879_v55, %s4154_s27  ;;  %v2858_v59 = vmul.f32 %v2426_v52, %v1832_v57  ;;  %v2494_v50 = vmul.f32 %v2062_v1, %v7372_v33  ;;  %3878 = vmatprep.subr.bf16.mxu0 %v3877_v35  ;;  %v2478_v55 = vmul.f32 %v2046_v26, %v440_v49  ;;  %v2077_v49 = vld [vmem:[%s8787_s3 + $0x250] sm:$0xff]  ;;  %v2078_v41 = vld [vmem:[%s8787_s3 + $0x258] sm:$0xff]  ;;  %v9254_v57 = vld [vmem:[#allocation34_spill] sm:$0xff] }
 0x34b   : > { %3080 = vmatmul.mubr.f32.vlgmr.msra.gmra.mrb[2].mxu0 %v4129_v10  ;;  %v7416_v44 = vpop.permute.xlu0 %1005  ;;  %v9253_v26 = vld [vmem:[#allocation52_spill] sm:$0xff]  ;;  %v1280_v35 = vsel %vm1268_vm14, %v7101_v9, %v7099_v15  ;;  %v1279_v1 = vsel %vm1268_vm14, %v7023_v60, %v7101_v9  ;;  %v9257_v31 = vld [vmem:[#allocation50_spill] sm:$0xff]  ;;  %v2156_v60 = vld [vmem:[%s8787_s3 + $0x4c8] sm:$0xff] }
 0x34c   : > { %3880 = vmatpush1.bf16.msra.mxu0 %v3879_v22  ;;  %v7414_v52 = vpop.permute.xlu1 %1007  ;;  %3138 = vmatprep.subr.mxu1 %v2858_v59  ;;  %v9252_v22 = vld [vmem:[#allocation51_spill] sm:$0xff]  ;;  %v9255_v59 = vld [vmem:[#allocation33_spill] sm:$0xff]  ;;  %v7445_v24 = vsel %vm562_vm3, %v9257_v31, %v9253_v26  ;;  %v9259_v9 = vld [vmem:[#allocation40_spill] sm:$0xff] }
 0x34d   : > { %v7431_v4 = vsel %vm562_vm3, %v9253_v26, %v9252_v22  ;;  %v9256_v39 = vpack.c.bf16 %v9254_v57, %v9255_v59  ;;  %3139 = vmatpush1.msra.mxu1 %v2857_v12  ;;  %v2093_v22 = vld [vmem:[%s8787_s3 + $0x2d0] sm:$0xff]  ;;  %v9258_v57 = vld [vmem:[#allocation69_spill] sm:$0xff]  ;;  %v2526_v59 = vmul.f32 %v2094_v37, %v7406_v27  ;;  %1599 = vrot.lane.b32.xlu0 %v1279_v1, %s4160_s10 }
 0x34e   : > { %v7453_v12 = vsel %vm629_vm4, %v9258_v57, %v9251_v3  ;;  %1601 = vrot.lane.b32.xlu1 %v1280_v35, %s4160_s10  ;;  %v7462_v31 = vmul.f32 %v2190_v53, %v9259_v9  ;;  %v3935_v26 = vpack.c.bf16 %v7397_v40, %v7390_v45  ;;  %3930 = vmatprep.subr.bf16.mxu1 %v3929_v36  ;;  %v2126_v37 = vld [vmem:[%s8787_s3 + $0x3d8] sm:$0xff]  ;;  %v9260_v1 = vld [vmem:[#allocation112_spill] sm:$0xff]  ;;  %v9261_v35 = vld [vmem:[#allocation106_spill] sm:$0xff] }
 0x34f   : > { %3882 = vmatprep.subr.bf16.mxu0 %v9256_v39  ;;  %3151 = vmatmul.mubr.f32.vlgmr.msra.gmra.mrb[2].mxu1 %v4129_v10  ;;  %v3933_v3 = vpack.c.bf16 %v2494_v50, %v2478_v55  ;;  %v2510_v39 = vmul.f32 %v2078_v41, %v7431_v4  ;;  %v7473_v57 = vsel %vm763_vm6, %v9261_v35, %v9260_v1  ;;  %v2140_v53 = vld [vmem:[%s8787_s3 + $0x448] sm:$0xff]  ;;  %v9262_v9 = vld [vmem:[#allocation124_spill] sm:$0xff]  ;;  %v9263_v45 = vld [vmem:[#allocation125_spill] sm:$0xff]  ;;  %v7486_v41 = vpop.permute.xlu0 %1357 }
 0x350   : > { %v840_v36 = vsel %vm830_vm7, %v9263_v45, %v9262_v9  ;;  %v9264_v40 = vld [vmem:[#allocation28_spill] sm:$0xff]  ;;  %v9265_v50 = vld [vmem:[#allocation27_spill] sm:$0xff]  ;;  %3932 = vmatpush1.bf16.msra.mxu1 %v3931_v16  ;;  %v7484_v55 = vpop.permute.xlu1 %1359  ;;  %v2509_v1 = vmul.f32 %v2077_v49, %v7445_v24  ;;  %v2525_v54 = vmul.f32 %v2093_v22, %v7453_v12  ;;  %v2158_v16 = vld [vmem:[%s8787_s3 + $0x4d8] sm:$0xff] }
 0x351   : > { %v9266_v10 = vpack.c.bf16 %v9264_v40, %v9265_v50  ;;  %3934 = vmatprep.subr.bf16.mxu1 %v3933_v3  ;;  %v2588_v40 = vmul.f32 %v7289_v7, %v2156_v60  ;;  %v2110_v49 = vld [vmem:[%s8787_s3 + $0x358] sm:$0xff]  ;;  %v9271_v50 = vld [vmem:[#allocation90_spill] sm:$0xff]  ;;  %v9272_v3 = vld [vmem:[#allocation107_spill] sm:$0xff]  ;;  %1633 = vrot.lane.b32.xlu0 %v4131_v38, %s4160_s10  ;;  %v3937_v7 = vpack.c.bf16 %v2526_v59, %v2510_v39 }
 0x352   : > { %v9270_v22 = vld [vmem:[#allocation89_spill] sm:$0xff]  ;;  %v7511_v19 = vsel %vm763_vm6, %v9272_v3, %v9261_v35  ;;  %v2125_v60 = vld [vmem:[%s8787_s3 + $0x3d0] sm:$0xff]  ;;  %v9273_v35 = vld [vmem:[#allocation123_spill] sm:$0xff]  ;;  %v2587_v39 = vmul.f32 %v7295_v17, %v2155_v21  ;;  %v3939_v32 = vpack.c.bf16 %v2525_v54, %v2509_v1 }
 0x353   : > { %3884 = vmatpush1.bf16.msra.mxu0 %v9266_v10  ;;  %v7506_v10 = vsel %vm696_vm5, %v9271_v50, %v9270_v22  ;;  %v2558_v22 = vmul.f32 %v2126_v37, %v7473_v57  ;;  %v839_v3 = vsel %vm830_vm7, %v9273_v35, %v9263_v45  ;;  %v7530_v59 = vld [vmem:[%s8785_s1 + $0x8] sm:$0xff]  ;;  %v2142_v37 = vld [vmem:[%s8787_s3 + $0x458] sm:$0xff]  ;;  %v9275_v38 = vld [vmem:[#allocation126_spill] sm:$0xff]  ;;  %v7548_v25 = vpop.permute.xlu0 %1009  ;;  %v2557_v58 = vmul.f32 %v2125_v60, %v7511_v19 }
 0x354   : > { %3886 = vmatprep.subr.bf16.mxu0 %v9269_v51  ;;  %v4130_v51 = vld [vmem:[%s4219_s26 + $0x80] sm:$0xff]  ;;  %9274 = vst [vmem:[#allocation101_spill] sm:$0xff] %v7530_v59  ;;  %3662 = vmatprep.mubr.msk.f32.mxu0 %vm2869_vm15, %v7530_v59  ;;  %v9276_v45 = vld [vmem:[#allocation127_spill] sm:$0xff]  ;;  %v9278_v35 = vld [vmem:[#allocation65_spill] sm:$0xff]  ;;  %v7546_v43 = vpop.permute.xlu1 %1011 }
 0x355   : > { %1635 = vrot.lane.b32.xlu1 %v4130_v51, %s4160_s10  ;;  %v2572_v51 = vmul.f32 %v2140_v53, %v840_v36  ;;  %3663 = vmatprep.mubr.msk.f32.mxu1 %vm2869_vm15, %v7530_v59  ;;  %v842_v53 = vsel %vm830_vm7, %v9276_v45, %v9275_v38  ;;  %v9277_v36 = vld [vmem:[#allocation66_spill] sm:$0xff]  ;;  %9280 = vst [vmem:[#allocation96_spill] sm:$0xff] %v7546_v43  ;;  %v7551_v59 = vld [vmem:[%s4219_s26 + $0x68] sm:$0xff]  ;;  %v2189_v17 = vld [vmem:[%s8787_s3 + $0x5d0] sm:$0xff] }
 0x356   : > { %v9279_v15 = vpack.c.bf16 %v9277_v36, %v9278_v35  ;;  %3936 = vmatpush1.bf16.msra.mxu1 %v3935_v26  ;;  %9281 = vst [vmem:[#allocation19_spill] sm:$0xff] %v7551_v59  ;;  %v2590_v21 = vmul.f32 %v7551_v59, %v2158_v16  ;;  %v2219_v38 = vld [vmem:[%s8787_s3 + $0x6c0] sm:$0xff]  ;;  %v9282_v26 = vld [vmem:[#allocation88_spill] sm:$0xff]  ;;  %v2542_v35 = vmul.f32 %v2110_v49, %v7506_v10  ;;  %v9284_v59 = vld [vmem:[#allocation109_spill] sm:$0xff] }
 0x357   : > { %v7566_v36 = vsel %vm696_vm5, %v9282_v26, %v9271_v50  ;;  %3938 = vmatprep.subr.bf16.mxu1 %v3937_v7  ;;  %v9283_v16 = vld [vmem:[#allocation110_spill] sm:$0xff]  ;;  %v2571_v43 = vmul.f32 %v2139_v62, %v839_v3  ;;  %v2157_v50 = vld [vmem:[%s8787_s3 + $0x4d0] sm:$0xff]  ;;  %1317 = vrot.lane.b32.xlu0 %v6882_v61, %s4154_s27  ;;  %v841_v8 = vsel %vm830_vm7, %v9262_v9, %v9276_v45  ;;  %v9286_v49 = vld [vmem:[#allocation35_spill] sm:$0xff]  ;;  %s3656_s27 = sshll.u32 %s9411_s22, 3 }
 0x358   : > { %3888 = vmatpush1.bf16.msra.mxu0 %v9279_v15  ;;  %v2109_v15 = vld [vmem:[%s8787_s3 + $0x350] sm:$0xff]  ;;  %v9285_v11 = vpack.c.bf16 %v9283_v16, %v9284_v59  ;;  %v2574_v54 = vmul.f32 %v2142_v37, %v842_v53  ;;  %v3941_v62 = vpack.c.bf16 %v2558_v22, %v2542_v35  ;;  %v3893_v1 = vpack.c.bf16 %v2588_v40, %v2572_v51  ;;  %v2220_v61 = vld [vmem:[%s8787_s3 + $0x6c8] sm:$0xff]  ;;  %v7604_v40 = vpop.permute.xlu1 %1058  ;;  %v7606_v51 = vpop.permute.xlu0 %1056  ;;  %s268_s7 = scalar_lea.vmem %s8789_s5, %s3656_s27  ;;  %s272_s29 = scalar_lea.vmem %s8790_s6, %s3656_s27 }
 0x359   : > { %1663 = vrot.lane.b32.xlu1 %v1328_v30, %s4160_s10  ;;  %v7589_v7 = vmul.f32 %v2189_v17, %v9286_v49  ;;  %v7595_v30 = vmul.f32 %v2219_v38, %v7445_v24  ;;  %v2221_v60 = vld [vmem:[%s8787_s3 + $0x6d0] sm:$0xff]  ;;  %v2541_v3 = vmul.f32 %v2109_v15, %v7566_v36  ;;  %v9288_v59 = vld [vmem:[#allocation103_spill] sm:$0xff]  ;;  %v2203_v24 = vld [vmem:[%s8787_s3 + $0x640] sm:$0xff]  ;;  %v1330_v53 = vsel %vm361_vm0, %v7179_v20, %v7248_v0 }
 0x35a   : > { %3890 = vmatprep.subr.bf16.mxu0 %v9285_v11  ;;  %v2141_v11 = vld [vmem:[%s8787_s3 + $0x450] sm:$0xff]  ;;  %3940 = vmatpush1.bf16.msra.mxu1 %v3939_v32  ;;  %v2204_v37 = vld [vmem:[%s8787_s3 + $0x648] sm:$0xff]  ;;  %v7615_v38 = vld [vmem:[%s4219_s26 + $0x60] sm:$0xff]  ;;  %v1329_v32 = vsel %vm361_vm0, %v7181_v13, %v7179_v20  ;;  %v3895_v35 = vpack.c.bf16 %v2587_v39, %v2571_v43  ;;  %v2652_v13 = vmul.f32 %v2220_v61, %v7431_v4 }
 0x35b   : > { %v9287_v9 = vld [vmem:[#allocation104_spill] sm:$0xff]  ;;  %v2589_v45 = vmul.f32 %v7615_v38, %v2157_v50  ;;  %3942 = vmatprep.subr.bf16.mxu1 %v3941_v62  ;;  %v2206_v15 = vld [vmem:[%s8787_s3 + $0x658] sm:$0xff]  ;;  %v3943_v26 = vpack.c.bf16 %v2557_v58, %v2541_v3  ;;  %v2573_v16 = vmul.f32 %v2141_v11, %v841_v8  ;;  %1665 = vrot.lane.b32.xlu0 %v1329_v32, %s4160_s10  ;;  %v2251_v39 = vld [vmem:[%s8787_s3 + $0x7c0] sm:$0xff] }
 0x35c   : > { %v9289_v22 = vpack.c.bf16 %v9287_v9, %v9288_v59  ;;  %v2205_v17 = vld [vmem:[%s8787_s3 + $0x650] sm:$0xff]  ;;  %v2222_v20 = vld [vmem:[%s8787_s3 + $0x6d8] sm:$0xff]  ;;  %v3949_v49 = vpack.c.bf16 %v7462_v31, %v7380_v34  ;;  %v2635_v58 = vmul.f32 %v2203_v24, %v7364_v2  ;;  %v2636_v43 = vmul.f32 %v2204_v37, %v7372_v33  ;;  %v2252_v4 = vld [vmem:[%s8787_s3 + $0x7c8] sm:$0xff]  ;;  %v7649_v11 = vpop.permute.xlu1 %1109 }
 0x35d   : > { %1667 = vrot.lane.b32.xlu1 %v1330_v53, %s4160_s10  ;;  %v9290_v50 = vld [vmem:[#allocation73_spill] sm:$0xff]  ;;  %v3951_v34 = vpack.c.bf16 %v7589_v7, %v7342_v23  ;;  %v9292_v33 = vld [vmem:[#allocation43_spill] sm:$0xff]  ;;  %v2253_v61 = vld [vmem:[%s8787_s3 + $0x7d0] sm:$0xff]  ;;  %v1331_v23 = vsel %vm361_vm0, %v7248_v0, %v7246_v5 }
 0x35e   : > { %3892 = vmatpush1.bf16.msra.mxu0 %v9289_v22  ;;  %v7637_v62 = vmul.f32 %v2221_v60, %v9290_v50  ;;  %3944 = vmatpush1.bf16.msra.mxu1 %v3943_v26  ;;  %v9291_v2 = vld [vmem:[#allocation37_spill] sm:$0xff]  ;;  %v2638_v8 = vmul.f32 %v2206_v15, %v9292_v33  ;;  %v9293_v60 = vpack.c.bf16 %v7356_v14, %v7339_v18  ;;  %v9294_v3 = vld [vmem:[#allocation78_spill] sm:$0xff]  ;;  %v2236_v59 = vld [vmem:[%s8787_s3 + $0x748] sm:$0xff] }
 0x35f   : > { %3894 = vmatprep.subr.bf16.mxu0 %v3893_v1  ;;  %v3945_v1 = vpack.c.bf16 %v2590_v21, %v2574_v54  ;;  %v7651_v21 = vpop.permute.xlu0 %1107  ;;  %v7656_v31 = vmul.f32 %v2205_v17, %v9291_v2  ;;  %v2235_v54 = vld [vmem:[%s8787_s3 + $0x740] sm:$0xff]  ;;  %v3903_v7 = vpack.c.bf16 %v7595_v30, %v2635_v58  ;;  %v2654_v9 = vmul.f32 %v2222_v20, %v9294_v3  ;;  %v2237_v0 = vld [vmem:[%s8787_s3 + $0x750] sm:$0xff]  ;;  %v2254_v24 = vld [vmem:[%s8787_s3 + $0x7d8] sm:$0xff] }
 0x360   : > { %v3947_v22 = vpack.c.bf16 %v2589_v45, %v2573_v16  ;;  %1669 = vrot.lane.b32.xlu0 %v1331_v23, %s4160_s10  ;;  %v2683_v14 = vmul.f32 %v2251_v39, %v7566_v36  ;;  %v2684_v30 = vmul.f32 %v2252_v4, %v7506_v10  ;;  %v3901_v37 = vpack.c.bf16 %v2652_v13, %v2636_v43  ;;  %v2238_v32 = vld [vmem:[%s8787_s3 + $0x758] sm:$0xff]  ;;  %v9295_v53 = vld [vmem:[#allocation111_spill] sm:$0xff]  ;;  %v2283_v16 = vld [vmem:[%s8787_s3 + $0x8c0] sm:$0xff] }
 0x361   : > { %3946 = vmatprep.subr.bf16.mxu1 %v3945_v1  ;;  %1365 = vrot.lane.b32.xlu1 %v7388_v28, %s4160_s10  ;;  %v3955_v18 = vpack.c.bf16 %v7637_v62, %v7656_v31  ;;  %v2667_v45 = vmul.f32 %v2235_v54, %v7453_v12  ;;  %v7694_v17 = vmul.f32 %v2253_v61, %v9295_v53  ;;  %v2284_v36 = vld [vmem:[%s8787_s3 + $0x8c8] sm:$0xff]  ;;  %v7705_v12 = vpop.permute.xlu1 %1363  ;;  %v9297_v20 = vld [vmem:[#allocation133_spill] sm:$0xff]  ;;  %v9299_v1 = vld [vmem:[#allocation116_spill] sm:$0xff] }
 0x362   : > { %3896 = vmatpush1.bf16.msra.mxu0 %v3895_v35  ;;  %v1690_v10 = vsel %vm763_vm6, %v7486_v41, %v7484_v55  ;;  %v9296_v15 = vpack.c.bf16 %v7354_v46, %v7301_v63  ;;  %3948 = vmatpush1.bf16.msra.mxu1 %v3947_v22  ;;  %v2668_v35 = vmul.f32 %v2236_v59, %v7406_v27  ;;  %v9298_v46 = vld [vmem:[#allocation75_spill] sm:$0xff]  ;;  %v2267_v39 = vld [vmem:[%s8787_s3 + $0x840] sm:$0xff]  ;;  %v2270_v54 = vld [vmem:[%s8787_s3 + $0x858] sm:$0xff] }
 0x363   : > { %3898 = vmatprep.subr.bf16.mxu0 %v9293_v60  ;;  %v1362_v26 = vpop.permute.xlu0 %1361  ;;  %v1689_v13 = vsel %vm763_vm6, %v6813_v48, %v7486_v41  ;;  %3950 = vmatprep.subr.bf16.mxu1 %v3949_v49  ;;  %v7717_v63 = vsel %vm361_vm0, %v9249_v42, %v9297_v20  ;;  %v7720_v50 = vmul.f32 %v2237_v0, %v9298_v46  ;;  %v2268_v58 = vld [vmem:[%s8787_s3 + $0x848] sm:$0xff]  ;;  %v9300_v42 = vld [vmem:[#allocation81_spill] sm:$0xff]  ;;  %v2285_v59 = vld [vmem:[%s8787_s3 + $0x8d0] sm:$0xff] }
 0x364   : > { %v2686_v27 = vmul.f32 %v2254_v24, %v9299_v1  ;;  %1367 = vrot.lane.b32.xlu0 %v7717_v63, %s4160_s10  ;;  %v7729_v48 = vld [vmem:[%s4219_s26 + $0x88] sm:$0xff]  ;;  %v3953_v41 = vpack.c.bf16 %v2654_v9, %v2638_v8  ;;  %v2670_v49 = vmul.f32 %v2238_v32, %v9300_v42  ;;  %v3907_v43 = vpack.c.bf16 %v2683_v14, %v2667_v45  ;;  %v2286_v8 = vld [vmem:[%s8787_s3 + $0x8d8] sm:$0xff]  ;;  %v9301_v0 = vld [vmem:[#allocation132_spill] sm:$0xff] }
 0x365   : > { %1335 = vrot.lane.b32.xlu1 %v7729_v48, %s4160_s10  ;;  %v2716_v4 = vmul.f32 %v2284_v36, %v1690_v10  ;;  %v3905_v2 = vpack.c.bf16 %v2684_v30, %v2668_v35  ;;  %v3959_v33 = vpack.c.bf16 %v7694_v17, %v7720_v50  ;;  %v2715_v61 = vmul.f32 %v2283_v16, %v1689_v13  ;;  %v7747_v23 = vpop.permute.xlu1 %1393  ;;  %v4136_v30 = vld [vmem:[%s4219_s26 + $0x90] sm:$0xff]  ;;  %v9302_v24 = vld [vmem:[#allocation119_spill] sm:$0xff]  ;;  %v9304_v1 = vld [vmem:[#allocation113_spill] sm:$0xff] }
 0x366   : > { %3900 = vmatpush1.bf16.msra.mxu0 %v9296_v15  ;;  %v1692_v60 = vsel %vm763_vm6, %v1362_v26, %v7705_v12  ;;  %3952 = vmatpush1.bf16.msra.mxu1 %v3951_v34  ;;  %v2700_v9 = vmul.f32 %v2268_v58, %v7473_v57  ;;  %v1691_v22 = vsel %vm763_vm6, %v7484_v55, %v1362_v26  ;;  %v2299_v57 = vld [vmem:[%s8787_s3 + $0x940] sm:$0xff]  ;;  %v2316_v53 = vld [vmem:[%s8787_s3 + $0x9c8] sm:$0xff]  ;;  %v9303_v35 = vld [vmem:[#allocation148_spill] sm:$0xff] }
 0x367   : > { %3902 = vmatprep.subr.bf16.mxu0 %v3901_v37  ;;  %v1392_v3 = vpop.permute.xlu0 %1391  ;;  %3954 = vmatprep.subr.bf16.mxu1 %v3953_v41  ;;  %v7758_v14 = vsel %vm361_vm0, %v9297_v20, %v9301_v0  ;;  %v2699_v34 = vmul.f32 %v2267_v39, %v7511_v19  ;;  %v3957_v55 = vpack.c.bf16 %v2686_v27, %v2670_v49  ;;  %v2300_v19 = vld [vmem:[%s8787_s3 + $0x948] sm:$0xff]  ;;  %v2269_v13 = vld [vmem:[%s8787_s3 + $0x850] sm:$0xff] }
 0x368   : > { %1337 = vrot.lane.b32.xlu0 %v4136_v30, %s4160_s10  ;;  %v2702_v37 = vmul.f32 %v2270_v54, %v9302_v24  ;;  %v2718_v45 = vmul.f32 %v2286_v8, %v1692_v60  ;;  %v1706_v32 = vsel %vm763_vm6, %v1392_v3, %v7747_v23  ;;  %v3909_v17 = vpack.c.bf16 %v2716_v4, %v2700_v9  ;;  %v9305_v49 = vld [vmem:[#allocation151_spill] sm:$0xff]  ;;  %v9310_v30 = vld [vmem:[#allocation5_spill] sm:$0xff] }
 0x369   : > { %1369 = vrot.lane.b32.xlu1 %v7758_v14, %s4160_s10  ;;  %v3911_v36 = vpack.c.bf16 %v2715_v61, %v2699_v34  ;;  %v2717_v10 = vmul.f32 %v2285_v59, %v1691_v22  ;;  %v7785_v15 = vpop.permute.xlu1 %1427  ;;  %v959_v16 = vsel %vm946_vm8, %v9222_v6, %v9303_v35  ;;  %v2732_v31 = vmul.f32 %v2300_v19, %v1706_v32  ;;  %v9306_v61 = vld [vmem:[#allocation150_spill] sm:$0xff]  ;;  %v9307_v59 = vld [vmem:[#allocation96_spill] sm:$0xff]  ;;  %v2318_v19 = vld [vmem:[%s8787_s3 + $0x9d8] sm:$0xff] }
 0x36a   : > { %3904 = vmatpush1.bf16.msra.mxu0 %v3903_v7  ;;  %v1705_v7 = vsel %vm763_vm6, %v6942_v47, %v1392_v3  ;;  %v2315_v47 = vld [vmem:[%s8787_s3 + $0x9c0] sm:$0xff]  ;;  %3956 = vmatpush1.bf16.msra.mxu1 %v3955_v18  ;;  %v3961_v6 = vpack.c.bf16 %v2718_v45, %v2702_v37  ;;  %v2701_v27 = vmul.f32 %v2269_v13, %v9304_v1  ;;  %v2302_v37 = vld [vmem:[%s8787_s3 + $0x958] sm:$0xff]  ;;  %v2317_v45 = vld [vmem:[%s8787_s3 + $0x9d0] sm:$0xff] }
 0x36b   : > { %3906 = vmatprep.subr.bf16.mxu0 %v3905_v2  ;;  %v1426_v26 = vpop.permute.xlu0 %1425  ;;  %v2731_v20 = vmul.f32 %v2299_v57, %v1705_v7  ;;  %3958 = vmatprep.subr.bf16.mxu1 %v3957_v55  ;;  %v1026_v39 = vsel %vm1013_vm9, %v6664_v29, %v7416_v44  ;;  %v1027_v54 = vsel %vm1013_vm9, %v7416_v44, %v7414_v52  ;;  %v2348_v1 = vld [vmem:[%s8787_s3 + $0xac8] sm:$0xff] }
 0x36c   : > { %v1721_v46 = vsel %vm763_vm6, %v6968_v56, %v1426_v26  ;;  %v1722_v62 = vsel %vm763_vm6, %v1426_v26, %v7785_v15  ;;  %1371 = vrot.lane.b32.xlu0 %v9301_v0, %s4160_s10  ;;  %v3963_v4 = vpack.c.bf16 %v2717_v10, %v2701_v27  ;;  %v961_v8 = vsel %vm946_vm8, %v9305_v49, %v9306_v61  ;;  %v9308_v0 = vld [vmem:[#allocation25_spill] sm:$0xff] }
 0x36d   : > { %v2747_v18 = vmul.f32 %v2315_v47, %v1721_v46  ;;  %v2748_v50 = vmul.f32 %v2316_v53, %v1722_v62  ;;  %1399 = vrot.lane.b32.xlu1 %v959_v16, %s4160_s10  ;;  %v1063_v41 = vpop.permute.xlu1 %1062  ;;  %v1028_v3 = vsel %vm1013_vm9, %v7414_v52, %v7548_v25  ;;  %v1029_v22 = vsel %vm1013_vm9, %v7548_v25, %v9307_v59  ;;  %v2301_v25 = vld [vmem:[%s8787_s3 + $0x950] sm:$0xff] }
 0x36e   : > { %3908 = vmatpush1.bf16.msra.mxu0 %v3907_v43  ;;  %3960 = vmatpush1.bf16.msra.mxu1 %v3959_v33  ;;  %v960_v43 = vsel %vm946_vm8, %v9303_v35, %v9305_v49  ;;  %v1077_v34 = vsel %vm1064_vm10, %v9308_v0, %v7606_v51  ;;  %v1078_v7 = vsel %vm1064_vm10, %v7606_v51, %v7604_v40  ;;  %v9314_v0 = vld [vmem:[#allocation4_spill] sm:$0xff] }
 0x36f   : > { %3910 = vmatprep.subr.bf16.mxu0 %v3909_v17  ;;  %v3915_v58 = vpack.c.bf16 %v2747_v18, %v2731_v20  ;;  %v1061_v56 = vpop.permute.xlu0 %1060  ;;  %v3913_v42 = vpack.c.bf16 %v2748_v50, %v2732_v31  ;;  %3962 = vmatprep.subr.bf16.mxu1 %v3961_v6  ;;  %v1128_v55 = vsel %vm1115_vm11, %v9310_v30, %v7651_v21  ;;  %v9311_v31 = vld [vmem:[#allocation63_spill] sm:$0xff] }
 0x370   : > { %1401 = vrot.lane.b32.xlu0 %v960_v43, %s4160_s10  ;;  %v1129_v47 = vsel %vm1115_vm11, %v7651_v21, %v7649_v11  ;;  %v1079_v53 = vsel %vm1064_vm10, %v7604_v40, %v1061_v56  ;;  %v1080_v40 = vsel %vm1064_vm10, %v1061_v56, %v1063_v41  ;;  %v2332_v50 = vld [vmem:[%s8787_s3 + $0xa48] sm:$0xff]  ;;  %v9312_v56 = vld [vmem:[#allocation10_spill] sm:$0xff] }
 0x371   : > { %1433 = vrot.lane.b32.xlu1 %v1026_v39, %s4160_s10  ;;  %v1114_v2 = vpop.permute.xlu1 %1113  ;;  %v9313_v43 = vld [vmem:[#allocation58_spill] sm:$0xff] }
 0x372   : > { %3912 = vmatpush1.bf16.msra.mxu0 %v3911_v36  ;;  %3964 = vmatpush1.bf16.msra.mxu1 %v3963_v4 }
 0x373   : > { %3914 = vmatprep.subr.bf16.mxu0 %v3913_v42  ;;  %v1112_v33 = vpop.permute.xlu0 %1111 }
 0x374   : > { %1435 = vrot.lane.b32.xlu0 %v1027_v54, %s4160_s10  ;;  %v1130_v62 = vsel %vm1115_vm11, %v7649_v11, %v1112_v33  ;;  %v2347_v11 = vld [vmem:[%s8787_s3 + $0xac0] sm:$0xff]  ;;  %v1131_v27 = vsel %vm1115_vm11, %v1112_v33, %v1114_v2 }
 0x375   : > { %1403 = vrot.lane.b32.xlu1 %v961_v8, %s4160_s10  ;;  %v7817_v29 = vpop.permute.xlu1 %1160 }
 0x376   : > { %3916 = vmatpush1.bf16.msra.mxu0 %v3915_v58 }
 0x377   : > { %v7819_v60 = vpop.permute.xlu0 %1158 }
 0x378   : > { %1405 = vrot.lane.b32.xlu0 %v9306_v61, %s4160_s10  ;;  %v1179_v42 = vsel %vm1166_vm12, %v9312_v56, %v7819_v60  ;;  %v2379_v56 = vld [vmem:[%s8787_s3 + $0xbc0] sm:$0xff] }
 0x379   : > { %1437 = vrot.lane.b32.xlu1 %v1028_v3, %s4160_s10  ;;  %v7827_v44 = vpop.permute.xlu1 %1211 }
 0x37b   : > { %v7829_v9 = vpop.permute.xlu0 %1209 }
 0x37c   : > { %1439 = vrot.lane.b32.xlu0 %v1029_v22, %s4160_s10  ;;  %v1180_v22 = vsel %vm1166_vm12, %v7819_v60, %v7817_v29  ;;  %v1231_v30 = vsel %vm1217_vm13, %v7829_v9, %v7827_v44 }
 0x37d   : > { %1467 = vrot.lane.b32.xlu1 %v1077_v34, %s4160_s10  ;;  %v7839_v52 = vpop.permute.xlu1 %1397  ;;  %v1230_v34 = vsel %vm1217_vm13, %v9314_v0, %v7829_v9 }
 0x37e   : > { %9309 = vst [vmem:[#allocation18_spill] sm:$0xff] %v7839_v52 }
 0x37f   : > { %v1396_v57 = vpop.permute.xlu0 %1395 }
 0x380   : > { %v1707_v24 = vsel %vm763_vm6, %v7747_v23, %v1396_v57  ;;  %1469 = vrot.lane.b32.xlu0 %v1078_v7, %s4160_s10  ;;  %v1708_v51 = vsel %vm763_vm6, %v1396_v57, %v7839_v52 }
 0x381   : > { %1501 = vrot.lane.b32.xlu1 %v1128_v55, %s4160_s10  ;;  %v7865_v23 = vpop.permute.xlu1 %1431  ;;  %v2733_v17 = vmul.f32 %v2301_v25, %v1707_v24  ;;  %v2734_v26 = vmul.f32 %v2302_v37, %v1708_v51 }
 0x383   : > { %v1430_v32 = vpop.permute.xlu0 %1429 }
 0x384   : > { %v1723_v36 = vsel %vm763_vm6, %v7785_v15, %v1430_v32  ;;  %v1724_v10 = vsel %vm763_vm6, %v1430_v32, %v7865_v23  ;;  %1503 = vrot.lane.b32.xlu0 %v1129_v47, %s4160_s10  ;;  %v2331_v15 = vld [vmem:[%s8787_s3 + $0xa40] sm:$0xff]  ;;  %v2333_v32 = vld [vmem:[%s8787_s3 + $0xa50] sm:$0xff] }
 0x385   : > { %v2749_v35 = vmul.f32 %v2317_v45, %v1723_v36  ;;  %v2750_v16 = vmul.f32 %v2318_v19, %v1724_v10  ;;  %1471 = vrot.lane.b32.xlu1 %v1079_v53, %s4160_s10  ;;  %v1462_v20 = vpop.permute.xlu1 %1461  ;;  %v9316_v45 = vld [vmem:[#allocation48_spill] sm:$0xff]  ;;  %v2350_v36 = vld [vmem:[%s8787_s3 + $0xad8] sm:$0xff] }
 0x387   : > { %v3967_v13 = vpack.c.bf16 %v2749_v35, %v2733_v17  ;;  %v1460_v21 = vpop.permute.xlu0 %1459  ;;  %v3965_v46 = vpack.c.bf16 %v2750_v16, %v2734_v26  ;;  %v2349_v17 = vld [vmem:[%s8787_s3 + $0xad0] sm:$0xff] }
 0x388   : > { %v1737_v18 = vsel %vm763_vm6, %v9311_v31, %v1460_v21  ;;  %1473 = vrot.lane.b32.xlu0 %v1080_v40, %s4160_s10  ;;  %v1738_v6 = vsel %vm763_vm6, %v1460_v21, %v1462_v20 }
 0x389   : > { %1505 = vrot.lane.b32.xlu1 %v1130_v62, %s4160_s10  ;;  %3966 = vmatprep.subr.bf16.mxu1 %v3965_v46  ;;  %v1496_v58 = vpop.permute.xlu1 %1495  ;;  %v2763_v49 = vmul.f32 %v2331_v15, %v1737_v18  ;;  %v2764_v54 = vmul.f32 %v2332_v50, %v1738_v6  ;;  %v4137_v62 = vld [vmem:[%s4219_s26 + $0x88] sm:$0xff]  ;;  %v2363_v6 = vld [vmem:[%s8787_s3 + $0xb40] sm:$0xff] }
 0x38a   : > { %3968 = vmatpush1.bf16.msra.mxu1 %v3967_v13 }
 0x38b   : > { %v1494_v41 = vpop.permute.xlu0 %1493 }
 0x38c   : > { %v1753_v39 = vsel %vm763_vm6, %v9313_v43, %v1494_v41  ;;  %v1754_v4 = vsel %vm763_vm6, %v1494_v41, %v1496_v58  ;;  %1507 = vrot.lane.b32.xlu0 %v1131_v27, %s4160_s10  ;;  %v9318_v27 = vld [vmem:[#allocation49_spill] sm:$0xff] }
 0x38d   : > { %v2779_v61 = vmul.f32 %v2347_v11, %v1753_v39  ;;  %v2780_v8 = vmul.f32 %v2348_v1, %v1754_v4  ;;  %1535 = vrot.lane.b32.xlu1 %v1179_v42, %s4160_s10  ;;  %v1165_v33 = vpop.permute.xlu1 %1164  ;;  %v4138_v11 = vld [vmem:[%s4219_s26 + $0x90] sm:$0xff]  ;;  %v2364_v1 = vld [vmem:[%s8787_s3 + $0xb48] sm:$0xff] }
 0x38e   : > { %v2380_v42 = vld [vmem:[%s8787_s3 + $0xbc8] sm:$0xff] }
 0x38f   : > { %v3919_v2 = vpack.c.bf16 %v2779_v61, %v2763_v49  ;;  %v1163_v3 = vpop.permute.xlu0 %1162  ;;  %v3917_v59 = vpack.c.bf16 %v2780_v8, %v2764_v54  ;;  %v9319_v39 = vld [vmem:[#allocation23_spill] sm:$0xff] }
 0x390   : > { %1537 = vrot.lane.b32.xlu0 %v1180_v22, %s4160_s10  ;;  %v1181_v55 = vsel %vm1166_vm12, %v7817_v29, %v1163_v3  ;;  %v1182_v24 = vsel %vm1166_vm12, %v1163_v3, %v1165_v33 }
 0x391   : > { %1569 = vrot.lane.b32.xlu1 %v1230_v34, %s4160_s10  ;;  %3918 = vmatprep.subr.bf16.mxu0 %v3917_v59  ;;  %v1216_v57 = vpop.permute.xlu1 %1215 }
 0x392   : > { %3920 = vmatpush1.bf16.msra.mxu0 %v3919_v2 }
 0x393   : > { %v1214_v7 = vpop.permute.xlu0 %1213 }
 0x394   : > { %1571 = vrot.lane.b32.xlu0 %v1231_v30, %s4160_s10  ;;  %v1232_v37 = vsel %vm1217_vm13, %v7827_v44, %v1214_v7  ;;  %v1233_v29 = vsel %vm1217_vm13, %v1214_v7, %v1216_v57  ;;  %v2334_v44 = vld [vmem:[%s8787_s3 + $0xa58] sm:$0xff] }
 0x395   : > { %1539 = vrot.lane.b32.xlu1 %v1181_v55, %s4160_s10  ;;  %v1263_v60 = vpop.permute.xlu1 %1262  ;;  %v2365_v55 = vld [vmem:[%s8787_s3 + $0xb50] sm:$0xff] }
 0x397   : > { %v1261_v25 = vpop.permute.xlu0 %1260 }
 0x398   : > { %1541 = vrot.lane.b32.xlu0 %v1182_v24, %s4160_s10  ;;  %v1281_v19 = vsel %vm1268_vm14, %v9316_v45, %v1261_v25  ;;  %v1282_v35 = vsel %vm1268_vm14, %v1261_v25, %v1263_v60  ;;  %v4139_v25 = vld [vmem:[%s4219_s26 + $0xa0] sm:$0xff]  ;;  %v4140_v24 = vld [vmem:[%s4219_s26 + $0x98] sm:$0xff] }
 0x399   : > { %1573 = vrot.lane.b32.xlu1 %v1232_v37, %s4160_s10  ;;  %v7927_v51 = vpop.permute.xlu1 %1465  ;;  %v2382_v45 = vld [vmem:[%s8787_s3 + $0xbd8] sm:$0xff] }
 0x39a   : > { %9315 = vst [vmem:[#allocation47_spill] sm:$0xff] %v7927_v51 }
 0x39b   : > { %v1464_v9 = vpop.permute.xlu0 %1463 }
 0x39c   : > { %v1739_v47 = vsel %vm763_vm6, %v1462_v20, %v1464_v9  ;;  %1575 = vrot.lane.b32.xlu0 %v1233_v29, %s4160_s10  ;;  %v1740_v53 = vsel %vm763_vm6, %v1464_v9, %v7927_v51  ;;  %v2381_v29 = vld [vmem:[%s8787_s3 + $0xbd0] sm:$0xff]  ;;  %v9380_v51 = vld [vmem:[#allocation115_spill] sm:$0xff] }
 0x39d   : > { %1603 = vrot.lane.b32.xlu1 %v1281_v19, %s4160_s10  ;;  %v7949_v10 = vpop.permute.xlu1 %1499  ;;  %v2765_v16 = vmul.f32 %v2333_v32, %v1739_v47  ;;  %v2766_v21 = vmul.f32 %v2334_v44, %v1740_v53 }
 0x39e   : > { %9317 = vst [vmem:[#allocation61_spill] sm:$0xff] %v7949_v10 }
 0x39f   : > { %v1498_v26 = vpop.permute.xlu0 %1497 }
 0x3a0   : > { %v1755_v13 = vsel %vm763_vm6, %v1496_v58, %v1498_v26  ;;  %v1756_v20 = vsel %vm763_vm6, %v1498_v26, %v7949_v10  ;;  %1605 = vrot.lane.b32.xlu0 %v1282_v35, %s4160_s10  ;;  %v9381_v10 = vld [vmem:[#allocation114_spill] sm:$0xff] }
 0x3a1   : > { %v2781_v46 = vmul.f32 %v2349_v17, %v1755_v13  ;;  %v2782_v40 = vmul.f32 %v2350_v36, %v1756_v20  ;;  %1637 = vrot.lane.b32.xlu1 %v4137_v62, %s4160_s10  ;;  %v1530_v31 = vpop.permute.xlu1 %1529  ;;  %v9382_v52 = vpack.c.bf16 %v9380_v51, %v9381_v10  ;;  %v2271_v51 = vld [vmem:[%s8787_s3 + $0x860] sm:$0xff] }
 0x3a3   : > { %v3971_v15 = vpack.c.bf16 %v2781_v46, %v2765_v16  ;;  %v1528_v18 = vpop.permute.xlu0 %1527  ;;  %v3969_v50 = vpack.c.bf16 %v2782_v40, %v2766_v21  ;;  %v2395_v21 = vld [vmem:[%s8787_s3 + $0xc40] sm:$0xff]  ;;  %v2396_v46 = vld [vmem:[%s8787_s3 + $0xc48] sm:$0xff] }
 0x3a4   : > { %1639 = vrot.lane.b32.xlu0 %v4138_v11, %s4160_s10  ;;  %v1769_v58 = vsel %vm763_vm6, %v9318_v27, %v1528_v18  ;;  %v1770_v41 = vsel %vm763_vm6, %v1528_v18, %v1530_v31  ;;  %v9322_v40 = vld [vmem:[#allocation22_spill] sm:$0xff]  ;;  %v2412_v18 = vld [vmem:[%s8787_s3 + $0xcc8] sm:$0xff] }
 0x3a5   : > { %3970 = vmatprep.subr.bf16.mxu1 %v3969_v50  ;;  %v1564_v49 = vpop.permute.xlu1 %1563  ;;  %v2795_v61 = vmul.f32 %v2363_v6, %v1769_v58  ;;  %v2796_v8 = vmul.f32 %v2364_v1, %v1770_v41  ;;  %v9323_v11 = vld [vmem:[#allocation59_spill] sm:$0xff] }
 0x3a6   : > { %3972 = vmatpush1.bf16.msra.mxu1 %v3971_v15 }
 0x3a7   : > { %v1562_v43 = vpop.permute.xlu0 %1561 }
 0x3a8   : > { %v1785_v4 = vsel %vm763_vm6, %v9319_v39, %v1562_v43  ;;  %v1786_v54 = vsel %vm763_vm6, %v1562_v43, %v1564_v49 }
 0x3a9   : > { %v2811_v2 = vmul.f32 %v2379_v56, %v1785_v4  ;;  %v2812_v33 = vmul.f32 %v2380_v42, %v1786_v54  ;;  %v1267_v59 = vpop.permute.xlu1 %1266 }
 0x3ab   : > { %v3923_v3 = vpack.c.bf16 %v2811_v2, %v2795_v61  ;;  %v1265_v22 = vpop.permute.xlu0 %1264  ;;  %v3921_v0 = vpack.c.bf16 %v2812_v33, %v2796_v8  ;;  %v2397_v33 = vld [vmem:[%s8787_s3 + $0xc50] sm:$0xff] }
 0x3ac   : > { %v1283_v34 = vsel %vm1268_vm14, %v1263_v60, %v1265_v22  ;;  %v1284_v57 = vsel %vm1268_vm14, %v1265_v22, %v1267_v59  ;;  %v2366_v60 = vld [vmem:[%s8787_s3 + $0xb58] sm:$0xff]  ;;  %v8042_v22 = vpop.f32.mrb[0].mxu0 }
 0x3ad   : > { %1609 = vrot.lane.b32.xlu0 %v1284_v57, %s4160_s10  ;;  %1607 = vrot.lane.b32.xlu1 %v1283_v34, %s4160_s10  ;;  %v7982_v7 = vpop.permute.xlu1 %1533  ;;  %9325 = vst [vmem:[#allocation97_spill] sm:$0xff] %v8042_v22  ;;  %v2413_v34 = vld [vmem:[%s8787_s3 + $0xcd0] sm:$0xff]  ;;  %v2414_v57 = vld [vmem:[%s8787_s3 + $0xcd8] sm:$0xff] }
 0x3ae   : > { %3922 = vmatprep.subr.bf16.mxu0 %v3921_v0  ;;  %9320 = vst [vmem:[#allocation60_spill] sm:$0xff] %v7982_v7  ;;  %v8044_v0 = vpop.f32.mrb[0].mxu1 }
 0x3af   : > { %3924 = vmatpush1.bf16.msra.mxu0 %v3923_v3  ;;  %v1532_v30 = vpop.permute.xlu0 %1531  ;;  %9326 = vst [vmem:[#allocation57_spill] sm:$0xff] %v8044_v0 }
 0x3b0   : > { %v1771_v37 = vsel %vm763_vm6, %v1530_v31, %v1532_v30  ;;  %v1772_v9 = vsel %vm763_vm6, %v1532_v30, %v7982_v7  ;;  %v2411_v31 = vld [vmem:[%s8787_s3 + $0xcc0] sm:$0xff]  ;;  %v3497_v30 = vmul.f32 %v8042_v22, %v8042_v22 }
 0x3b1   : > { %1643 = vrot.lane.b32.xlu0 %v4139_v25, %s4160_s10  ;;  %1641 = vrot.lane.b32.xlu1 %v4140_v24, %s4160_s10  ;;  %v8003_v19 = vpop.permute.xlu1 %1567  ;;  %v2797_v53 = vmul.f32 %v2365_v55, %v1771_v37  ;;  %v2798_v17 = vmul.f32 %v2366_v60, %v1772_v9  ;;  %v8054_v55 = vpop.f32.mrb[1].mxu0 }
 0x3b2   : > { %9321 = vst [vmem:[#allocation86_spill] sm:$0xff] %v8003_v19  ;;  %9327 = vst [vmem:[#allocation56_spill] sm:$0xff] %v8054_v55  ;;  %v8056_v25 = vpop.f32.mrb[1].mxu1  ;;  %v3479_v9 = vadd.f32 %v8054_v55, %v8042_v22 }
 0x3b3   : > { %v1566_v32 = vpop.permute.xlu0 %1565  ;;  %9328 = vst [vmem:[#allocation85_spill] sm:$0xff] %v8056_v25 }
 0x3b4   : > { %v1787_v47 = vsel %vm763_vm6, %v1564_v49, %v1566_v32  ;;  %v1788_v44 = vsel %vm763_vm6, %v1566_v32, %v8003_v19 }
 0x3b5   : > { %v2813_v36 = vmul.f32 %v2381_v29, %v1787_v47  ;;  %v2814_v26 = vmul.f32 %v2382_v45, %v1788_v44  ;;  %v1598_v16 = vpop.permute.xlu1 %1597  ;;  %v3498_v29 = vmul.f32 %v8054_v55, %v8054_v55  ;;  %v3499_v45 = vmul.f32 %v8044_v0, %v8044_v0 }
 0x3b7   : > { %v3975_v35 = vpack.c.bf16 %v2813_v36, %v2797_v53  ;;  %v1596_v13 = vpop.permute.xlu0 %1595  ;;  %v3973_v20 = vpack.c.bf16 %v2814_v26, %v2798_v17  ;;  %v3500_v53 = vmul.f32 %v8056_v25, %v8056_v25  ;;  %v2031_v17 = vld [vmem:[%s8787_s3 + $0xe0] sm:$0xff] }
 0x3b8   : > { %v1801_v62 = vsel %vm763_vm6, %v9322_v40, %v1596_v13  ;;  %v1802_v15 = vsel %vm763_vm6, %v1596_v13, %v1598_v16  ;;  %v3480_v13 = vadd.f32 %v3479_v9, %v8044_v0  ;;  %v2191_v9 = vld [vmem:[%s8787_s3 + $0x5e0] sm:$0xff] }
 0x3b9   : > { %3974 = vmatprep.subr.bf16.mxu1 %v3973_v20  ;;  %v1632_v50 = vpop.permute.xlu1 %1631  ;;  %v2827_v58 = vmul.f32 %v2395_v21, %v1801_v62  ;;  %v2828_v41 = vmul.f32 %v2396_v46, %v1802_v15  ;;  %v2032_v20 = vld [vmem:[%s8787_s3 + $0xe8] sm:$0xff]  ;;  %v2033_v21 = vld [vmem:[%s8787_s3 + $0xf0] sm:$0xff]  ;;  %v9363_v0 = vld [vmem:[#allocation82_spill] sm:$0xff] }
 0x3ba   : > { %3976 = vmatpush1.bf16.msra.mxu1 %v3975_v35  ;;  %v2015_v35 = vld [vmem:[%s8787_s3 + $0x60] sm:$0xff] }
 0x3bb   : > { %v1630_v6 = vpop.permute.xlu0 %1629 }
 0x3bc   : > { %v1817_v1 = vsel %vm763_vm6, %v9323_v11, %v1630_v6  ;;  %v1818_v27 = vsel %vm763_vm6, %v1630_v6, %v1632_v50  ;;  %v8091_v6 = vadd.f32 %v3480_v13, %v8056_v25  ;;  %v9331_v11 = vld [vmem:[#allocation21_spill] sm:$0xff]  ;;  %v9362_v25 = vld [vmem:[#allocation83_spill] sm:$0xff] }
 0x3bd   : > { %v2843_v56 = vmul.f32 %v2411_v31, %v1817_v1  ;;  %v2844_v42 = vmul.f32 %v2412_v18, %v1818_v27  ;;  %v1316_v43 = vpop.permute.xlu1 %1315  ;;  %v2016_v31 = vld [vmem:[%s8787_s3 + $0x68] sm:$0xff]  ;;  %v2017_v18 = vld [vmem:[%s8787_s3 + $0x70] sm:$0xff]  ;;  %v8094_v1 = vmul.f32 %v2031_v17, %v9331_v11  ;;  %v9340_v13 = vld [vmem:[#allocation41_spill] sm:$0xff]  ;;  %v9364_v55 = vpack.c.bf16 %v9362_v25, %v9363_v0 }
 0x3be   : > { %9330 = vst [vmem:[#allocation98_spill] sm:$0xff] %v8091_v6  ;;  %v2176_v17 = vld [vmem:[%s8787_s3 + $0x568] sm:$0xff]  ;;  %v2159_v0 = vld [vmem:[%s8787_s3 + $0x4e0] sm:$0xff]  ;;  %v2162_v25 = vld [vmem:[%s8787_s3 + $0x4f8] sm:$0xff] }
 0x3bf   : > { %v3927_v49 = vpack.c.bf16 %v2843_v56, %v2827_v58  ;;  %v1314_v39 = vpop.permute.xlu0 %1313  ;;  %v3925_v4 = vpack.c.bf16 %v2844_v42, %v2828_v41  ;;  %v8099_v58 = vmul.f32 %v7615_v38, %v2015_v35  ;;  %v2018_v41 = vld [vmem:[%s8787_s3 + $0x78] sm:$0xff]  ;;  %v9333_v42 = vld [vmem:[#allocation11_spill] sm:$0xff]  ;;  %v2049_v35 = vld [vmem:[%s8787_s3 + $0x170] sm:$0xff] }
 0x3c0   : > { %v1332_v54 = vsel %vm361_vm0, %v7246_v5, %v1314_v39  ;;  %v1333_v61 = vsel %vm361_vm0, %v1314_v39, %v1316_v43  ;;  %v2398_v5 = vld [vmem:[%s8787_s3 + $0xc58] sm:$0xff]  ;;  %v2428_v38 = vld [vmem:[%s8787_s3 + $0xd48] sm:$0xff]  ;;  %v9373_v6 = vld [vmem:[#allocation76_spill] sm:$0xff] }
 0x3c1   : > { %1673 = vrot.lane.b32.xlu0 %v1333_v61, %s4160_s10  ;;  %1671 = vrot.lane.b32.xlu1 %v1332_v54, %s4160_s10  ;;  %v8031_v8 = vpop.permute.xlu1 %1601  ;;  %v9334_v39 = vld [vmem:[#allocation9_spill] sm:$0xff]  ;;  %v9335_v54 = vld [vmem:[#allocation19_spill] sm:$0xff] }
 0x3c2   : > { %3926 = vmatprep.subr.bf16.mxu0 %v3925_v4  ;;  %9324 = vst [vmem:[#allocation87_spill] sm:$0xff] %v8031_v8  ;;  %v8112_v4 = vmul.f32 %v2033_v21, %v9334_v39  ;;  %v2448_v61 = vmul.f32 %v9335_v54, %v2016_v31 }
 0x3c3   : > { %3928 = vmatpush1.bf16.msra.mxu0 %v3927_v49  ;;  %v1600_v2 = vpop.permute.xlu0 %1599  ;;  %v2464_v49 = vmul.f32 %v2032_v20, %v9333_v42  ;;  %v9341_v20 = vld [vmem:[#allocation42_spill] sm:$0xff] }
 0x3c4   : > { %v1803_v3 = vsel %vm763_vm6, %v1598_v16, %v1600_v2  ;;  %v1804_v59 = vsel %vm763_vm6, %v1600_v2, %v8031_v8  ;;  %v3513_v16 = vadd.f32 %v3498_v29, %v3497_v30  ;;  %v8119_v2 = vld [vmem:[%s4219_s26 + $0x70] sm:$0xff]  ;;  %v2192_v29 = vld [vmem:[%s8787_s3 + $0x5e8] sm:$0xff]  ;;  %v510_v21 = vsel %vm495_vm2, %v9341_v20, %v9340_v13 }
 0x3c5   : > { %v2829_v24 = vmul.f32 %v2397_v33, %v1803_v3  ;;  %v2830_v32 = vmul.f32 %v2398_v5, %v1804_v59  ;;  %v8122_v33 = vmul.f32 %v8119_v2, %v2017_v18  ;;  %v2034_v3 = vld [vmem:[%s8787_s3 + $0xf8] sm:$0xff]  ;;  %v2427_v5 = vld [vmem:[%s8787_s3 + $0xd40] sm:$0xff]  ;;  %v2224_v20 = vld [vmem:[%s8787_s3 + $0x6e8] sm:$0xff] }
 0x3c6   : > { %v9336_v59 = vld [vmem:[#allocation29_spill] sm:$0xff] }
 0x3c7   : > { %v8058_v60 = vpop.permute.xlu1 %1635  ;;  %v1634_v37 = vpop.permute.xlu0 %1633  ;;  %v2050_v18 = vld [vmem:[%s8787_s3 + $0x178] sm:$0xff] }
 0x3c8   : > { %9329 = vst [vmem:[#allocation99_spill] sm:$0xff] %v8058_v60  ;;  %v1819_v47 = vsel %vm763_vm6, %v1632_v50, %v1634_v37  ;;  %v1820_v44 = vsel %vm763_vm6, %v1634_v37, %v8058_v60  ;;  %v3514_v50 = vadd.f32 %v3513_v16, %v3499_v45  ;;  %v9337_v45 = vld [vmem:[#allocation17_spill] sm:$0xff]  ;;  %v2065_v16 = vld [vmem:[%s8787_s3 + $0x1f0] sm:$0xff]  ;;  %v2239_v60 = vld [vmem:[%s8787_s3 + $0x760] sm:$0xff] }
 0x3c9   : > { %v2845_v36 = vmul.f32 %v2413_v34, %v1819_v47  ;;  %v2846_v26 = vmul.f32 %v2414_v57, %v1820_v44  ;;  %v9339_v44 = vld [vmem:[#allocation16_spill] sm:$0xff] }
 0x3ca   : > { %v8105_v56 = vadd.f32 %v3514_v50, %v3500_v53  ;;  %v444_v53 = vsel %vm428_vm1, %v9337_v45, %v9339_v44  ;;  %v2466_v50 = vmul.f32 %v2034_v3, %v7388_v28 }
 0x3cb   : > { %v3979_v46 = vpack.c.bf16 %v2845_v36, %v2829_v24  ;;  %v1664_v40 = vpop.permute.xlu1 %1663  ;;  %v1318_v62 = vpop.permute.xlu0 %1317  ;;  %v3977_v15 = vpack.c.bf16 %v2846_v26, %v2830_v32  ;;  %v8133_v24 = vld [vmem:[%s4219_s26 + $0x78] sm:$0xff]  ;;  %v9338_v32 = vld [vmem:[#allocation15_spill] sm:$0xff]  ;;  %v3983_v26 = vpack.c.bf16 %v8094_v1, %v8099_v58  ;;  %v4035_v58 = vpack.c.bf16 %v8112_v4, %v8122_v33 }
 0x3cc   : > { %v1334_v27 = vsel %vm361_vm0, %v1316_v43, %v1318_v62  ;;  %1677 = vrot.lane.b32.xlu0 %v1318_v62, %s4160_s10  ;;  %9332 = vst [vmem:[#allocation95_spill] sm:$0xff] %v8105_v56  ;;  %v2175_v43 = vld [vmem:[%s8787_s3 + $0x560] sm:$0xff]  ;;  %v1833_v34 = vsel %vm763_vm6, %v9336_v59, %v1664_v40  ;;  %v8136_v37 = vmul.f32 %v8133_v24, %v2018_v41  ;;  %v2430_v1 = vld [vmem:[%s8787_s3 + $0xd58] sm:$0xff] }
 0x3cd   : > { %3978 = vmatprep.subr.bf16.mxu1 %v3977_v15  ;;  %1675 = vrot.lane.b32.xlu1 %v1334_v27, %s4160_s10  ;;  %v443_v47 = vsel %vm428_vm1, %v9338_v32, %v9337_v45  ;;  %v8174_v15 = vmul.f32 %v2175_v43, %v9334_v39  ;;  %v2859_v11 = vmul.f32 %v2427_v5, %v1833_v34  ;;  %v2429_v39 = vld [vmem:[%s8787_s3 + $0xd50] sm:$0xff]  ;;  %v2207_v5 = vld [vmem:[%s8787_s3 + $0x660] sm:$0xff]  ;;  %v2098_v59 = vld [vmem:[%s8787_s3 + $0x2f8] sm:$0xff]  ;;  %s3668_s10 = sshll.u32 %s9411_s22, 7 }
 0x3ce   : > { %3980 = vmatpush1.bf16.msra.mxu1 %v3979_v46  ;;  %v2066_v46 = vld [vmem:[%s8787_s3 + $0x1f8] sm:$0xff]  ;;  %v3981_v27 = vpack.c.bf16 %v2464_v49, %v2448_v61  ;;  %v8185_v41 = vmul.f32 %v2191_v9, %v443_v47  ;;  %v8187_v42 = vmul.f32 %v2192_v29, %v444_v53  ;;  %v8190_v43 = vmul.f32 %v2176_v17, %v7388_v28  ;;  %v9344_v34 = vld [vmem:[#allocation84_spill] sm:$0xff]  ;;  %v2223_v32 = vld [vmem:[%s8787_s3 + $0x6e0] sm:$0xff]  ;;  %s8755_s15 = scalar_lea.vmem %s8788_s4, %s3668_s10 }
 0x3cf   : > { %v1668_v57 = vpop.permute.xlu1 %1667  ;;  %v1666_v30 = vpop.permute.xlu0 %1665  ;;  %v8200_v49 = vmul.f32 %v2049_v35, %v443_v47  ;;  %v8202_v4 = vmul.f32 %v2065_v16, %v510_v21  ;;  %v2482_v33 = vmul.f32 %v2050_v18, %v444_v53  ;;  %v2082_v45 = vld [vmem:[%s8787_s3 + $0x278] sm:$0xff]  ;;  %v9347_v47 = vld [vmem:[#allocation55_spill] sm:$0xff] }
 0x3d0   : > { %v1834_v36 = vsel %vm763_vm6, %v1664_v40, %v1666_v30  ;;  %v9342_v40 = vld [vmem:[#allocation46_spill] sm:$0xff]  ;;  %v9348_v53 = vld [vmem:[#allocation53_spill] sm:$0xff] }
 0x3d1   : > { %v8171_v62 = vsel %vm495_vm2, %v9340_v13, %v9342_v40  ;;  %v2860_v31 = vmul.f32 %v2428_v38, %v1834_v36  ;;  %v1835_v38 = vsel %vm763_vm6, %v1666_v30, %v1668_v57  ;;  %v9345_v30 = vld [vmem:[#allocation79_spill] sm:$0xff]  ;;  %v577_v17 = vsel %vm562_vm3, %v9348_v53, %v9347_v47  ;;  %v9349_v36 = vld [vmem:[#allocation54_spill] sm:$0xff]  ;;  %v9350_v13 = vld [vmem:[#allocation101_spill] sm:$0xff] }
 0x3d2   : > { %v2498_v61 = vmul.f32 %v2066_v46, %v8171_v62  ;;  %v8216_v9 = vsel %vm629_vm4, %v9345_v30, %v9344_v34  ;;  %v578_v35 = vsel %vm562_vm3, %v9347_v47, %v9349_v36  ;;  %v2861_v16 = vmul.f32 %v2429_v39, %v1835_v38  ;;  %v9351_v18 = vld [vmem:[#allocation45_spill] sm:$0xff]  ;;  %v2081_v47 = vld [vmem:[%s8787_s3 + $0x270] sm:$0xff] }
 0x3d3   : > { %v8196_v54 = vpop.permute.xlu1 %1365  ;;  %v8198_v3 = vpop.permute.xlu0 %1669  ;;  %3209 = vmatprep.subr.mxu0 %v2860_v31  ;;  %v8253_v38 = vmul.f32 %v2207_v5, %v510_v21  ;;  %v2160_v21 = vld [vmem:[%s8787_s3 + $0x4e8] sm:$0xff]  ;;  %v2514_v5 = vmul.f32 %v2082_v45, %v578_v35  ;;  %v8267_v53 = vmul.f32 %v2223_v32, %v577_v17  ;;  %v9356_v45 = vld [vmem:[#allocation117_spill] sm:$0xff] }
 0x3d4   : > { %9343 = vst [vmem:[#allocation94_spill] sm:$0xff] %v8198_v3  ;;  %v1836_v28 = vsel %vm763_vm6, %v1668_v57, %v8198_v3  ;;  %3210 = vmatpush1.msra.mxu0 %v2859_v11  ;;  %v8221_v57 = vld [vmem:[%s8785_s1] sm:$0xff]  ;;  %v9352_v11 = vld [vmem:[#allocation44_spill] sm:$0xff]  ;;  %v2592_v22 = vmul.f32 %v8133_v24, %v2160_v21  ;;  %v4144_v24 = vld [vmem:[%s8785_s1 + $0x8] sm:$0xff] }
 0x3d5   : > { %v2862_v29 = vmul.f32 %v2430_v1, %v1836_v28  ;;  %9346 = vst [vmem:[#allocation24_spill] sm:$0xff] %v8221_v57  ;;  %3222 = vmatmul.mubr.f32.vlgmr.msra.gmra.mrb[4].mxu0 %v8221_v57  ;;  %3982 = vmatprep.subr.bf16.mxu0 %v3981_v27  ;;  %v9353_v1 = vpack.c.bf16 %v9351_v18, %v9352_v11  ;;  %v9358_v18 = vld [vmem:[#allocation129_spill] sm:$0xff]  ;;  %v2255_v21 = vld [vmem:[%s8787_s3 + $0x7e0] sm:$0xff] }
 0x3d6   : > { %3984 = vmatpush1.bf16.msra.mxu0 %v3983_v26  ;;  %3664 = vmatprep.mubr.msk.f32.mxu0 %vm2869_vm15, %v9350_v13  ;;  %v4033_v27 = vpack.c.bf16 %v2466_v50, %v8136_v37  ;;  %v4039_v28 = vpack.c.bf16 %v8202_v4, %v8200_v49  ;;  %v2530_v37 = vmul.f32 %v2098_v59, %v8216_v9  ;;  %v2097_v49 = vld [vmem:[%s8787_s3 + $0x2f0] sm:$0xff]  ;;  %v9355_v59 = vld [vmem:[#allocation122_spill] sm:$0xff]  ;;  %v2146_v3 = vld [vmem:[%s8787_s3 + $0x478] sm:$0xff] }
 0x3d7   : > { %v8241_v46 = vpop.permute.xlu1 %1335  ;;  %3280 = vmatprep.subr.mxu1 %v2862_v29  ;;  %v8243_v31 = vpop.permute.xlu0 %1367  ;;  %3986 = vmatprep.subr.bf16.mxu0 %v9353_v1  ;;  %v2208_v29 = vld [vmem:[%s8787_s3 + $0x668] sm:$0xff]  ;;  %v4037_v50 = vpack.c.bf16 %v2498_v61, %v2482_v33  ;;  %v9354_v4 = vld [vmem:[#allocation80_spill] sm:$0xff]  ;;  %v8278_v61 = vmul.f32 %v2224_v20, %v578_v35  ;;  %v2130_v33 = vld [vmem:[%s8787_s3 + $0x3f8] sm:$0xff]  ;;  %v8286_v32 = vsel %vm763_vm6, %v9356_v45, %v9355_v59 }
 0x3d8   : > { %3281 = vmatpush1.msra.mxu1 %v2861_v16  ;;  %v8275_v13 = vsel %vm629_vm4, %v9354_v4, %v9345_v30  ;;  %v2144_v16 = vld [vmem:[%s8787_s3 + $0x468] sm:$0xff]  ;;  %v9357_v30 = vld [vmem:[#allocation128_spill] sm:$0xff]  ;;  %v9360_v35 = vld [vmem:[#allocation38_spill] sm:$0xff]  ;;  %v2513_v4 = vmul.f32 %v2081_v47, %v577_v17 }
 0x3d9   : > { %3293 = vmatmul.mubr.f32.vlgmr.msra.gmra.mrb[4].mxu1 %v8221_v57  ;;  %4034 = vmatprep.subr.bf16.mxu1 %v4033_v27  ;;  %v844_v11 = vsel %vm830_vm7, %v9358_v18, %v9357_v30  ;;  %v9359_v1 = vld [vmem:[#allocation39_spill] sm:$0xff]  ;;  %v8298_v27 = vmul.f32 %v2208_v29, %v8171_v62  ;;  %v2529_v57 = vmul.f32 %v2097_v49, %v8275_v13  ;;  %v9365_v62 = vld [vmem:[#allocation93_spill] sm:$0xff]  ;;  %v9367_v47 = vld [vmem:[#allocation92_spill] sm:$0xff] }
 0x3da   : > { %v9361_v20 = vpack.c.bf16 %v9359_v1, %v9360_v35  ;;  %4036 = vmatpush1.bf16.msra.mxu1 %v4035_v58  ;;  %v2114_v58 = vld [vmem:[%s8787_s3 + $0x378] sm:$0xff]  ;;  %v9366_v29 = vld [vmem:[#allocation91_spill] sm:$0xff]  ;;  %3665 = vmatprep.mubr.msk.f32.mxu1 %vm2869_vm15, %v4144_v24  ;;  %v2129_v49 = vld [vmem:[%s8787_s3 + $0x3f0] sm:$0xff]  ;;  %v2562_v1 = vmul.f32 %v2130_v33, %v8286_v32  ;;  %v2591_v24 = vmul.f32 %v8119_v2, %v2159_v0 }
 0x3db   : > { %v8300_v39 = vpop.permute.xlu1 %1369  ;;  %4038 = vmatprep.subr.bf16.mxu1 %v4037_v50  ;;  %v8302_v26 = vpop.permute.xlu0 %1337  ;;  %v711_v17 = vsel %vm696_vm5, %v9366_v29, %v9365_v62  ;;  %v712_v50 = vsel %vm696_vm5, %v9365_v62, %v9367_v47  ;;  %v2143_v35 = vld [vmem:[%s8787_s3 + $0x460] sm:$0xff]  ;;  %v2576_v29 = vmul.f32 %v2144_v16, %v844_v11  ;;  %v9372_v56 = vld [vmem:[#allocation77_spill] sm:$0xff]  ;;  %v2113_v16 = vld [vmem:[%s8787_s3 + $0x370] sm:$0xff]  ;;  %v4043_v7 = vpack.c.bf16 %v2529_v57, %v2513_v4 }
 0x3dc   : > { %3988 = vmatpush1.bf16.msra.mxu0 %v9361_v20  ;;  %v9369_v20 = vld [vmem:[#allocation126_spill] sm:$0xff]  ;;  %v9374_v8 = vpack.c.bf16 %v9372_v56, %v9373_v6  ;;  %v2256_v11 = vld [vmem:[%s8787_s3 + $0x7e8] sm:$0xff]  ;;  %v9376_v56 = vld [vmem:[#allocation120_spill] sm:$0xff]  ;;  %v8377_v19 = vmul.f32 %v2255_v21, %v711_v17 }
 0x3dd   : > { %3990 = vmatprep.subr.bf16.mxu0 %v9364_v55  ;;  %v4041_v55 = vpack.c.bf16 %v2530_v37, %v2514_v5  ;;  %v9368_v37 = vld [vmem:[#allocation118_spill] sm:$0xff]  ;;  %v843_v62 = vsel %vm830_vm7, %v9369_v20, %v9358_v18  ;;  %v2546_v20 = vmul.f32 %v2114_v58, %v712_v50  ;;  %v2594_v18 = vmul.f32 %v7729_v48, %v2162_v25  ;;  %v2161_v0 = vld [vmem:[%s8787_s3 + $0x4f0] sm:$0xff] }
 0x3de   : > { %v8337_v5 = vsel %vm763_vm6, %v9368_v37, %v9356_v45  ;;  %v9370_v45 = vld [vmem:[#allocation130_spill] sm:$0xff]  ;;  %v9371_v37 = vld [vmem:[#allocation131_spill] sm:$0xff]  ;;  %4040 = vmatpush1.bf16.msra.mxu1 %v4039_v28  ;;  %v2575_v58 = vmul.f32 %v2143_v35, %v843_v62  ;;  %v2145_v48 = vld [vmem:[%s8787_s3 + $0x470] sm:$0xff]  ;;  %v3997_v21 = vpack.c.bf16 %v2592_v22, %v2576_v29  ;;  %v8392_v35 = vmul.f32 %v2256_v11, %v712_v50 }
 0x3df   : > { %v846_v33 = vsel %vm830_vm7, %v9371_v37, %v9370_v45  ;;  %v8366_v45 = vpop.permute.xlu1 %1399  ;;  %4042 = vmatprep.subr.bf16.mxu1 %v4041_v55  ;;  %v8368_v6 = vpop.permute.xlu0 %1371  ;;  %v2561_v2 = vmul.f32 %v2129_v49, %v8337_v5  ;;  %v2240_v55 = vld [vmem:[%s8787_s3 + $0x768] sm:$0xff]  ;;  %v845_v57 = vsel %vm830_vm7, %v9357_v30, %v9371_v37  ;;  %v4045_v25 = vpack.c.bf16 %v2562_v1, %v2546_v20  ;;  %v2194_v62 = vld [vmem:[%s8787_s3 + $0x5f8] sm:$0xff]  ;;  %v4145_v22 = vld [vmem:[%s4219_s26 + $0x80] sm:$0xff] }
 0x3e0   : > { %3992 = vmatpush1.bf16.msra.mxu0 %v9374_v8  ;;  %v9375_v8 = vld [vmem:[#allocation121_spill] sm:$0xff]  ;;  %v2578_v4 = vmul.f32 %v2146_v3, %v846_v33  ;;  %v2545_v49 = vmul.f32 %v2113_v16, %v711_v17  ;;  %v8404_v3 = vmul.f32 %v2239_v60, %v8275_v13  ;;  %v2593_v30 = vmul.f32 %v4145_v22, %v2161_v0  ;;  %v2193_v17 = vld [vmem:[%s8787_s3 + $0x5f0] sm:$0xff]  ;;  %v9383_v33 = vld [vmem:[#allocation139_spill] sm:$0xff] }
 0x3e1   : > { %v9377_v28 = vpack.c.bf16 %v9375_v8, %v9376_v56  ;;  %v9378_v8 = vld [vmem:[#allocation134_spill] sm:$0xff]  ;;  %v9379_v56 = vld [vmem:[#allocation135_spill] sm:$0xff]  ;;  %v2577_v60 = vmul.f32 %v2145_v48, %v845_v57  ;;  %v893_v16 = vsel %vm562_vm3, %v9349_v36, %v9383_v33  ;;  %v2209_v48 = vld [vmem:[%s8787_s3 + $0x670] sm:$0xff] }
 0x3e2   : > { %4044 = vmatpush1.bf16.msra.mxu1 %v4043_v7  ;;  %v877_v50 = vsel %vm428_vm1, %v9339_v44, %v9379_v56  ;;  %v4047_v10 = vpack.c.bf16 %v2561_v2, %v2545_v49  ;;  %v3999_v7 = vpack.c.bf16 %v2591_v24, %v2575_v58  ;;  %v2178_v44 = vld [vmem:[%s8787_s3 + $0x578] sm:$0xff]  ;;  %v4011_v13 = vpack.c.bf16 %v8377_v19, %v8404_v3  ;;  %v2177_v24 = vld [vmem:[%s8787_s3 + $0x570] sm:$0xff]  ;;  %v2272_v20 = vld [vmem:[%s8787_s3 + $0x868] sm:$0xff] }
 0x3e3   : > { %3994 = vmatprep.subr.bf16.mxu0 %v9377_v28  ;;  %v878_v28 = vsel %vm428_vm1, %v9379_v56, %v9378_v8  ;;  %v8413_v1 = vpop.permute.xlu1 %1433  ;;  %4046 = vmatprep.subr.bf16.mxu1 %v4045_v25  ;;  %v8415_v29 = vpop.permute.xlu0 %1401  ;;  %v4049_v11 = vpack.c.bf16 %v2594_v18, %v2578_v4  ;;  %v2625_v2 = vmul.f32 %v2193_v17, %v877_v50  ;;  %v2226_v58 = vld [vmem:[%s8787_s3 + $0x6f8] sm:$0xff]  ;;  %v9384_v0 = vld [vmem:[#allocation138_spill] sm:$0xff]  ;;  %v9387_v8 = vld [vmem:[#allocation136_spill] sm:$0xff] }
 0x3e4   : > { %3996 = vmatpush1.bf16.msra.mxu0 %v9382_v52  ;;  %v8418_v52 = vmul.f32 %v2240_v55, %v8216_v9  ;;  %v2626_v37 = vmul.f32 %v2194_v62, %v878_v28  ;;  %v2225_v9 = vld [vmem:[%s8787_s3 + $0x6f0] sm:$0xff]  ;;  %v894_v55 = vsel %vm562_vm3, %v9383_v33, %v9384_v0  ;;  %v8449_v18 = vmul.f32 %v2271_v51, %v8337_v5  ;;  %v9385_v57 = vld [vmem:[#allocation137_spill] sm:$0xff] }
 0x3e5   : > { %3998 = vmatprep.subr.bf16.mxu0 %v3997_v21  ;;  %v885_v4 = vsel %vm495_vm2, %v9342_v40, %v9385_v57  ;;  %v2610_v25 = vmul.f32 %v2178_v44, %v7758_v14  ;;  %v4051_v5 = vpack.c.bf16 %v2593_v30, %v2577_v60  ;;  %v2210_v62 = vld [vmem:[%s8787_s3 + $0x678] sm:$0xff]  ;;  %v886_v40 = vsel %vm495_vm2, %v9385_v57, %v9387_v8  ;;  %v9389_v30 = vld [vmem:[#allocation143_spill] sm:$0xff]  ;;  %v9391_v44 = vld [vmem:[#allocation140_spill] sm:$0xff] }
 0x3e6   : > { %4048 = vmatpush1.bf16.msra.mxu1 %v4047_v10  ;;  %v4009_v36 = vpack.c.bf16 %v8392_v35, %v8418_v52  ;;  %v9386_v35 = vpack.c.bf16 %v8187_v42, %v8190_v43  ;;  %v8471_v56 = vmul.f32 %v2225_v9, %v893_v16  ;;  %v2609_v14 = vmul.f32 %v2177_v24, %v7717_v63  ;;  %v2258_v42 = vld [vmem:[%s8787_s3 + $0x7f8] sm:$0xff]  ;;  %v9388_v43 = vld [vmem:[#allocation142_spill] sm:$0xff]  ;;  %v2288_v10 = vld [vmem:[%s8787_s3 + $0x8e8] sm:$0xff] }
 0x3e7   : > { %v8458_v21 = vpop.permute.xlu1 %1403  ;;  %4050 = vmatprep.subr.bf16.mxu1 %v4049_v11  ;;  %v8460_v49 = vpop.permute.xlu0 %1435  ;;  %v8475_v28 = vmul.f32 %v2272_v20, %v8286_v32  ;;  %v2658_v22 = vmul.f32 %v2226_v58, %v894_v55  ;;  %v910_v17 = vsel %vm696_vm5, %v9389_v30, %v9388_v43  ;;  %v4053_v50 = vpack.c.bf16 %v2626_v37, %v2610_v25  ;;  %v2242_v60 = vld [vmem:[%s8787_s3 + $0x778] sm:$0xff]  ;;  %v2257_v33 = vld [vmem:[%s8787_s3 + $0x7f0] sm:$0xff] }
 0x3e8   : > { %4000 = vmatpush1.bf16.msra.mxu0 %v3999_v7  ;;  %v2641_v52 = vmul.f32 %v2209_v48, %v885_v4  ;;  %v4055_v51 = vpack.c.bf16 %v2625_v2, %v2609_v14  ;;  %v1694_v63 = vsel %vm763_vm6, %v8196_v54, %v8243_v31  ;;  %v9390_v32 = vpack.c.bf16 %v8185_v41, %v8174_v15  ;;  %v9392_v37 = vld [vmem:[#allocation141_spill] sm:$0xff]  ;;  %v2241_v20 = vld [vmem:[%s8787_s3 + $0x770] sm:$0xff] }
 0x3e9   : > { %4002 = vmatprep.subr.bf16.mxu0 %v9386_v35  ;;  %v2642_v7 = vmul.f32 %v2210_v62, %v886_v40  ;;  %v902_v9 = vsel %vm629_vm4, %v9392_v37, %v9391_v44  ;;  %v909_v16 = vsel %vm696_vm5, %v9367_v47, %v9389_v30  ;;  %v9393_v24 = vpack.c.bf16 %v8278_v61, %v8298_v27  ;;  %v2287_v47 = vld [vmem:[%s8787_s3 + $0x8e0] sm:$0xff]  ;;  %v2274_v0 = vld [vmem:[%s8787_s3 + $0x878] sm:$0xff] }
 0x3ea   : > { %4052 = vmatpush1.bf16.msra.mxu1 %v4051_v5  ;;  %v4059_v11 = vpack.c.bf16 %v8471_v56, %v2641_v52  ;;  %v901_v2 = vsel %vm629_vm4, %v9344_v34, %v9392_v37  ;;  %v2690_v58 = vmul.f32 %v2258_v42, %v910_v17  ;;  %v1693_v61 = vsel %vm763_vm6, %v7705_v12, %v8196_v54  ;;  %v2290_v34 = vld [vmem:[%s8787_s3 + $0x8f8] sm:$0xff]  ;;  %v2320_v54 = vld [vmem:[%s8787_s3 + $0x9e8] sm:$0xff]  ;;  %v2273_v42 = vld [vmem:[%s8787_s3 + $0x870] sm:$0xff] }
 0x3eb   : > { %v1438_v15 = vpop.permute.xlu1 %1437  ;;  %4054 = vmatprep.subr.bf16.mxu1 %v4053_v50  ;;  %v1406_v41 = vpop.permute.xlu0 %1405  ;;  %v2720_v27 = vmul.f32 %v2288_v10, %v1694_v63  ;;  %v1680_v55 = vsel %vm763_vm6, %v8241_v46, %v8302_v26  ;;  %v1696_v48 = vsel %vm763_vm6, %v8300_v39, %v8368_v6  ;;  %v4057_v57 = vpack.c.bf16 %v2658_v22, %v2642_v7  ;;  %v2289_v6 = vld [vmem:[%s8787_s3 + $0x8f0] sm:$0xff]  ;;  %v2322_v52 = vld [vmem:[%s8787_s3 + $0x9f8] sm:$0xff]  ;;  %v2351_v44 = vld [vmem:[%s8787_s3 + $0xae0] sm:$0xff] }
 0x3ec   : > { %4004 = vmatpush1.bf16.msra.mxu0 %v9390_v32  ;;  %v2674_v4 = vmul.f32 %v2242_v60, %v902_v9  ;;  %v2689_v12 = vmul.f32 %v2257_v33, %v909_v16  ;;  %v1726_v25 = vsel %vm763_vm6, %v8413_v1, %v8460_v49  ;;  %v9394_v26 = vpack.c.bf16 %v8267_v53, %v8253_v38  ;;  %v2304_v38 = vld [vmem:[%s8787_s3 + $0x968] sm:$0xff]  ;;  %v2306_v19 = vld [vmem:[%s8787_s3 + $0x978] sm:$0xff] }
 0x3ed   : > { %4006 = vmatprep.subr.bf16.mxu0 %v9393_v24  ;;  %v2673_v35 = vmul.f32 %v2241_v20, %v901_v2  ;;  %v2719_v5 = vmul.f32 %v2287_v47, %v1693_v61  ;;  %v1695_v62 = vsel %vm763_vm6, %v8243_v31, %v8300_v39  ;;  %v2706_v56 = vmul.f32 %v2274_v0, %v1680_v55  ;;  %v2319_v39 = vld [vmem:[%s8787_s3 + $0x9e0] sm:$0xff]  ;;  %v9396_v37 = vld [vmem:[#allocation61_spill] sm:$0xff]  ;;  %v9397_v47 = vld [vmem:[#allocation47_spill] sm:$0xff] }
 0x3ee   : > { %4056 = vmatpush1.bf16.msra.mxu1 %v4055_v51  ;;  %v2722_v14 = vmul.f32 %v2290_v34, %v1696_v48  ;;  %v1710_v53 = vsel %vm763_vm6, %v8366_v45, %v8415_v29  ;;  %v4061_v22 = vpack.c.bf16 %v2690_v58, %v2674_v4  ;;  %v1679_v31 = vsel %vm763_vm6, %v9355_v59, %v8241_v46  ;;  %v9395_v59 = vld [vmem:[#allocation18_spill] sm:$0xff] }
 0x3ef   : > { %v1468_v8 = vpop.permute.xlu1 %1467  ;;  %4058 = vmatprep.subr.bf16.mxu1 %v4057_v57  ;;  %v1440_v40 = vpop.permute.xlu0 %1439  ;;  %v2752_v43 = vmul.f32 %v2320_v54, %v1726_v25  ;;  %v4013_v30 = vpack.c.bf16 %v2720_v27, %v8475_v28  ;;  %v4063_v17 = vpack.c.bf16 %v2689_v12, %v2673_v35  ;;  %v2721_v50 = vmul.f32 %v2289_v6, %v1695_v62  ;;  %v2335_v58 = vld [vmem:[%s8787_s3 + $0xa60] sm:$0xff]  ;;  %v2353_v62 = vld [vmem:[%s8787_s3 + $0xaf0] sm:$0xff] }
 0x3f0   : > { %4008 = vmatpush1.bf16.msra.mxu0 %v9394_v26  ;;  %v1728_v51 = vsel %vm763_vm6, %v1438_v15, %v1440_v40  ;;  %v4015_v46 = vpack.c.bf16 %v2719_v5, %v8449_v18  ;;  %v2736_v28 = vmul.f32 %v2304_v38, %v1710_v53  ;;  %v2705_v32 = vmul.f32 %v2273_v42, %v1679_v31  ;;  %v2321_v18 = vld [vmem:[%s8787_s3 + $0x9f0] sm:$0xff]  ;;  %v2338_v40 = vld [vmem:[%s8787_s3 + $0xa78] sm:$0xff] }
 0x3f1   : > { %4010 = vmatprep.subr.bf16.mxu0 %v4009_v36  ;;  %v1725_v36 = vsel %vm763_vm6, %v7865_v23, %v8413_v1  ;;  %v2303_v23 = vld [vmem:[%s8787_s3 + $0x960] sm:$0xff]  ;;  %v1709_v1 = vsel %vm763_vm6, %v9395_v59, %v8366_v45  ;;  %v1712_v3 = vsel %vm763_vm6, %v8458_v21, %v1406_v41  ;;  %v1727_v45 = vsel %vm763_vm6, %v8460_v49, %v1438_v15  ;;  %v2336_v41 = vld [vmem:[%s8787_s3 + $0xa68] sm:$0xff]  ;;  %v2305_v15 = vld [vmem:[%s8787_s3 + $0x970] sm:$0xff] }
 0x3f2   : > { %4060 = vmatpush1.bf16.msra.mxu1 %v4059_v11  ;;  %v2751_v7 = vmul.f32 %v2319_v39, %v1725_v36  ;;  %v2754_v60 = vmul.f32 %v2322_v52, %v1728_v51  ;;  %v4017_v33 = vpack.c.bf16 %v2752_v43, %v2736_v28  ;;  %v4067_v16 = vpack.c.bf16 %v2721_v50, %v2705_v32  ;;  %v2352_v49 = vld [vmem:[%s8787_s3 + $0xae8] sm:$0xff]  ;;  %v2337_v38 = vld [vmem:[%s8787_s3 + $0xa70] sm:$0xff] }
 0x3f3   : > { %v1502_v10 = vpop.permute.xlu1 %1501  ;;  %4062 = vmatprep.subr.bf16.mxu1 %v4061_v22  ;;  %v1470_v63 = vpop.permute.xlu0 %1469  ;;  %v2735_v24 = vmul.f32 %v2303_v23, %v1709_v1  ;;  %v1711_v20 = vsel %vm763_vm6, %v8415_v29, %v8458_v21  ;;  %v2738_v2 = vmul.f32 %v2306_v19, %v1712_v3  ;;  %v1741_v61 = vsel %vm763_vm6, %v9397_v47, %v1468_v8  ;;  %v9398_v23 = vld [vmem:[#allocation86_spill] sm:$0xff]  ;;  %v2368_v1 = vld [vmem:[%s8787_s3 + $0xb68] sm:$0xff]  ;;  %v9399_v32 = vld [vmem:[#allocation60_spill] sm:$0xff] }
 0x3f4   : > { %4012 = vmatpush1.bf16.msra.mxu0 %v4011_v13  ;;  %v4065_v13 = vpack.c.bf16 %v2722_v14, %v2706_v56  ;;  %v1757_v9 = vsel %vm763_vm6, %v9396_v37, %v1502_v10  ;;  %v1742_v11 = vsel %vm763_vm6, %v1468_v8, %v1470_v63  ;;  %v2753_v34 = vmul.f32 %v2321_v18, %v1727_v45  ;;  %v2354_v14 = vld [vmem:[%s8787_s3 + $0xaf8] sm:$0xff] }
 0x3f5   : > { %4014 = vmatprep.subr.bf16.mxu0 %v4013_v30  ;;  %v4019_v55 = vpack.c.bf16 %v2751_v7, %v2735_v24  ;;  %v2783_v48 = vmul.f32 %v2351_v44, %v1757_v9  ;;  %v2768_v4 = vmul.f32 %v2336_v41, %v1742_v11  ;;  %v4069_v29 = vpack.c.bf16 %v2754_v60, %v2738_v2  ;;  %v2385_v24 = vld [vmem:[%s8787_s3 + $0xbf0] sm:$0xff]  ;;  %v2370_v11 = vld [vmem:[%s8787_s3 + $0xb78] sm:$0xff] }
 0x3f6   : > { %4064 = vmatpush1.bf16.msra.mxu1 %v4063_v17  ;;  %v2737_v21 = vmul.f32 %v2305_v15, %v1711_v20  ;;  %v2767_v54 = vmul.f32 %v2335_v58, %v1741_v61  ;;  %v2386_v15 = vld [vmem:[%s8787_s3 + $0xbf8] sm:$0xff]  ;;  %v2369_v20 = vld [vmem:[%s8787_s3 + $0xb70] sm:$0xff] }
 0x3f7   : > { %v1472_v27 = vpop.permute.xlu1 %1471  ;;  %4066 = vmatprep.subr.bf16.mxu1 %v4065_v13  ;;  %v1504_v0 = vpop.permute.xlu0 %1503 }
 0x3f8   : > { %4016 = vmatpush1.bf16.msra.mxu0 %v4015_v46  ;;  %v1758_v57 = vsel %vm763_vm6, %v1502_v10, %v1504_v0  ;;  %v4071_v5 = vpack.c.bf16 %v2753_v34, %v2737_v21  ;;  %v4023_v6 = vpack.c.bf16 %v2783_v48, %v2767_v54  ;;  %v1743_v53 = vsel %vm763_vm6, %v1470_v63, %v1472_v27  ;;  %v2383_v46 = vld [vmem:[%s8787_s3 + $0xbe0] sm:$0xff]  ;;  %v2384_v10 = vld [vmem:[%s8787_s3 + $0xbe8] sm:$0xff] }
 0x3f9   : > { %4018 = vmatprep.subr.bf16.mxu0 %v4017_v33  ;;  %v2784_v12 = vmul.f32 %v2352_v49, %v1758_v57  ;;  %v2769_v30 = vmul.f32 %v2337_v38, %v1743_v53  ;;  %v2367_v63 = vld [vmem:[%s8787_s3 + $0xb60] sm:$0xff]  ;;  %v9400_v21 = vld [vmem:[#allocation99_spill] sm:$0xff] }
 0x3fa   : > { %4068 = vmatpush1.bf16.msra.mxu1 %v4067_v16 }
 0x3fb   : > { %v1506_v25 = vpop.permute.xlu1 %1505  ;;  %4070 = vmatprep.subr.bf16.mxu1 %v4069_v29  ;;  %v1474_v26 = vpop.permute.xlu0 %1473  ;;  %v4021_v35 = vpack.c.bf16 %v2784_v12, %v2768_v4  ;;  %v2415_v29 = vld [vmem:[%s8787_s3 + $0xce0] sm:$0xff] }
 0x3fc   : > { %4020 = vmatpush1.bf16.msra.mxu0 %v4019_v55  ;;  %v1759_v8 = vsel %vm763_vm6, %v1504_v0, %v1506_v25  ;;  %v1744_v56 = vsel %vm763_vm6, %v1472_v27, %v1474_v26 }
 0x3fd   : > { %4022 = vmatprep.subr.bf16.mxu0 %v4021_v35  ;;  %v2785_v31 = vmul.f32 %v2353_v62, %v1759_v8  ;;  %v2770_v36 = vmul.f32 %v2338_v40, %v1744_v56  ;;  %v2416_v35 = vld [vmem:[%s8787_s3 + $0xce8] sm:$0xff] }
 0x3fe   : > { %4072 = vmatpush1.bf16.msra.mxu1 %v4071_v5  ;;  %v2399_v5 = vld [vmem:[%s8787_s3 + $0xc60] sm:$0xff] }
 0x3ff   : > { %v1536_v22 = vpop.permute.xlu1 %1535  ;;  %v1508_v42 = vpop.permute.xlu0 %1507  ;;  %v4075_v51 = vpack.c.bf16 %v2785_v31, %v2769_v30 }
 0x400   : > { %4024 = vmatpush1.bf16.msra.mxu0 %v4023_v6  ;;  %v1760_v39 = vsel %vm763_vm6, %v1506_v25, %v1508_v42  ;;  %v1773_v7 = vsel %vm763_vm6, %v9399_v32, %v1536_v22  ;;  %v2400_v25 = vld [vmem:[%s8787_s3 + $0xc68] sm:$0xff] }
 0x401   : > { %v2786_v43 = vmul.f32 %v2354_v14, %v1760_v39  ;;  %v2799_v44 = vmul.f32 %v2367_v63, %v1773_v7  ;;  %v9401_v6 = vld [vmem:[#allocation87_spill] sm:$0xff] }
 0x403   : > { %v1570_v17 = vpop.permute.xlu1 %1569  ;;  %v1538_v50 = vpop.permute.xlu0 %1537  ;;  %v4073_v52 = vpack.c.bf16 %v2786_v43, %v2770_v36  ;;  %v2401_v36 = vld [vmem:[%s8787_s3 + $0xc70] sm:$0xff] }
 0x404   : > { %v1789_v59 = vsel %vm763_vm6, %v9398_v23, %v1570_v17  ;;  %v1774_v28 = vsel %vm763_vm6, %v1536_v22, %v1538_v50 }
 0x405   : > { %4074 = vmatprep.subr.bf16.mxu1 %v4073_v52  ;;  %v2815_v13 = vmul.f32 %v2383_v46, %v1789_v59  ;;  %v2800_v45 = vmul.f32 %v2368_v1, %v1774_v28  ;;  %v2417_v52 = vld [vmem:[%s8787_s3 + $0xcf0] sm:$0xff]  ;;  %v9402_v46 = vld [vmem:[#allocation98_spill] sm:$0xff] }
 0x406   : > { %4076 = vmatpush1.bf16.msra.mxu1 %v4075_v51  ;;  %v2418_v51 = vld [vmem:[%s8787_s3 + $0xcf8] sm:$0xff] }
 0x407   : > { %v1540_v19 = vpop.permute.xlu1 %1539  ;;  %v1572_v3 = vpop.permute.xlu0 %1571  ;;  %v4027_v16 = vpack.c.bf16 %v2815_v13, %v2799_v44 }
 0x408   : > { %v1790_v18 = vsel %vm763_vm6, %v1570_v17, %v1572_v3  ;;  %v1775_v2 = vsel %vm763_vm6, %v1538_v50, %v1540_v19  ;;  %v2402_v17 = vld [vmem:[%s8787_s3 + $0xc78] sm:$0xff] }
 0x409   : > { %v2816_v60 = vmul.f32 %v2384_v10, %v1790_v18  ;;  %v2801_v34 = vmul.f32 %v2369_v20, %v1775_v2 }
 0x40b   : > { %v1574_v37 = vpop.permute.xlu1 %1573  ;;  %v1542_v9 = vpop.permute.xlu0 %1541  ;;  %v4025_v33 = vpack.c.bf16 %v2816_v60, %v2800_v45 }
 0x40c   : > { %v1791_v41 = vsel %vm763_vm6, %v1572_v3, %v1574_v37  ;;  %v1776_v49 = vsel %vm763_vm6, %v1540_v19, %v1542_v9  ;;  %v9403_v19 = vld [vmem:[#allocation95_spill] sm:$0xff] }
 0x40d   : > { %4026 = vmatprep.subr.bf16.mxu0 %v4025_v33  ;;  %v2817_v61 = vmul.f32 %v2385_v24, %v1791_v41  ;;  %v2802_v0 = vmul.f32 %v2370_v11, %v1776_v49 }
 0x40e   : > { %4028 = vmatpush1.bf16.msra.mxu0 %v4027_v16 }
 0x40f   : > { %v1604_v58 = vpop.permute.xlu1 %1603  ;;  %v1576_v47 = vpop.permute.xlu0 %1575  ;;  %v4079_v12 = vpack.c.bf16 %v2817_v61, %v2801_v34 }
 0x410   : > { %v1792_v27 = vsel %vm763_vm6, %v1574_v37, %v1576_v47  ;;  %v1805_v62 = vsel %vm763_vm6, %v9401_v6, %v1604_v58  ;;  %v2432_v47 = vld [vmem:[%s8787_s3 + $0xd68] sm:$0xff]  ;;  %v4169_v6 = vmov 0  }
 0x411   : > { %v2818_v55 = vmul.f32 %v2386_v15, %v1792_v27  ;;  %v2831_v53 = vmul.f32 %v2399_v5, %v1805_v62  ;;  %4110 = vset.pattern.permute.xlu0 %v4169_v6 }
 0x413   : > { %v1638_v48 = vpop.permute.xlu1 %1637  ;;  %v1606_v57 = vpop.permute.xlu0 %1605  ;;  %v4077_v4 = vpack.c.bf16 %v2818_v55, %v2802_v0  ;;  %v9404_v0 = vld [vmem:[#allocation94_spill] sm:$0xff] }
 0x414   : > { %v1821_v54 = vsel %vm763_vm6, %v9400_v21, %v1638_v48  ;;  %v1806_v26 = vsel %vm763_vm6, %v1604_v58, %v1606_v57  ;;  %v2431_v58 = vld [vmem:[%s8787_s3 + $0xd60] sm:$0xff]  ;;  %v2434_v21 = vld [vmem:[%s8787_s3 + $0xd78] sm:$0xff] }
 0x415   : > { %4078 = vmatprep.subr.bf16.mxu1 %v4077_v4  ;;  %v2847_v40 = vmul.f32 %v2415_v29, %v1821_v54  ;;  %v2832_v14 = vmul.f32 %v2400_v25, %v1806_v26  ;;  %v9405_v4 = vld [vmem:[#allocation24_spill] sm:$0xff] }
 0x416   : > { %4080 = vmatpush1.bf16.msra.mxu1 %v4079_v12  ;;  %v2433_v29 = vld [vmem:[%s8787_s3 + $0xd70] sm:$0xff] }
 0x417   : > { %v1640_v8 = vpop.permute.xlu0 %1639  ;;  %v4031_v42 = vpack.c.bf16 %v2847_v40, %v2831_v53 }
 0x418   : > { %v1822_v56 = vsel %vm763_vm6, %v1638_v48, %v1640_v8 }
 0x419   : > { %v2848_v38 = vmul.f32 %v2416_v35, %v1822_v56 }
 0x41b   : > { %v4029_v22 = vpack.c.bf16 %v2848_v38, %v2832_v14 }
 0x41d   : > { %4030 = vmatprep.subr.bf16.mxu0 %v4029_v22 }
 0x41e   : > { %4032 = vmatpush1.bf16.msra.mxu0 %v4031_v42  ;;  %v8685_v43 = vpop.f32.mrb[2].mxu0 }
 0x41f   : > { %v1608_v31 = vpop.permute.xlu1 %1607  ;;  %v1610_v39 = vpop.permute.xlu0 %1609  ;;  %v3482_v23 = vadd.f32 %v9402_v46, %v8685_v43  ;;  %v3501_v59 = vmul.f32 %v8685_v43, %v8685_v43 }
 0x420   : > { %v1807_v30 = vsel %vm763_vm6, %v1606_v57, %v1608_v31  ;;  %v1808_v50 = vsel %vm763_vm6, %v1608_v31, %v1610_v39  ;;  %v8702_v1 = vpop.f32.mrb[3].mxu0 }
 0x421   : > { %v3502_v63 = vmul.f32 %v8702_v1, %v8702_v1  ;;  %v3516_v3 = vadd.f32 %v9403_v19, %v3501_v59  ;;  %v3483_v13 = vadd.f32 %v3482_v23, %v8702_v1  ;;  %v2833_v18 = vmul.f32 %v2401_v36, %v1807_v30 }
 0x422   : > { %v2834_v45 = vmul.f32 %v2402_v17, %v1808_v50  ;;  %v8710_v37 = vpop.f32.mrb[2].mxu1 }
 0x423   : > { %v1642_v28 = vpop.permute.xlu1 %1641  ;;  %v1644_v10 = vpop.permute.xlu0 %1643  ;;  %v3517_v9 = vadd.f32 %v3516_v3, %v3502_v63  ;;  %v3484_v33 = vadd.f32 %v3483_v13, %v8710_v37  ;;  %v3503_v16 = vmul.f32 %v8710_v37, %v8710_v37 }
 0x424   : > { %v1823_v32 = vsel %vm763_vm6, %v1640_v8, %v1642_v28  ;;  %v1824_v7 = vsel %vm763_vm6, %v1642_v28, %v1644_v10  ;;  %v8715_v24 = vpop.f32.mrb[3].mxu1 }
 0x425   : > { %v2849_v60 = vmul.f32 %v2417_v52, %v1823_v32  ;;  %v2850_v44 = vmul.f32 %v2418_v51, %v1824_v7  ;;  %v3504_v49 = vmul.f32 %v8715_v24, %v8715_v24  ;;  %v3518_v15 = vadd.f32 %v3517_v9, %v3503_v16  ;;  %v3441_v9 = vld [vmem:[%s8786_s2] sm:$0xff] }
 0x426   : > { %v3485_v20 = vadd.f32 %v3484_v33, %v8715_v24 }
 0x427   : > { %v4083_v41 = vpack.c.bf16 %v2849_v60, %v2833_v18  ;;  %v4081_v11 = vpack.c.bf16 %v2850_v44, %v2834_v45  ;;  %v3519_v2 = vadd.f32 %v3518_v15, %v3504_v49  ;;  %v9407_v15 = vld [vmem:[#allocation56_spill] sm:$0xff] }
 0x429   : > { %4082 = vmatprep.subr.bf16.mxu1 %v4081_v11  ;;  %v9406_v11 = vld [vmem:[#allocation97_spill] sm:$0xff] }
 0x42a   : > { %4084 = vmatpush1.bf16.msra.mxu1 %v4083_v41 }
 0x433   : > { %v1672_v61 = vpop.permute.xlu1 %1671  ;;  %v1674_v27 = vpop.permute.xlu0 %1673 }
 0x434   : > { %v1837_v55 = vsel %vm763_vm6, %v9404_v0, %v1672_v61  ;;  %v1838_v34 = vsel %vm763_vm6, %v1672_v61, %v1674_v27 }
 0x435   : > { %v2863_v48 = vmul.f32 %v2431_v58, %v1837_v55  ;;  %v2864_v57 = vmul.f32 %v2432_v47, %v1838_v34  ;;  %v9409_v47 = vld [vmem:[#allocation85_spill] sm:$0xff] }
 0x437   : > { %3351 = vmatprep.subr.mxu0 %v2864_v57 }
 0x438   : > { %3352 = vmatpush1.msra.mxu0 %v2863_v48 }
 0x439   : > { %3364 = vmatmul.mubr.f32.vlgmr.msra.gmra.mrb[6].mxu0 %v9405_v4 }
 0x43e   : > { %v1678_v12 = vpop.permute.xlu0 %1677 }
 0x43f   : > { %v1676_v54 = vpop.permute.xlu1 %1675 }
 0x440   : > { %v1839_v25 = vsel %vm763_vm6, %v1674_v27, %v1676_v54  ;;  %v1840_v26 = vsel %vm763_vm6, %v1676_v54, %v1678_v12 }
 0x441   : > { %v2865_v35 = vmul.f32 %v2433_v29, %v1839_v25  ;;  %v2866_v5 = vmul.f32 %v2434_v21, %v1840_v26 }
 0x443   : > { %3422 = vmatprep.subr.mxu1 %v2866_v5 }
 0x444   : > { %3423 = vmatpush1.msra.mxu1 %v2865_v35 }
 0x445   : > { %3435 = vmatmul.mubr.f32.vlgmr.msra.gmra.mrb[6].mxu1 %v9405_v4 }
 0x4a8   : > { %v3223_v62 = vpop.f32.mrb[4].mxu0 }
 0x4a9   : > { %v3486_v8 = vadd.f32 %v3485_v20, %v3223_v62  ;;  %v3505_v40 = vmul.f32 %v3223_v62, %v3223_v62  ;;  %v3225_v56 = vpop.f32.mrb[5].mxu0 }
 0x4aa   : > { %v3506_v14 = vmul.f32 %v3225_v56, %v3225_v56 }
 0x4ab   : > { %v3520_v38 = vadd.f32 %v3519_v2, %v3505_v40  ;;  %v3487_v53 = vadd.f32 %v3486_v8, %v3225_v56  ;;  %v9408_v2 = vld [vmem:[#allocation57_spill] sm:$0xff] }
 0x4ac   : > { %v3294_v22 = vpop.f32.mrb[4].mxu1 }
 0x4ad   : > { %v3521_v42 = vadd.f32 %v3520_v38, %v3506_v14  ;;  %v3488_v31 = vadd.f32 %v3487_v53, %v3294_v22  ;;  %v3507_v39 = vmul.f32 %v3294_v22, %v3294_v22  ;;  %v3296_v36 = vpop.f32.mrb[5].mxu1 }
 0x4ae   : > { %v3508_v30 = vmul.f32 %v3296_v36, %v3296_v36 }
 0x4af   : > { %v3522_v17 = vadd.f32 %v3521_v42, %v3507_v39  ;;  %v3489_v50 = vadd.f32 %v3488_v31, %v3296_v36 }
 0x4b1   : > { %v3523_v52 = vadd.f32 %v3522_v17, %v3508_v30 }
 0x50c   : > { %v3365_v51 = vpop.f32.mrb[6].mxu0 }
 0x50d   : > { %v3490_v46 = vadd.f32 %v3489_v50, %v3365_v51  ;;  %v3509_v23 = vmul.f32 %v3365_v51, %v3365_v51  ;;  %v3367_v59 = vpop.f32.mrb[7].mxu0 }
 0x50e   : > { %v3510_v28 = vmul.f32 %v3367_v59, %v3367_v59 }
 0x50f   : > { %v3524_v10 = vadd.f32 %v3523_v52, %v3509_v23  ;;  %v3491_v63 = vadd.f32 %v3490_v46, %v3367_v59 }
 0x511   : > { %v3525_v32 = vadd.f32 %v3524_v10, %v3510_v28 }
 0x518   : > { %v3436_v7 = vpop.f32.mrb[6].mxu1 }
 0x519   : > { %v3492_v19 = vadd.f32 %v3491_v63, %v3436_v7  ;;  %v3511_v3 = vmul.f32 %v3436_v7, %v3436_v7  ;;  %v3438_v13 = vpop.f32.mrb[7].mxu1 }
 0x51a   : > { %v3512_v18 = vmul.f32 %v3438_v13, %v3438_v13 }
 0x51b   : > { %v3526_v45 = vadd.f32 %v3525_v32, %v3511_v3  ;;  %v3493_v60 = vadd.f32 %v3492_v19, %v3438_v13 }
 0x51d   : > { %v3527_v44 = vadd.f32 %v3526_v45, %v3512_v18  ;;  %3494 = vadd.xlane.f32.xlu1 %v3493_v60 }
 0x51f   : > { %3528 = vadd.xlane.f32.xlu0 %v3527_v44 }
 0x535   : > { %3444 = vperm.xlu0 %4110, %v3441_v9  }
 0x5aa   : > { %v3495_v33 = vpop.xlane.xlu1 %3494 }
 0x5ab   : > { %3496 = vst.msk [vmem:[%s268_s7] sm:$0xff] %vm1268_vm14, %v3495_v33 }
 0x5ac   : > { %v3529_v16 = vpop.xlane.xlu0 %3528 }
 0x5ad   : > { %3530 = vst.msk [vmem:[%s272_s29] sm:$0xff] %vm1268_vm14, %v3529_v16 }
 0x5b4   : > { %v3445_v41 = vpop.permute.xlu0 %3444 }
 0x5b5   : > { %v3447_v49 = vadd.f32 %v3445_v41, %v9406_v11  ;;  %v3448_v20 = vadd.f32 %v3445_v41, %v9407_v15  ;;  %v3449_v58 = vadd.f32 %v3445_v41, %v9408_v2  ;;  %v3450_v61 = vadd.f32 %v3445_v41, %v9409_v47 }
 0x5b6   : > { %v3451_v27 = vadd.f32 %v3445_v41, %v8685_v43  ;;  %v3452_v0 = vadd.f32 %v3445_v41, %v8702_v1  ;;  %v3453_v55 = vadd.f32 %v3445_v41, %v8710_v37  ;;  %v3454_v34 = vadd.f32 %v3445_v41, %v8715_v24 }
 0x5b7   : > { %v3455_v48 = vadd.f32 %v3445_v41, %v3223_v62  ;;  %v3456_v57 = vadd.f32 %v3445_v41, %v3225_v56  ;;  %v3457_v4 = vadd.f32 %v3445_v41, %v3294_v22  ;;  %v3458_v12 = vadd.f32 %v3445_v41, %v3296_v36  ;;  %3463 = vst [vmem:[%s8755_s15] sm:$0xff] %v3447_v49 }
 0x5b8   : > { %3464 = vst [vmem:[%s8755_s15 + $0x8] sm:$0xff] %v3448_v20  ;;  %3465 = vst [vmem:[%s8755_s15 + $0x10] sm:$0xff] %v3449_v58  ;;  %v3459_v43 = vadd.f32 %v3445_v41, %v3365_v51  ;;  %v3460_v1 = vadd.f32 %v3445_v41, %v3367_v59  ;;  %v3461_v37 = vadd.f32 %v3445_v41, %v3436_v7 }
 0x5b9   : > { %3466 = vst [vmem:[%s8755_s15 + $0x18] sm:$0xff] %v3450_v61  ;;  %v3462_v24 = vadd.f32 %v3445_v41, %v3438_v13  ;;  %3467 = vst [vmem:[%s8755_s15 + $0x20] sm:$0xff] %v3451_v27 }
 0x5ba   : > { %3468 = vst [vmem:[%s8755_s15 + $0x28] sm:$0xff] %v3452_v0  ;;  %3469 = vst [vmem:[%s8755_s15 + $0x30] sm:$0xff] %v3453_v55 }
 0x5bb   : > { %3470 = vst [vmem:[%s8755_s15 + $0x38] sm:$0xff] %v3454_v34  ;;  %3471 = vst [vmem:[%s8755_s15 + $0x40] sm:$0xff] %v3455_v48 }
 0x5bc   : > { %3472 = vst [vmem:[%s8755_s15 + $0x48] sm:$0xff] %v3456_v57  ;;  %3473 = vst [vmem:[%s8755_s15 + $0x50] sm:$0xff] %v3457_v4 }
 0x5bd   : > { %3474 = vst [vmem:[%s8755_s15 + $0x58] sm:$0xff] %v3458_v12  ;;  %3475 = vst [vmem:[%s8755_s15 + $0x60] sm:$0xff] %v3459_v43 }
 0x5be   : > { %3476 = vst [vmem:[%s8755_s15 + $0x68] sm:$0xff] %v3460_v1  ;;  %3477 = vst [vmem:[%s8755_s15 + $0x70] sm:$0xff] %v3461_v37 }
 0x5bf   : > { %3478 = vst [vmem:[%s8755_s15 + $0x78] sm:$0xff] %v3462_v24 }
 0x5c0 PF: > { %s17_s21 = sadd.s32 1, %s4152_s21  }
 0x5c1   : > { %p14_p4 = scmp.ge.s32.totalorder %s17_s21, 4  }
 0x5c3   :  { %16 = sbr.rel (!%p14_p4) target bundleno = 1 (0x1), region = 90 }

// kernel: encoder_conv_forward.5
= control target key start
LH: loop header
LB: loop body
LE: loop exit
PB: predicated region body
PF: predicated region fallthrough
CT: control target
= control target key end

     0   :  { %s1040_s18 = smov 0   ;;  %s1146_s0 = inlined_call_operand.vmem [shape: f32[2,8,2048], index: 0, kind: input, shape index: {}]   ;;  %s1147_s1 = inlined_call_operand.vmem [shape: f32[8,1], index: 1, kind: input, shape index: {}]   ;;  %s1148_s2 = inlined_call_operand.vmem [shape: f32[8,1], index: 2, kind: input, shape index: {}]   ;;  %s1149_s3 = inlined_call_operand.vmem [shape: f32[8,8], index: 3, kind: input, shape index: {}]   ;;  %s1150_s4 = inlined_call_operand.vmem [shape: f32[8,1], index: 4, kind: input, shape index: {}]   ;;  %s1151_s5 = inlined_call_operand.vmem [shape: f32[2,8,2048], index: 5, kind: output, shape index: {}]  }
   0x1 LB: > { %s967_s19 = sadd.s32 4294967295, %s1006_s18   ;;  %p971_p0 = scmp.ge.s32.totalorder %s1006_s18, 1  ;;  %s1006_s18 = sphi %s1040_s18, %s15_s18  }
   0x2   : > { %p187_p1 = scmp.lt.s32.totalorder %s1006_s18, 3 }
   0x4   : > { %p188_p2 = pnand %p971_p0, %p187_p1 }
   0x5   : > { %v241_v0 = vld [vmem:[%s1147_s1] sm:$0xff] (!%p188_p2)  ;;  %v1008_v1 = vmov (!%p188_p2), 0   ;;  %v1009_v3 = vmov (!%p188_p2), 0.0   ;;  %p215_p3 = scmp.lt.s32.totalorder (!%p188_p2), %s967_s19, 1  ;;  %vm308_vm0 = vcmask (!%p188_p2), 64512  }
   0x6   : > { %191 = sbr.rel (%p188_p2) target bundleno = 376 (0x178), region = 40  ;;  %998 = vset.pattern.permute.xlu0 (!%p188_p2), %v1008_v1  ;;  %999 = vset.pattern.permute.xlu1 (!%p188_p2), %v1008_v1  ;;  %v263_v2 = vld [vmem:[%s1148_s2] sm:$0xff] (!%p188_p2) }
   0x7   : > { %244 = vperm.xlu0 (!%p188_p2), %998, %v241_v0   ;;  %376 = vmatprep.mubr.f32.mxu0 (!%p188_p2), %v1009_v3  ;;  %v302_v4 = vld [vmem:[%s1150_s4] sm:$0xff] (!%p188_p2) }
   0x8   : > { %447 = vmatprep.mubr.f32.mxu1 (!%p188_p2), %v1009_v3  ;;  %305 = vperm.xlu1 (!%p188_p2), %999, %v302_v4   ;;  %v301_v43 = vld [vmem:[%s1149_s3] sm:$0xff] (!%p188_p2) }
   0xb   : > { %266 = vperm.xlu0 (!%p188_p2), %998, %v263_v2  }
   0xd   : > { %s1153_s19 = smov (!%p215_p3, %s967_s19), 1 }
   0xe   : > { %s986_s26 = sshll.u32 %s1153_s19, 7 }
   0xf   : > { %s1067_s29 = scalar_lea.vmem %s1146_s0, %s986_s26  ;;  %s1125_s9 = scalar_lea.vmem %s1151_s5, %s986_s26 }
  0x10   : > { %v226_v5 = vld [vmem:[%s1067_s29 + $0x8] sm:$0xff]  ;;  %v228_v6 = vld [vmem:[%s1067_s29 + $0x18] sm:$0xff]  ;;  %v225_v7 = vld [vmem:[%s1067_s29] sm:$0xff] }
  0x11   : > { %v227_v8 = vld [vmem:[%s1067_s29 + $0x10] sm:$0xff]  ;;  %v230_v10 = vld [vmem:[%s1067_s29 + $0x28] sm:$0xff]  ;;  %v232_v11 = vld [vmem:[%s1067_s29 + $0x38] sm:$0xff] }
  0x12   : > { %v229_v12 = vld [vmem:[%s1067_s29 + $0x20] sm:$0xff]  ;;  %v231_v13 = vld [vmem:[%s1067_s29 + $0x30] sm:$0xff]  ;;  %v234_v14 = vld [vmem:[%s1067_s29 + $0x48] sm:$0xff] }
  0x13   : > { %v236_v15 = vld [vmem:[%s1067_s29 + $0x58] sm:$0xff]  ;;  %v233_v31 = vld [vmem:[%s1067_s29 + $0x40] sm:$0xff]  ;;  %v235_v36 = vld [vmem:[%s1067_s29 + $0x50] sm:$0xff] }
  0x14   : > { %v238_v41 = vld [vmem:[%s1067_s29 + $0x68] sm:$0xff]  ;;  %v240_v42 = vld [vmem:[%s1067_s29 + $0x78] sm:$0xff]  ;;  %v237_v52 = vld [vmem:[%s1067_s29 + $0x60] sm:$0xff] }
  0x15   : > { %v239_v53 = vld [vmem:[%s1067_s29 + $0x70] sm:$0xff] }
  0x86   : > { %v1073_v9 = vpop.permute.xlu0 %244 }
  0x87   : > { %v248_v16 = vmul.f32 %v1073_v9, %v226_v5  ;;  %v250_v17 = vmul.f32 %v1073_v9, %v228_v6  ;;  %v247_v18 = vmul.f32 %v1073_v9, %v225_v7  ;;  %v249_v19 = vmul.f32 %v1073_v9, %v227_v8 }
  0x88   : > { %v252_v20 = vmul.f32 %v1073_v9, %v230_v10  ;;  %v254_v21 = vmul.f32 %v1073_v9, %v232_v11  ;;  %v251_v23 = vmul.f32 %v1073_v9, %v229_v12  ;;  %v253_v24 = vmul.f32 %v1073_v9, %v231_v13 }
  0x89   : > { %v256_v25 = vmul.f32 %v1073_v9, %v234_v14  ;;  %v258_v26 = vmul.f32 %v1073_v9, %v236_v15  ;;  %v255_v44 = vmul.f32 %v1073_v9, %v233_v31  ;;  %v257_v47 = vmul.f32 %v1073_v9, %v235_v36 }
  0x8a   : > { %v267_v22 = vpop.permute.xlu0 %266  ;;  %v260_v50 = vmul.f32 %v1073_v9, %v238_v41  ;;  %v262_v51 = vmul.f32 %v1073_v9, %v240_v42  ;;  %v259_v62 = vmul.f32 %v1073_v9, %v237_v52  ;;  %v261_v63 = vmul.f32 %v1073_v9, %v239_v53  ;;  %v306_v9 = vpop.permute.xlu1 %305 }
  0x8b   : > { %v270_v27 = vadd.f32 %v267_v22, %v248_v16  ;;  %v272_v28 = vadd.f32 %v267_v22, %v250_v17  ;;  %v269_v29 = vadd.f32 %v267_v22, %v247_v18  ;;  %v271_v30 = vadd.f32 %v267_v22, %v249_v19 }
  0x8c   : > { %v274_v32 = vadd.f32 %v267_v22, %v252_v20  ;;  %v276_v33 = vadd.f32 %v267_v22, %v254_v21  ;;  %v273_v34 = vadd.f32 %v267_v22, %v251_v23  ;;  %v275_v35 = vadd.f32 %v267_v22, %v253_v24 }
  0x8d   : > { %v286_v37 = vmax.f32 %v270_v27, 0.0  ;;  %v288_v38 = vmax.f32 %v272_v28, 0.0  ;;  %v285_v39 = vmax.f32 %v269_v29, 0.0  ;;  %v287_v40 = vmax.f32 %v271_v30, 0.0 }
  0x8e   : > { %v278_v45 = vadd.f32 %v267_v22, %v256_v25  ;;  %v280_v46 = vadd.f32 %v267_v22, %v258_v26  ;;  %v290_v48 = vmax.f32 %v274_v32, 0.0  ;;  %v292_v49 = vmax.f32 %v276_v33, 0.0 }
  0x8f   : > { %312 = vmatprep.subr.mxu0 %v286_v37  ;;  %383 = vmatprep.subr.mxu1 %v288_v38  ;;  %v289_v54 = vmax.f32 %v273_v34, 0.0  ;;  %v291_v55 = vmax.f32 %v275_v35, 0.0  ;;  %v277_v56 = vadd.f32 %v267_v22, %v255_v44  ;;  %v279_v57 = vadd.f32 %v267_v22, %v257_v47 }
  0x90   : > { %313 = vmatpush1.msra.mxu0 %v285_v39  ;;  %384 = vmatpush1.msra.mxu1 %v287_v40  ;;  %v294_v58 = vmax.f32 %v278_v45, 0.0  ;;  %v296_v59 = vmax.f32 %v280_v46, 0.0  ;;  %v282_v60 = vadd.f32 %v267_v22, %v260_v50  ;;  %v284_v61 = vadd.f32 %v267_v22, %v262_v51 }
  0x91   : > { %976 = vmatmul.mubr.msk.f32.vlgmr.msra.gmra.mrb[0].mxu0 %vm308_vm0, %v301_v43  ;;  %977 = vmatmul.mubr.msk.f32.vlgmr.msra.gmra.mrb[0].mxu1 %vm308_vm0, %v301_v43  ;;  %v293_v0 = vmax.f32 %v277_v56, 0.0  ;;  %v295_v1 = vmax.f32 %v279_v57, 0.0  ;;  %v281_v2 = vadd.f32 %v267_v22, %v259_v62  ;;  %v283_v4 = vadd.f32 %v267_v22, %v261_v63 }
  0x92   : > { %454 = vmatprep.subr.mxu0 %v290_v48  ;;  %525 = vmatprep.subr.mxu1 %v292_v49  ;;  %v298_v5 = vmax.f32 %v282_v60, 0.0  ;;  %v300_v6 = vmax.f32 %v284_v61, 0.0 }
  0x93   : > { %455 = vmatpush1.msra.mxu0 %v289_v54  ;;  %526 = vmatpush1.msra.mxu1 %v291_v55  ;;  %v297_v7 = vmax.f32 %v281_v2, 0.0  ;;  %v299_v8 = vmax.f32 %v283_v4, 0.0 }
  0x94   : > { %596 = vmatprep.subr.mxu0 %v294_v58  ;;  %667 = vmatprep.subr.mxu1 %v296_v59 }
  0x95   : > { %518 = vmatprep.mubr.f32.mxu0 %v1009_v3  ;;  %589 = vmatprep.mubr.f32.mxu1 %v1009_v3 }
  0x96   : > { %978 = vmatmul.mubr.msk.f32.vlgmr.msra.gmra.mrb[2].mxu0 %vm308_vm0, %v301_v43  ;;  %979 = vmatmul.mubr.msk.f32.vlgmr.msra.gmra.mrb[2].mxu1 %vm308_vm0, %v301_v43 }
  0x97   : > { %597 = vmatpush1.msra.mxu0 %v293_v0  ;;  %668 = vmatpush1.msra.mxu1 %v295_v1 }
  0x98   : > { %738 = vmatprep.subr.mxu0 %v298_v5  ;;  %809 = vmatprep.subr.mxu1 %v300_v6 }
  0x99   : > { %660 = vmatprep.mubr.f32.mxu0 %v1009_v3  ;;  %731 = vmatprep.mubr.f32.mxu1 %v1009_v3 }
  0x9a   : > { %980 = vmatmul.mubr.msk.f32.vlgmr.msra.gmra.mrb[4].mxu0 %vm308_vm0, %v301_v43  ;;  %981 = vmatmul.mubr.msk.f32.vlgmr.msra.gmra.mrb[4].mxu1 %vm308_vm0, %v301_v43 }
  0x9b   : > { %739 = vmatpush1.msra.mxu0 %v297_v7  ;;  %810 = vmatpush1.msra.mxu1 %v299_v8 }
  0x9c   : > { %802 = vmatprep.mubr.f32.mxu0 %v1009_v3  ;;  %873 = vmatprep.mubr.f32.mxu1 %v1009_v3 }
  0x9e   : > { %982 = vmatmul.mubr.msk.f32.vlgmr.msra.gmra.mrb[6].mxu0 %vm308_vm0, %v301_v43  ;;  %983 = vmatmul.mubr.msk.f32.vlgmr.msra.gmra.mrb[6].mxu1 %vm308_vm0, %v301_v43 }
 0x164   : > { %v378_v10 = vpop.f32.mrb[0].mxu0  ;;  %v449_v11 = vpop.f32.mrb[0].mxu1 }
 0x165   : > { %v379_v12 = vadd.f32 %v378_v10, %v306_v9  ;;  %v450_v13 = vadd.f32 %v449_v11, %v306_v9  ;;  %v380_v14 = vpop.f32.mrb[1].mxu0  ;;  %v451_v15 = vpop.f32.mrb[1].mxu1 }
 0x166   : > { %v381_v3 = vadd.f32 %v380_v14, %v306_v9  ;;  %v452_v16 = vadd.f32 %v451_v15, %v306_v9 }
 0x167   : > { %v880_v17 = vmax.f32 %v379_v12, 0.0  ;;  %v882_v18 = vmax.f32 %v450_v13, 0.0 }
 0x168   : > { %v881_v19 = vmax.f32 %v381_v3, 0.0  ;;  %v883_v20 = vmax.f32 %v452_v16, 0.0 }
 0x169   : > { %896 = vst [vmem:[%s1125_s9] sm:$0xff] %v880_v17  ;;  %898 = vst [vmem:[%s1125_s9 + $0x10] sm:$0xff] %v882_v18  ;;  %v520_v21 = vpop.f32.mrb[2].mxu0  ;;  %v591_v22 = vpop.f32.mrb[2].mxu1 }
 0x16a   : > { %897 = vst [vmem:[%s1125_s9 + $0x8] sm:$0xff] %v881_v19  ;;  %899 = vst [vmem:[%s1125_s9 + $0x18] sm:$0xff] %v883_v20  ;;  %v521_v23 = vadd.f32 %v520_v21, %v306_v9  ;;  %v592_v24 = vadd.f32 %v591_v22, %v306_v9  ;;  %v522_v25 = vpop.f32.mrb[3].mxu0  ;;  %v593_v26 = vpop.f32.mrb[3].mxu1 }
 0x16b   : > { %v523_v27 = vadd.f32 %v522_v25, %v306_v9  ;;  %v594_v28 = vadd.f32 %v593_v26, %v306_v9 }
 0x16c   : > { %v884_v29 = vmax.f32 %v521_v23, 0.0  ;;  %v886_v30 = vmax.f32 %v592_v24, 0.0 }
 0x16d   : > { %v885_v31 = vmax.f32 %v523_v27, 0.0  ;;  %v887_v32 = vmax.f32 %v594_v28, 0.0  ;;  %v662_v33 = vpop.f32.mrb[4].mxu0  ;;  %v733_v34 = vpop.f32.mrb[4].mxu1 }
 0x16e   : > { %900 = vst [vmem:[%s1125_s9 + $0x20] sm:$0xff] %v884_v29  ;;  %902 = vst [vmem:[%s1125_s9 + $0x30] sm:$0xff] %v886_v30  ;;  %v663_v35 = vadd.f32 %v662_v33, %v306_v9  ;;  %v734_v36 = vadd.f32 %v733_v34, %v306_v9  ;;  %v664_v37 = vpop.f32.mrb[5].mxu0  ;;  %v735_v38 = vpop.f32.mrb[5].mxu1 }
 0x16f   : > { %901 = vst [vmem:[%s1125_s9 + $0x28] sm:$0xff] %v885_v31  ;;  %903 = vst [vmem:[%s1125_s9 + $0x38] sm:$0xff] %v887_v32  ;;  %v665_v39 = vadd.f32 %v664_v37, %v306_v9  ;;  %v736_v40 = vadd.f32 %v735_v38, %v306_v9 }
 0x170   : > { %v888_v41 = vmax.f32 %v663_v35, 0.0  ;;  %v890_v42 = vmax.f32 %v734_v36, 0.0 }
 0x171   : > { %v889_v43 = vmax.f32 %v665_v39, 0.0  ;;  %v891_v44 = vmax.f32 %v736_v40, 0.0  ;;  %v804_v45 = vpop.f32.mrb[6].mxu0  ;;  %v875_v46 = vpop.f32.mrb[6].mxu1 }
 0x172   : > { %904 = vst [vmem:[%s1125_s9 + $0x40] sm:$0xff] %v888_v41  ;;  %906 = vst [vmem:[%s1125_s9 + $0x50] sm:$0xff] %v890_v42  ;;  %v805_v47 = vadd.f32 %v804_v45, %v306_v9  ;;  %v876_v48 = vadd.f32 %v875_v46, %v306_v9  ;;  %v806_v49 = vpop.f32.mrb[7].mxu0  ;;  %v877_v50 = vpop.f32.mrb[7].mxu1 }
 0x173   : > { %905 = vst [vmem:[%s1125_s9 + $0x48] sm:$0xff] %v889_v43  ;;  %907 = vst [vmem:[%s1125_s9 + $0x58] sm:$0xff] %v891_v44  ;;  %v807_v51 = vadd.f32 %v806_v49, %v306_v9  ;;  %v878_v52 = vadd.f32 %v877_v50, %v306_v9 }
 0x174   : > { %v892_v53 = vmax.f32 %v805_v47, 0.0  ;;  %v894_v54 = vmax.f32 %v876_v48, 0.0 }
 0x175   : > { %v893_v55 = vmax.f32 %v807_v51, 0.0  ;;  %v895_v56 = vmax.f32 %v878_v52, 0.0 }
 0x176   : > { %908 = vst [vmem:[%s1125_s9 + $0x60] sm:$0xff] %v892_v53  ;;  %910 = vst [vmem:[%s1125_s9 + $0x70] sm:$0xff] %v894_v54 }
 0x177   : > { %909 = vst [vmem:[%s1125_s9 + $0x68] sm:$0xff] %v893_v55  ;;  %911 = vst [vmem:[%s1125_s9 + $0x78] sm:$0xff] %v895_v56 }
 0x178 PF: > { %s15_s18 = sadd.s32 1, %s1006_s18  }
 0x179   : > { %p12_p4 = scmp.ge.s32.totalorder %s15_s18, 4  }
 0x17b   :  { %14 = sbr.rel (!%p12_p4) target bundleno = 1 (0x1), region = 70 }

</bundles_post_ra>
